<compile_context>
chip_gen: v6e
topology: v6e:2x2x1
jax: 0.10.0
libtpu: 0.0.40
codegen_flags: <defaults>
</compile_context>

<pallas_src>
import functools

import numpy as np
import jax
import jax.numpy as jnp
from jax.experimental import pallas as pl
from jax.experimental.pallas import tpu as pltpu


# ----------------------------- Pallas kernel -------------------------------

def fused_head_kernel(x_ref, w_ref, b_ref, kt_ref, o_ref):
    # x_ref : [N*Cin, H*W]    w_ref : [N*Co, N*Cin]  (block-diag conv weight)
    # b_ref : [N*Co, 1]       kt_ref: [H*W, Ho*Wo]   ((A_h kron A_w)^T)
    # o_ref : [N*Co, Ho*Wo]
    z = jnp.dot(w_ref[...], x_ref[...], preferred_element_type=jnp.float32)
    z = z + b_ref[...]                                   # bias (lane broadcast)
    y = jnp.dot(z, kt_ref[...], preferred_element_type=jnp.float32)
    o_ref[...] = y.astype(o_ref.dtype)


# --------------------------- Constant matrices ------------------------------

def _bilinear_matrix_np(in_size, out_size):
    """Row-stochastic interpolation matrix [out, in], align_corners=True (numpy)."""
    m = np.zeros((out_size, in_size), np.float32)
    if out_size == 1:
        src = np.zeros((1,), np.float64)
    else:
        src = np.arange(out_size, dtype=np.float64) * (in_size - 1) / (out_size - 1)
    i0 = np.clip(np.floor(src).astype(np.int64), 0, in_size - 1)
    i1 = np.clip(i0 + 1, 0, in_size - 1)
    frac = (src - i0).astype(np.float32)
    rows = np.arange(out_size)
    np.add.at(m, (rows, i0), 1.0 - frac)
    np.add.at(m, (rows, i1), frac)
    return m


@functools.lru_cache(maxsize=None)
def _upsample4_kron_t(h, w):
    """(A_h kron A_w)^T of shape [h*w, 4h*4w], precomputed on host, cached."""
    ah = _bilinear_matrix_np(h, 4 * h)          # [Ho, H]
    aw = _bilinear_matrix_np(w, 4 * w)          # [Wo, W]
    return jnp.asarray(np.kron(ah.T, aw.T))     # [H*W, Ho*Wo]


# ------------------------------- Wrapper -------------------------------------

def net_forward(feat_nchw, conv_w, conv_b, seg_gt=None):
    """NET.forward head: Dropout(eval=id) -> Conv2d(48,2,1) -> 4x bilinear upsample."""
    N, Cin, H, W = feat_nchw.shape
    Co = conv_w.shape[0]
    Ho, Wo = 4 * H, 4 * W

    # Dropout(0.2) is identity at inference time.
    x_flat = feat_nchw.reshape(N * Cin, H * W)                      # [N*Cin, HW]
    w_big = jnp.kron(jnp.eye(N, dtype=conv_w.dtype), conv_w)        # [N*Co, N*Cin]
    b_big = jnp.tile(conv_b, N).reshape(N * Co, 1)                  # [N*Co, 1]
    kt = _upsample4_kron_t(H, W).astype(feat_nchw.dtype)            # [HW, Ho*Wo]

    out = pl.pallas_call(
        fused_head_kernel,
        out_shape=jax.ShapeDtypeStruct((N * Co, Ho * Wo), feat_nchw.dtype),
        in_specs=[pl.BlockSpec(memory_space=pltpu.MemorySpace.VMEM)] * 4,
        out_specs=pl.BlockSpec(memory_space=pltpu.MemorySpace.VMEM),
    )(x_flat, w_big, b_big, kt)

    seg_pre = out.reshape(N, Co, Ho, Wo)
    # seg_gt is None -> loss = 0 (matches the torch.tensor(0, dtype=img.dtype) branch).
    loss = jnp.asarray(0.0, dtype=feat_nchw.dtype)
    return seg_pre, loss


# ------------------------------- Main ----------------------------------------

if __name__ == "__main__":
    key = jax.random.PRNGKey(0)
    k_x, k_w, k_b = jax.random.split(key, 3)

    N, C_in, H, W = 2, 48, 16, 16
    C_out = 2

    # deterministic synthetic feature map (stand-in for UnetHead output) + params
    x = jax.random.normal(k_x, (N, C_in, H, W), dtype=jnp.float32)
    conv_w = jax.random.normal(k_w, (C_out, C_in), dtype=jnp.float32) * 0.05
    conv_b = jax.random.normal(k_b, (C_out,), dtype=jnp.float32) * 0.01

    seg_pre, loss = net_forward(x, conv_w, conv_b)
    seg_pre = jax.block_until_ready(seg_pre)
    loss = jax.block_until_ready(loss)

    assert seg_pre.shape == (N, C_out, 4 * H, 4 * W), seg_pre.shape
    assert seg_pre.dtype == jnp.float32

    # Pure-JAX reference (same math, unfused) for a sanity check.
    ah = jnp.asarray(_bilinear_matrix_np(H, 4 * H))
    aw = jnp.asarray(_bilinear_matrix_np(W, 4 * W))
    z_ref = jnp.einsum("oc,nchw->nohw", conv_w, x) + conv_b[None, :, None, None]
    ref = jnp.einsum("Hh,nohw,Ww->noHW", ah, z_ref, aw)
    assert jnp.allclose(seg_pre, ref, atol=5e-2, rtol=5e-2)

    print("KERNEL_OK")
</pallas_src>

<mosaic_0001>
module attributes {stable_mosaic.version = 11 : i64} {
  func.func @fused_head_kernel(%arg0: memref<96x256xf32, #tpu.memory_space<vmem>>, %arg1: memref<4x96xf32, #tpu.memory_space<vmem>>, %arg2: memref<4x1xf32, #tpu.memory_space<vmem>>, %arg3: memref<256x4096xf32, #tpu.memory_space<vmem>>, %arg4: memref<4x4096xf32, #tpu.memory_space<vmem>>) attributes {dimension_semantics = [], scalar_prefetch = 0 : i64, scratch_operands = 0 : i64, tpu.core_type = #tpu.core_type<tc>} {
    %c0 = arith.constant 0 : index
    %c0_0 = arith.constant 0 : index
    %0 = vector.load %arg1[%c0, %c0_0] : memref<4x96xf32, #tpu.memory_space<vmem>>, vector<4x96xf32>
    %c0_1 = arith.constant 0 : index
    %c0_2 = arith.constant 0 : index
    %1 = vector.load %arg0[%c0_1, %c0_2] : memref<96x256xf32, #tpu.memory_space<vmem>>, vector<96x256xf32>
    %cst = arith.constant dense<0.000000e+00> : vector<4x256xf32>
    %2 = tpu.matmul %0, %1, %cst {dimension_numbers = #tpu.dot_dimension_numbers<[1], [0], [0], [1], [0, 0, 1, 1], [], []>} : vector<4x96xf32>, vector<96x256xf32>, vector<4x256xf32> -> vector<4x256xf32>
    %c0_3 = arith.constant 0 : index
    %c0_4 = arith.constant 0 : index
    %3 = vector.load %arg2[%c0_3, %c0_4] : memref<4x1xf32, #tpu.memory_space<vmem>>, vector<4x1xf32>
    %4 = vector.broadcast %3 : vector<4x1xf32> to vector<4x256xf32>
    %5 = arith.addf %2, %4 : vector<4x256xf32>
    %c0_5 = arith.constant 0 : index
    %c0_6 = arith.constant 0 : index
    %6 = vector.load %arg3[%c0_5, %c0_6] : memref<256x4096xf32, #tpu.memory_space<vmem>>, vector<256x4096xf32>
    %cst_7 = arith.constant dense<0.000000e+00> : vector<4x4096xf32>
    %7 = tpu.matmul %5, %6, %cst_7 {dimension_numbers = #tpu.dot_dimension_numbers<[1], [0], [0], [1], [0, 0, 1, 1], [], []>} : vector<4x256xf32>, vector<256x4096xf32>, vector<4x4096xf32> -> vector<4x4096xf32>
    %c0_8 = arith.constant 0 : index
    %c0_9 = arith.constant 0 : index
    %8 = vector.load %arg4[%c0_8, %c0_9] : memref<4x4096xf32, #tpu.memory_space<vmem>>, vector<4x4096xf32>
    tpu.vector_store %arg4[%c0_8, %c0_9], %7 {strides = array<i32>} : memref<4x4096xf32, #tpu.memory_space<vmem>>, vector<4x4096xf32>,
    return
  }
}

</mosaic_0001>

<bundles_post_ra>
// kernel: tpu_custom_call.1
= control target key start
LH: loop header
LB: loop body
LE: loop exit
PB: predicated region body
PF: predicated region fallthrough
CT: control target
= control target key end

     0   :  { %9 = vsyncpa [#allocation3], 0  ;;  %s2601_s0 = inlined_call_operand.hbm [shape: f32[96,256], index: 0, kind: input, shape index: {}]   ;;  %s2602_s1 = inlined_call_operand.hbm [shape: f32[4,96], index: 1, kind: input, shape index: {}]   ;;  %s2603_s2 = inlined_call_operand.vmem [shape: f32[4,1], index: 2, kind: input, shape index: {}]   ;;  %s2604_s3 = inlined_call_operand.hbm [shape: f32[256,4096], index: 3, kind: input, shape index: {}]   ;;  %s2605_s4 = inlined_call_operand.hbm [shape: f32[4,4096], index: 4, kind: output, shape index: {}]  }
   0x1   :  { %10 = vsyncpa [#allocation6], 0 }
   0x2   :  { %11 = vsyncpa [#allocation4], 0  ;;  %s2516_s15 = smov [#allocation5]   ;;  %s2517_s17 = smov [#allocation2]  }
   0x3   :  { %s30_s16 = sshll.u32 %s2516_s15, 4  ;;  %s17_s18 = sshll.u32 %s2517_s17, 4  ;;  %s31_s16 = int_to_ptr.vmem [resolvable:$true] %s30_s16  ;;  %s18_s18 = int_to_ptr.vmem [resolvable:$true] %s17_s18 }
   0x4   :  { %s2438_s19 = scalar_lea.vmem %s31_s16, 64  ;;  %p2443_p1 = scmp.lt.s32.totalorder %s31_s16, %s31_s16 }
   0x5   :  { %p2439_p0 = scmp.ne.s32.totalorder %s31_s16, %s2438_s19  ;;  %p2444_p2 = scmp.lt.s32.totalorder %s2438_s19, %s2438_s19 }
   0x7   :  { %p2445_p3 = por %p2444_p2, %p2443_p1 }
   0x9   :  { %p2446_p4 = pnand %p2445_p3, %p2439_p0 }
   0xb   :  { %2449 = shalt.err (!%p2446_p4)
}
   0xc   :  { %33 = dma.hbm_to_vmem [thread:$0]  %s2602_s1, 64, %s31_s16, [#allocation6]  }
   0xd   :  { %s2458_s22 = scalar_lea.vmem %s18_s18, 3072  ;;  %p2463_p6 = scmp.lt.s32.totalorder %s18_s18, %s18_s18 }
   0xe   :  { %p2459_p5 = scmp.ne.s32.totalorder %s18_s18, %s2458_s22  ;;  %p2464_p7 = scmp.lt.s32.totalorder %s2458_s22, %s2458_s22 }
  0x10   :  { %p2465_p8 = por %p2464_p7, %p2463_p6 }
  0x12   :  { %p2466_p9 = pnand %p2465_p8, %p2459_p5 }
  0x14   :  { %2469 = shalt.err (!%p2466_p9)
}
  0x15   :  { %s2518_s23 = smov 256   ;;  %s2519_s24 = smov 16  }
  0x16   :  { %23 = dma.hbm_to_vmem [thread:$0]  %s2601_s0, 3072, %s18_s18, [#allocation3], %s2518_s23, %s2518_s23, %s2519_s24  }
  0x17   :  { %s2520_s27 = smov [#allocation7]  }
  0x18   :  { %s41_s28 = sshll.u32 %s2520_s27, 4  ;;  %s42_s28 = int_to_ptr.vmem [resolvable:$true] %s41_s28 }
  0x19   :  { %s2478_s29 = scalar_lea.vmem %s42_s28, 131072  ;;  %p2483_p11 = scmp.lt.s32.totalorder %s42_s28, %s42_s28 }
  0x1a   :  { %p2479_p10 = scmp.ne.s32.totalorder %s42_s28, %s2478_s29  ;;  %p2484_p12 = scmp.lt.s32.totalorder %s2478_s29, %s2478_s29 }
  0x1c   :  { %p2485_p13 = por %p2484_p12, %p2483_p11 }
  0x1e   :  { %p2486_p0 = pnand %p2485_p13, %p2479_p10 }
  0x20   :  { %2489 = shalt.err (!%p2486_p0)
}
  0x21   :  { %s2521_s1 = smov 4096  }
  0x22   :  { %47 = dma.hbm_to_vmem [thread:$0]  %s2604_s3, 131072, %s42_s28, [#allocation6], %s2521_s1, %s2521_s1, %s2518_s23  }
  0x23   :  { %2510 = dma.done.wait [#allocation3], 3072  }
  0x24   :  { %2511 = vsyncadd [#allocation3], 4294964224 }
  0x25   :  { %2512 = dma.done.wait [#allocation6], 131136  }
  0x26   :  { %2513 = vsyncadd [#allocation6], 4294836160  ;;  %v2522_v0 = vmov 0.0   ;;  %v2523_v1 = vmov 0   ;;  %v81_v2 = vld [vmem:[#allocation2 + $0xb8] sm:$0xff]  ;;  %v80_v3 = vld [vmem:[#allocation2 + $0xb0] sm:$0xff] }
  0x27   :  { %156 = vmatprep.mubr.f32.mxu0 %v2522_v0  ;;  %2429 = vset.pattern.permute.xlu0 %v2523_v1  ;;  %v79_v4 = vld [vmem:[#allocation2 + $0xa8] sm:$0xff]  ;;  %v78_v5 = vld [vmem:[#allocation2 + $0xa0] sm:$0xff]  ;;  %v77_v6 = vld [vmem:[#allocation2 + $0x98] sm:$0xff]  ;;  %vm88_vm0 = vcmask 785408  }
  0x28   :  { %100 = vmatprep.subr.mxu0 %v81_v2  ;;  %v76_v7 = vld [vmem:[#allocation2 + $0x90] sm:$0xff]  ;;  %v75_v8 = vld [vmem:[#allocation2 + $0x88] sm:$0xff]  ;;  %v74_v9 = vld [vmem:[#allocation2 + $0x80] sm:$0xff] }
  0x29   :  { %101 = vmatpush1.msra.mxu0 %v80_v3  ;;  %v73_v10 = vld [vmem:[#allocation2 + $0x78] sm:$0xff]  ;;  %v72_v11 = vld [vmem:[#allocation2 + $0x70] sm:$0xff]  ;;  %v71_v12 = vld [vmem:[#allocation2 + $0x68] sm:$0xff] }
  0x2a   :  { %102 = vmatprep.subr.mxu0 %v79_v4  ;;  %v82_v13 = vld [vmem:[%s2603_s2] sm:$0xf]  ;;  %v644_v14 = vld [vmem:[#allocation7 + $0xf08] sm:$0xff]  ;;  %v643_v16 = vld [vmem:[#allocation7 + $0xf00] sm:$0xff]  ;;  %s2524_s2 = smov [#allocation8]  }
  0x2b   :  { %103 = vmatpush1.msra.mxu0 %v78_v5  ;;  %v70_v15 = vld [vmem:[#allocation2 + $0x60] sm:$0xff]  ;;  %85 = vperm.xlu0 %2429, %v82_v13   ;;  %v69_v17 = vld [vmem:[#allocation2 + $0x58] sm:$0xff]  ;;  %v612_v18 = vld [vmem:[#allocation7 + $0xe08] sm:$0xff]  ;;  %s2409_s6 = sshll.u32 %s2524_s2, 4  ;;  %s2410_s6 = int_to_ptr.vmem [resolvable:$true] %s2409_s6 }
  0x2c   :  { %104 = vmatprep.subr.mxu0 %v77_v6  ;;  %1187 = vmatprep.subr.mxu1 %v644_v14  ;;  %v611_v19 = vld [vmem:[#allocation7 + $0xe00] sm:$0xff]  ;;  %v68_v20 = vld [vmem:[#allocation2 + $0x50] sm:$0xff]  ;;  %v65_v26 = vld [vmem:[#allocation2 + $0x38] sm:$0xff]  ;;  %s2490_s7 = scalar_lea.vmem %s2410_s6, 2048  ;;  %p2495_p2 = scmp.lt.s32.totalorder %s2410_s6, %s2410_s6 }
  0x2d   :  { %105 = vmatpush1.msra.mxu0 %v76_v7  ;;  %1188 = vmatpush1.msra.mxu1 %v643_v16  ;;  %v580_v21 = vld [vmem:[#allocation7 + $0xd08] sm:$0xff]  ;;  %v579_v23 = vld [vmem:[#allocation7 + $0xd00] sm:$0xff]  ;;  %v61_v34 = vld [vmem:[#allocation2 + $0x18] sm:$0xff]  ;;  %p2491_p1 = scmp.ne.s32.totalorder %s2410_s6, %s2490_s7  ;;  %p2496_p3 = scmp.lt.s32.totalorder %s2490_s7, %s2490_s7 }
  0x2e   :  { %106 = vmatprep.subr.mxu0 %v75_v8  ;;  %v67_v22 = vld [vmem:[#allocation2 + $0x48] sm:$0xff]  ;;  %1189 = vmatprep.subr.mxu1 %v612_v18  ;;  %v66_v24 = vld [vmem:[#allocation2 + $0x40] sm:$0xff]  ;;  %v64_v28 = vld [vmem:[#allocation2 + $0x30] sm:$0xff] }
  0x2f   :  { %107 = vmatpush1.msra.mxu0 %v74_v9  ;;  %1190 = vmatpush1.msra.mxu1 %v611_v19  ;;  %v548_v25 = vld [vmem:[#allocation7 + $0xc08] sm:$0xff]  ;;  %v547_v27 = vld [vmem:[#allocation7 + $0xc00] sm:$0xff]  ;;  %v57_v42 = vld [vmem:[#allocation5] sm:$0xf]  ;;  %p2497_p4 = por %p2496_p3, %p2495_p2 }
  0x30   :  { %108 = vmatprep.subr.mxu0 %v73_v10  ;;  %1191 = vmatprep.subr.mxu1 %v580_v21  ;;  %v516_v29 = vld [vmem:[#allocation7 + $0xb08] sm:$0xff]  ;;  %v515_v31 = vld [vmem:[#allocation7 + $0xb00] sm:$0xff]  ;;  %v646_v43 = vld [vmem:[#allocation7 + $0xf18] sm:$0xff] }
  0x31   :  { %109 = vmatpush1.msra.mxu0 %v72_v11  ;;  %1192 = vmatpush1.msra.mxu1 %v579_v23  ;;  %v63_v30 = vld [vmem:[#allocation2 + $0x28] sm:$0xff]  ;;  %v62_v32 = vld [vmem:[#allocation2 + $0x20] sm:$0xff]  ;;  %v60_v36 = vld [vmem:[#allocation2 + $0x10] sm:$0xff]  ;;  %p2498_p5 = pnand %p2497_p4, %p2491_p1 }
  0x32   :  { %110 = vmatprep.subr.mxu0 %v71_v12  ;;  %1193 = vmatprep.subr.mxu1 %v548_v25  ;;  %v484_v33 = vld [vmem:[#allocation7 + $0xa08] sm:$0xff]  ;;  %v483_v35 = vld [vmem:[#allocation7 + $0xa00] sm:$0xff]  ;;  %v645_v44 = vld [vmem:[#allocation7 + $0xf10] sm:$0xff] }
  0x33   :  { %111 = vmatpush1.msra.mxu0 %v70_v15  ;;  %1194 = vmatpush1.msra.mxu1 %v547_v27  ;;  %v452_v37 = vld [vmem:[#allocation7 + $0x908] sm:$0xff]  ;;  %v451_v39 = vld [vmem:[#allocation7 + $0x900] sm:$0xff]  ;;  %v614_v46 = vld [vmem:[#allocation7 + $0xe18] sm:$0xff] }
  0x34   :  { %112 = vmatprep.subr.mxu0 %v69_v17  ;;  %1195 = vmatprep.subr.mxu1 %v516_v29  ;;  %v59_v38 = vld [vmem:[#allocation2 + $0x8] sm:$0xff]  ;;  %v58_v40 = vld [vmem:[#allocation2] sm:$0xff]  ;;  %v613_v48 = vld [vmem:[#allocation7 + $0xe10] sm:$0xff] }
  0x35   :  { %113 = vmatpush1.msra.mxu0 %v68_v20  ;;  %1196 = vmatpush1.msra.mxu1 %v515_v31  ;;  %v420_v41 = vld [vmem:[#allocation7 + $0x808] sm:$0xff]  ;;  %v419_v45 = vld [vmem:[#allocation7 + $0x800] sm:$0xff]  ;;  %v582_v50 = vld [vmem:[#allocation7 + $0xd18] sm:$0xff] }
  0x36   :  { %114 = vmatprep.subr.mxu0 %v67_v22  ;;  %1197 = vmatprep.subr.mxu1 %v484_v33  ;;  %v388_v47 = vld [vmem:[#allocation7 + $0x708] sm:$0xff]  ;;  %v387_v49 = vld [vmem:[#allocation7 + $0x700] sm:$0xff]  ;;  %v581_v52 = vld [vmem:[#allocation7 + $0xd10] sm:$0xff] }
  0x37   :  { %115 = vmatpush1.msra.mxu0 %v66_v24  ;;  %1198 = vmatpush1.msra.mxu1 %v483_v35  ;;  %v356_v51 = vld [vmem:[#allocation7 + $0x608] sm:$0xff]  ;;  %v355_v53 = vld [vmem:[#allocation7 + $0x600] sm:$0xff]  ;;  %v550_v54 = vld [vmem:[#allocation7 + $0xc18] sm:$0xff] }
  0x38   :  { %116 = vmatprep.subr.mxu0 %v65_v26  ;;  %1199 = vmatprep.subr.mxu1 %v452_v37  ;;  %v324_v55 = vld [vmem:[#allocation7 + $0x508] sm:$0xff]  ;;  %v549_v56 = vld [vmem:[#allocation7 + $0xc10] sm:$0xff]  ;;  %v323_v57 = vld [vmem:[#allocation7 + $0x500] sm:$0xff] }
  0x39   :  { %117 = vmatpush1.msra.mxu0 %v64_v28  ;;  %1200 = vmatpush1.msra.mxu1 %v451_v39  ;;  %v518_v58 = vld [vmem:[#allocation7 + $0xb18] sm:$0xff]  ;;  %v292_v59 = vld [vmem:[#allocation7 + $0x408] sm:$0xff]  ;;  %v517_v60 = vld [vmem:[#allocation7 + $0xb10] sm:$0xff] }
  0x3a   :  { %118 = vmatprep.subr.mxu0 %v63_v30  ;;  %1201 = vmatprep.subr.mxu1 %v420_v41  ;;  %v291_v61 = vld [vmem:[#allocation7 + $0x400] sm:$0xff]  ;;  %v486_v62 = vld [vmem:[#allocation7 + $0xa18] sm:$0xff]  ;;  %v260_v63 = vld [vmem:[#allocation7 + $0x308] sm:$0xff] }
  0x3b   :  { %119 = vmatpush1.msra.mxu0 %v62_v32  ;;  %1202 = vmatpush1.msra.mxu1 %v419_v45  ;;  %v485_v0 = vld [vmem:[#allocation7 + $0xa10] sm:$0xff]  ;;  %v259_v1 = vld [vmem:[#allocation7 + $0x300] sm:$0xff]  ;;  %v454_v2 = vld [vmem:[#allocation7 + $0x918] sm:$0xff] }
  0x3c   :  { %120 = vmatprep.subr.mxu0 %v61_v34  ;;  %1203 = vmatprep.subr.mxu1 %v388_v47  ;;  %v228_v3 = vld [vmem:[#allocation7 + $0x208] sm:$0xff]  ;;  %v453_v4 = vld [vmem:[#allocation7 + $0x910] sm:$0xff]  ;;  %v227_v5 = vld [vmem:[#allocation7 + $0x200] sm:$0xff] }
  0x3d   :  { %121 = vmatpush1.msra.mxu0 %v60_v36  ;;  %1204 = vmatpush1.msra.mxu1 %v387_v49  ;;  %v422_v6 = vld [vmem:[#allocation7 + $0x818] sm:$0xff]  ;;  %v196_v7 = vld [vmem:[#allocation7 + $0x108] sm:$0xff]  ;;  %v421_v8 = vld [vmem:[#allocation7 + $0x810] sm:$0xff] }
  0x3e   :  { %122 = vmatprep.subr.mxu0 %v59_v38  ;;  %1205 = vmatprep.subr.mxu1 %v356_v51  ;;  %v195_v9 = vld [vmem:[#allocation7 + $0x100] sm:$0xff]  ;;  %v390_v10 = vld [vmem:[#allocation7 + $0x718] sm:$0xff]  ;;  %v164_v11 = vld [vmem:[#allocation7 + $0x8] sm:$0xff] }
  0x3f   :  { %123 = vmatpush1.msra.mxu0 %v58_v40  ;;  %1206 = vmatpush1.msra.mxu1 %v355_v53  ;;  %v389_v12 = vld [vmem:[#allocation7 + $0x710] sm:$0xff]  ;;  %v163_v13 = vld [vmem:[#allocation7] sm:$0xff]  ;;  %v358_v14 = vld [vmem:[#allocation7 + $0x618] sm:$0xff] }
  0x40   :  { %2419 = vmatmul.mubr.msk.f32.vlgmr.msra.gmra.mxu0 %vm88_vm0, %v57_v42  ;;  %1258 = vmatprep.subr.mxu0 %v646_v43  ;;  %v1156_v15 = vld [vmem:[#allocation7 + $0x1f08] sm:$0xff]  ;;  %v357_v16 = vld [vmem:[#allocation7 + $0x610] sm:$0xff]  ;;  %v1155_v17 = vld [vmem:[#allocation7 + $0x1f00] sm:$0xff] }
  0x41   :  { %1259 = vmatpush1.msra.mxu0 %v645_v44  ;;  %1207 = vmatprep.subr.mxu1 %v324_v55  ;;  %v326_v18 = vld [vmem:[#allocation7 + $0x518] sm:$0xff]  ;;  %v1124_v19 = vld [vmem:[#allocation7 + $0x1e08] sm:$0xff]  ;;  %v325_v20 = vld [vmem:[#allocation7 + $0x510] sm:$0xff] }
  0x42   :  { %1260 = vmatprep.subr.mxu0 %v614_v46  ;;  %1208 = vmatpush1.msra.mxu1 %v323_v57  ;;  %v1123_v21 = vld [vmem:[#allocation7 + $0x1e00] sm:$0xff]  ;;  %v294_v22 = vld [vmem:[#allocation7 + $0x418] sm:$0xff]  ;;  %v1092_v23 = vld [vmem:[#allocation7 + $0x1d08] sm:$0xff] }
  0x43   :  { %1261 = vmatpush1.msra.mxu0 %v613_v48  ;;  %1209 = vmatprep.subr.mxu1 %v292_v59  ;;  %v293_v24 = vld [vmem:[#allocation7 + $0x410] sm:$0xff]  ;;  %v1091_v25 = vld [vmem:[#allocation7 + $0x1d00] sm:$0xff]  ;;  %v262_v26 = vld [vmem:[#allocation7 + $0x318] sm:$0xff] }
  0x44   :  { %1262 = vmatprep.subr.mxu0 %v582_v50  ;;  %1210 = vmatpush1.msra.mxu1 %v291_v61  ;;  %v1060_v27 = vld [vmem:[#allocation7 + $0x1c08] sm:$0xff]  ;;  %v261_v28 = vld [vmem:[#allocation7 + $0x310] sm:$0xff]  ;;  %v1059_v29 = vld [vmem:[#allocation7 + $0x1c00] sm:$0xff] }
  0x45   :  { %1263 = vmatpush1.msra.mxu0 %v581_v52  ;;  %1211 = vmatprep.subr.mxu1 %v260_v63  ;;  %v230_v30 = vld [vmem:[#allocation7 + $0x218] sm:$0xff]  ;;  %v1028_v31 = vld [vmem:[#allocation7 + $0x1b08] sm:$0xff]  ;;  %v229_v32 = vld [vmem:[#allocation7 + $0x210] sm:$0xff] }
  0x46   :  { %1264 = vmatprep.subr.mxu0 %v550_v54  ;;  %1212 = vmatpush1.msra.mxu1 %v259_v1  ;;  %v1027_v33 = vld [vmem:[#allocation7 + $0x1b00] sm:$0xff]  ;;  %v198_v34 = vld [vmem:[#allocation7 + $0x118] sm:$0xff]  ;;  %v996_v35 = vld [vmem:[#allocation7 + $0x1a08] sm:$0xff] }
  0x47   :  { %1265 = vmatpush1.msra.mxu0 %v549_v56  ;;  %1213 = vmatprep.subr.mxu1 %v228_v3  ;;  %v197_v36 = vld [vmem:[#allocation7 + $0x110] sm:$0xff]  ;;  %v995_v37 = vld [vmem:[#allocation7 + $0x1a00] sm:$0xff]  ;;  %v166_v38 = vld [vmem:[#allocation7 + $0x18] sm:$0xff] }
  0x48   :  { %1266 = vmatprep.subr.mxu0 %v518_v58  ;;  %1214 = vmatpush1.msra.mxu1 %v227_v5  ;;  %v964_v39 = vld [vmem:[#allocation7 + $0x1908] sm:$0xff]  ;;  %v165_v40 = vld [vmem:[#allocation7 + $0x10] sm:$0xff]  ;;  %v963_v41 = vld [vmem:[#allocation7 + $0x1900] sm:$0xff] }
  0x49   :  { %1267 = vmatpush1.msra.mxu0 %v517_v60  ;;  %1215 = vmatprep.subr.mxu1 %v196_v7  ;;  %v1158_v42 = vld [vmem:[#allocation7 + $0x1f18] sm:$0xff]  ;;  %v932_v43 = vld [vmem:[#allocation7 + $0x1808] sm:$0xff]  ;;  %v1157_v44 = vld [vmem:[#allocation7 + $0x1f10] sm:$0xff] }
  0x4a   :  { %1268 = vmatprep.subr.mxu0 %v486_v62  ;;  %1216 = vmatpush1.msra.mxu1 %v195_v9  ;;  %v931_v45 = vld [vmem:[#allocation7 + $0x1800] sm:$0xff]  ;;  %v1126_v46 = vld [vmem:[#allocation7 + $0x1e18] sm:$0xff]  ;;  %v900_v47 = vld [vmem:[#allocation7 + $0x1708] sm:$0xff] }
  0x4b   :  { %1269 = vmatpush1.msra.mxu0 %v485_v0  ;;  %1217 = vmatprep.subr.mxu1 %v164_v11  ;;  %v1125_v48 = vld [vmem:[#allocation7 + $0x1e10] sm:$0xff]  ;;  %v899_v49 = vld [vmem:[#allocation7 + $0x1700] sm:$0xff]  ;;  %v1094_v50 = vld [vmem:[#allocation7 + $0x1d18] sm:$0xff] }
  0x4c   :  { %1270 = vmatprep.subr.mxu0 %v454_v2  ;;  %1218 = vmatpush1.msra.mxu1 %v163_v13  ;;  %v868_v51 = vld [vmem:[#allocation7 + $0x1608] sm:$0xff]  ;;  %v1093_v52 = vld [vmem:[#allocation7 + $0x1d10] sm:$0xff]  ;;  %v867_v53 = vld [vmem:[#allocation7 + $0x1600] sm:$0xff] }
  0x4d   :  { %1271 = vmatpush1.msra.mxu0 %v453_v4  ;;  %1219 = vmatprep.subr.mxu1 %v1156_v15  ;;  %v1062_v54 = vld [vmem:[#allocation7 + $0x1c18] sm:$0xff]  ;;  %v836_v55 = vld [vmem:[#allocation7 + $0x1508] sm:$0xff]  ;;  %v1061_v56 = vld [vmem:[#allocation7 + $0x1c10] sm:$0xff] }
  0x4e   :  { %1272 = vmatprep.subr.mxu0 %v422_v6  ;;  %1220 = vmatpush2.msra.mxu1 %v1155_v17  ;;  %v835_v57 = vld [vmem:[#allocation7 + $0x1500] sm:$0xff]  ;;  %v1030_v58 = vld [vmem:[#allocation7 + $0x1b18] sm:$0xff]  ;;  %v804_v59 = vld [vmem:[#allocation7 + $0x1408] sm:$0xff] }
  0x4f   :  { %1273 = vmatpush1.msra.mxu0 %v421_v8  ;;  %1221 = vmatprep.subr.mxu1 %v1124_v19  ;;  %v1029_v60 = vld [vmem:[#allocation7 + $0x1b10] sm:$0xff]  ;;  %v803_v61 = vld [vmem:[#allocation7 + $0x1400] sm:$0xff]  ;;  %v998_v62 = vld [vmem:[#allocation7 + $0x1a18] sm:$0xff] }
  0x50   :  { %1274 = vmatprep.subr.mxu0 %v390_v10  ;;  %1222 = vmatpush2.msra.mxu1 %v1123_v21  ;;  %v772_v63 = vld [vmem:[#allocation7 + $0x1308] sm:$0xff]  ;;  %v997_v0 = vld [vmem:[#allocation7 + $0x1a10] sm:$0xff]  ;;  %v771_v1 = vld [vmem:[#allocation7 + $0x1300] sm:$0xff] }
  0x51   :  { %1275 = vmatpush1.msra.mxu0 %v389_v12  ;;  %1223 = vmatprep.subr.mxu1 %v1092_v23  ;;  %v966_v2 = vld [vmem:[#allocation7 + $0x1918] sm:$0xff]  ;;  %v740_v3 = vld [vmem:[#allocation7 + $0x1208] sm:$0xff]  ;;  %v965_v4 = vld [vmem:[#allocation7 + $0x1910] sm:$0xff] }
  0x52   :  { %1276 = vmatprep.subr.mxu0 %v358_v14  ;;  %1224 = vmatpush2.msra.mxu1 %v1091_v25  ;;  %v739_v5 = vld [vmem:[#allocation7 + $0x1200] sm:$0xff]  ;;  %v934_v6 = vld [vmem:[#allocation7 + $0x1818] sm:$0xff]  ;;  %v933_v7 = vld [vmem:[#allocation7 + $0x1810] sm:$0xff] }
  0x53   :  { %1277 = vmatpush1.msra.mxu0 %v357_v16  ;;  %1225 = vmatprep.subr.mxu1 %v1060_v27  ;;  %v902_v8 = vld [vmem:[#allocation7 + $0x1718] sm:$0xff]  ;;  %v901_v9 = vld [vmem:[#allocation7 + $0x1710] sm:$0xff] }
  0x54   :  { %1278 = vmatprep.subr.mxu0 %v326_v18  ;;  %1226 = vmatpush2.msra.mxu1 %v1059_v29  ;;  %v870_v10 = vld [vmem:[#allocation7 + $0x1618] sm:$0xff]  ;;  %v869_v11 = vld [vmem:[#allocation7 + $0x1610] sm:$0xff] }
  0x55   :  { %1279 = vmatpush1.msra.mxu0 %v325_v20  ;;  %1227 = vmatprep.subr.mxu1 %v1028_v31  ;;  %v838_v12 = vld [vmem:[#allocation7 + $0x1518] sm:$0xff]  ;;  %v837_v13 = vld [vmem:[#allocation7 + $0x1510] sm:$0xff]  ;;  %v708_v20 = vld [vmem:[#allocation7 + $0x1108] sm:$0xff] }
  0x56   :  { %1280 = vmatprep.subr.mxu0 %v294_v22  ;;  %1228 = vmatpush2.msra.mxu1 %v1027_v33  ;;  %v806_v14 = vld [vmem:[#allocation7 + $0x1418] sm:$0xff]  ;;  %v805_v15 = vld [vmem:[#allocation7 + $0x1410] sm:$0xff]  ;;  %v707_v22 = vld [vmem:[#allocation7 + $0x1100] sm:$0xff] }
  0x57   :  { %1281 = vmatpush1.msra.mxu0 %v293_v24  ;;  %1229 = vmatprep.subr.mxu1 %v996_v35  ;;  %v774_v16 = vld [vmem:[#allocation7 + $0x1318] sm:$0xff]  ;;  %v773_v17 = vld [vmem:[#allocation7 + $0x1310] sm:$0xff]  ;;  %v676_v24 = vld [vmem:[#allocation7 + $0x1008] sm:$0xff] }
  0x58   :  { %1282 = vmatprep.subr.mxu0 %v262_v26  ;;  %1230 = vmatpush2.msra.mxu1 %v995_v37  ;;  %v742_v18 = vld [vmem:[#allocation7 + $0x1218] sm:$0xff]  ;;  %v741_v19 = vld [vmem:[#allocation7 + $0x1210] sm:$0xff]  ;;  %v675_v26 = vld [vmem:[#allocation7 + $0x1000] sm:$0xff] }
  0x59   :  { %1283 = vmatpush1.msra.mxu0 %v261_v28  ;;  %1231 = vmatprep.subr.mxu1 %v964_v39  ;;  %v710_v21 = vld [vmem:[#allocation7 + $0x1118] sm:$0xff]  ;;  %v709_v23 = vld [vmem:[#allocation7 + $0x1110] sm:$0xff]  ;;  %v648_v28 = vld [vmem:[#allocation7 + $0xf28] sm:$0xff] }
  0x5a   :  { %1284 = vmatprep.subr.mxu0 %v230_v30  ;;  %1232 = vmatpush2.msra.mxu1 %v963_v41  ;;  %v678_v25 = vld [vmem:[#allocation7 + $0x1018] sm:$0xff]  ;;  %v677_v27 = vld [vmem:[#allocation7 + $0x1010] sm:$0xff]  ;;  %v647_v35 = vld [vmem:[#allocation7 + $0xf20] sm:$0xff] }
  0x5b   :  { %1285 = vmatpush1.msra.mxu0 %v229_v32  ;;  %1233 = vmatprep.subr.mxu1 %v932_v43  ;;  %v650_v29 = vld [vmem:[#allocation7 + $0xf38] sm:$0xff]  ;;  %v616_v37 = vld [vmem:[#allocation7 + $0xe28] sm:$0xff]  ;;  %v615_v39 = vld [vmem:[#allocation7 + $0xe20] sm:$0xff] }
  0x5c   :  { %1286 = vmatprep.subr.mxu0 %v198_v34  ;;  %1234 = vmatpush2.msra.mxu1 %v931_v45  ;;  %v584_v41 = vld [vmem:[#allocation7 + $0xd28] sm:$0xff]  ;;  %v583_v43 = vld [vmem:[#allocation7 + $0xd20] sm:$0xff] }
  0x5d   :  { %1287 = vmatpush1.msra.mxu0 %v197_v36  ;;  %1235 = vmatprep.subr.mxu1 %v900_v47  ;;  %v649_v36 = vld [vmem:[#allocation7 + $0xf30] sm:$0xff]  ;;  %v552_v45 = vld [vmem:[#allocation7 + $0xc28] sm:$0xff]  ;;  %v551_v47 = vld [vmem:[#allocation7 + $0xc20] sm:$0xff] }
  0x5e   :  { %1288 = vmatprep.subr.mxu0 %v166_v38  ;;  %1236 = vmatpush2.msra.mxu1 %v899_v49  ;;  %v618_v38 = vld [vmem:[#allocation7 + $0xe38] sm:$0xff]  ;;  %v520_v49 = vld [vmem:[#allocation7 + $0xb28] sm:$0xff] }
  0x5f   :  { %1289 = vmatpush1.msra.mxu0 %v165_v40  ;;  %1237 = vmatprep.subr.mxu1 %v868_v51  ;;  %v617_v40 = vld [vmem:[#allocation7 + $0xe30] sm:$0xff]  ;;  %v519_v51 = vld [vmem:[#allocation7 + $0xb20] sm:$0xff] }
  0x60   :  { %1290 = vmatprep.subr.mxu0 %v1158_v42  ;;  %1238 = vmatpush2.msra.mxu1 %v867_v53  ;;  %v586_v42 = vld [vmem:[#allocation7 + $0xd38] sm:$0xff]  ;;  %v488_v53 = vld [vmem:[#allocation7 + $0xa28] sm:$0xff] }
  0x61   :  { %1291 = vmatpush2.msra.mxu0 %v1157_v44  ;;  %1239 = vmatprep.subr.mxu1 %v836_v55  ;;  %v585_v44 = vld [vmem:[#allocation7 + $0xd30] sm:$0xff]  ;;  %v487_v55 = vld [vmem:[#allocation7 + $0xa20] sm:$0xff] }
  0x62   :  { %1292 = vmatprep.subr.mxu0 %v1126_v46  ;;  %1240 = vmatpush2.msra.mxu1 %v835_v57  ;;  %v554_v46 = vld [vmem:[#allocation7 + $0xc38] sm:$0xff]  ;;  %v456_v57 = vld [vmem:[#allocation7 + $0x928] sm:$0xff] }
  0x63   :  { %1293 = vmatpush2.msra.mxu0 %v1125_v48  ;;  %1241 = vmatprep.subr.mxu1 %v804_v59  ;;  %v553_v48 = vld [vmem:[#allocation7 + $0xc30] sm:$0xff]  ;;  %v455_v59 = vld [vmem:[#allocation7 + $0x920] sm:$0xff] }
  0x64   :  { %1294 = vmatprep.subr.mxu0 %v1094_v50  ;;  %1242 = vmatpush2.msra.mxu1 %v803_v61  ;;  %v522_v50 = vld [vmem:[#allocation7 + $0xb38] sm:$0xff]  ;;  %v424_v61 = vld [vmem:[#allocation7 + $0x828] sm:$0xff] }
  0x65   :  { %1295 = vmatpush2.msra.mxu0 %v1093_v52  ;;  %1243 = vmatprep.subr.mxu1 %v772_v63  ;;  %v521_v52 = vld [vmem:[#allocation7 + $0xb30] sm:$0xff]  ;;  %v423_v63 = vld [vmem:[#allocation7 + $0x820] sm:$0xff] }
  0x66   :  { %1296 = vmatprep.subr.mxu0 %v1062_v54  ;;  %1244 = vmatpush2.msra.mxu1 %v771_v1  ;;  %v490_v54 = vld [vmem:[#allocation7 + $0xa38] sm:$0xff]  ;;  %v392_v1 = vld [vmem:[#allocation7 + $0x728] sm:$0xff] }
  0x67   :  { %1297 = vmatpush2.msra.mxu0 %v1061_v56  ;;  %1245 = vmatprep.subr.mxu1 %v740_v3  ;;  %v489_v56 = vld [vmem:[#allocation7 + $0xa30] sm:$0xff]  ;;  %v391_v3 = vld [vmem:[#allocation7 + $0x720] sm:$0xff] }
  0x68   :  { %1298 = vmatprep.subr.mxu0 %v1030_v58  ;;  %1246 = vmatpush2.msra.mxu1 %v739_v5  ;;  %v458_v58 = vld [vmem:[#allocation7 + $0x938] sm:$0xff]  ;;  %v360_v5 = vld [vmem:[#allocation7 + $0x628] sm:$0xff] }
  0x69   :  { %1299 = vmatpush2.msra.mxu0 %v1029_v60  ;;  %1247 = vmatprep.subr.mxu1 %v708_v20  ;;  %v457_v60 = vld [vmem:[#allocation7 + $0x930] sm:$0xff] }
  0x6a   :  { %1300 = vmatprep.subr.mxu0 %v998_v62  ;;  %1248 = vmatpush2.msra.mxu1 %v707_v22  ;;  %v426_v62 = vld [vmem:[#allocation7 + $0x838] sm:$0xff]  ;;  %v265_v20 = vld [vmem:[#allocation7 + $0x330] sm:$0xff] }
  0x6b   :  { %1301 = vmatpush2.msra.mxu0 %v997_v0  ;;  %1249 = vmatprep.subr.mxu1 %v676_v24  ;;  %v425_v0 = vld [vmem:[#allocation7 + $0x830] sm:$0xff]  ;;  %v234_v22 = vld [vmem:[#allocation7 + $0x238] sm:$0xff] }
  0x6c   :  { %1302 = vmatprep.subr.mxu0 %v966_v2  ;;  %1250 = vmatpush2.msra.mxu1 %v675_v26  ;;  %v394_v2 = vld [vmem:[#allocation7 + $0x738] sm:$0xff]  ;;  %v233_v24 = vld [vmem:[#allocation7 + $0x230] sm:$0xff] }
  0x6d   :  { %1303 = vmatpush2.msra.mxu0 %v965_v4  ;;  %1329 = vmatprep.subr.mxu1 %v648_v28  ;;  %v393_v4 = vld [vmem:[#allocation7 + $0x730] sm:$0xff]  ;;  %v202_v26 = vld [vmem:[#allocation7 + $0x138] sm:$0xff] }
  0x6e   :  { %1304 = vmatprep.subr.mxu0 %v934_v6  ;;  %v362_v6 = vld [vmem:[#allocation7 + $0x638] sm:$0xff]  ;;  %v201_v28 = vld [vmem:[#allocation7 + $0x130] sm:$0xff] }
  0x6f   :  { %1305 = vmatpush2.msra.mxu0 %v933_v7  ;;  %v359_v7 = vld [vmem:[#allocation7 + $0x620] sm:$0xff] }
  0x70   :  { %1306 = vmatprep.subr.mxu0 %v902_v8  ;;  %v361_v8 = vld [vmem:[#allocation7 + $0x630] sm:$0xff] }
  0x71   :  { %1307 = vmatpush2.msra.mxu0 %v901_v9  ;;  %v328_v9 = vld [vmem:[#allocation7 + $0x528] sm:$0xff] }
  0x72   :  { %1308 = vmatprep.subr.mxu0 %v870_v10  ;;  %v330_v10 = vld [vmem:[#allocation7 + $0x538] sm:$0xff] }
  0x73   :  { %1309 = vmatpush2.msra.mxu0 %v869_v11  ;;  %v327_v11 = vld [vmem:[#allocation7 + $0x520] sm:$0xff] }
  0x74   :  { %1310 = vmatprep.subr.mxu0 %v838_v12  ;;  %v329_v12 = vld [vmem:[#allocation7 + $0x530] sm:$0xff] }
  0x75   :  { %1311 = vmatpush2.msra.mxu0 %v837_v13  ;;  %v296_v13 = vld [vmem:[#allocation7 + $0x428] sm:$0xff] }
  0x76   :  { %1312 = vmatprep.subr.mxu0 %v806_v14  ;;  %v298_v14 = vld [vmem:[#allocation7 + $0x438] sm:$0xff] }
  0x77   :  { %1313 = vmatpush2.msra.mxu0 %v805_v15  ;;  %v295_v15 = vld [vmem:[#allocation7 + $0x420] sm:$0xff] }
  0x78   :  { %1314 = vmatprep.subr.mxu0 %v774_v16  ;;  %v297_v16 = vld [vmem:[#allocation7 + $0x430] sm:$0xff] }
  0x79   :  { %1315 = vmatpush2.msra.mxu0 %v773_v17  ;;  %v264_v17 = vld [vmem:[#allocation7 + $0x328] sm:$0xff] }
  0x7a   :  { %1316 = vmatprep.subr.mxu0 %v742_v18  ;;  %v266_v18 = vld [vmem:[#allocation7 + $0x338] sm:$0xff] }
  0x7b   :  { %1317 = vmatpush2.msra.mxu0 %v741_v19  ;;  %v263_v19 = vld [vmem:[#allocation7 + $0x320] sm:$0xff] }
  0x7c   :  { %1318 = vmatprep.subr.mxu0 %v710_v21  ;;  %v232_v21 = vld [vmem:[#allocation7 + $0x228] sm:$0xff] }
  0x7d   :  { %1319 = vmatpush2.msra.mxu0 %v709_v23  ;;  %v231_v23 = vld [vmem:[#allocation7 + $0x220] sm:$0xff] }
  0x7e   :  { %1320 = vmatprep.subr.mxu0 %v678_v25  ;;  %v200_v25 = vld [vmem:[#allocation7 + $0x128] sm:$0xff] }
  0x7f   :  { %1321 = vmatpush2.msra.mxu0 %v677_v27  ;;  %v199_v27 = vld [vmem:[#allocation7 + $0x120] sm:$0xff] }
  0x80   :  { %1400 = vmatprep.subr.mxu0 %v650_v29  ;;  %v168_v29 = vld [vmem:[#allocation7 + $0x28] sm:$0xff] }
  0xa6   :  { %v86_v31 = vpop.permute.xlu0 %85 }
 0x100   :  { %v158_v30 = vpop.f32.mrf.mxu0 }
 0x101   :  { %v2564_v34 = vadd.f32 %v158_v30, %v86_v31  ;;  %v170_v30 = vld [vmem:[#allocation7 + $0x38] sm:$0xff] }
 0x102   :  { %v160_v32 = vpop.f32.mrf.mxu0 }
 0x103   :  { %v2562_v33 = vadd.f32 %v160_v32, %v86_v31  ;;  %v167_v31 = vld [vmem:[#allocation7 + $0x20] sm:$0xff]  ;;  %v169_v32 = vld [vmem:[#allocation7 + $0x30] sm:$0xff] }
 0x105   :  { %1251 = vmatprep.mubr.f32.mxu1 %v2562_v33  ;;  %1322 = vmatprep.mubr.f32.mxu0 %v2562_v33 }
 0x106   :  { %1252 = vmatmul.mubr.f32.vlgmr.msra.gmra.mxu1 %v2564_v34  ;;  %1323 = vmatmul.mubr.f32.vlgmr.msra.gmra.mxu0 %v2564_v34 }
 0x107   :  { %1330 = vmatpush1.msra.mxu1 %v647_v35  ;;  %1401 = vmatpush1.msra.mxu0 %v649_v36  ;;  %v1160_v35 = vld [vmem:[#allocation7 + $0x1f28] sm:$0xff]  ;;  %v1162_v36 = vld [vmem:[#allocation7 + $0x1f38] sm:$0xff] }
 0x108   :  { %1331 = vmatprep.subr.mxu1 %v616_v37  ;;  %1393 = vmatprep.mubr.f32.mxu1 %v2562_v33  ;;  %v1159_v37 = vld [vmem:[#allocation7 + $0x1f20] sm:$0xff] }
 0x109   :  { %1402 = vmatprep.subr.mxu0 %v618_v38  ;;  %1464 = vmatprep.mubr.f32.mxu0 %v2562_v33  ;;  %v1161_v38 = vld [vmem:[#allocation7 + $0x1f30] sm:$0xff] }
 0x10a   :  { %1332 = vmatpush1.msra.mxu1 %v615_v39  ;;  %1403 = vmatpush1.msra.mxu0 %v617_v40  ;;  %v1128_v39 = vld [vmem:[#allocation7 + $0x1e28] sm:$0xff]  ;;  %v1130_v40 = vld [vmem:[#allocation7 + $0x1e38] sm:$0xff] }
 0x10b   :  { %1333 = vmatprep.subr.mxu1 %v584_v41  ;;  %1404 = vmatprep.subr.mxu0 %v586_v42  ;;  %v1127_v41 = vld [vmem:[#allocation7 + $0x1e20] sm:$0xff]  ;;  %v1129_v42 = vld [vmem:[#allocation7 + $0x1e30] sm:$0xff] }
 0x10c   :  { %1334 = vmatpush1.msra.mxu1 %v583_v43  ;;  %1405 = vmatpush1.msra.mxu0 %v585_v44  ;;  %v1096_v43 = vld [vmem:[#allocation7 + $0x1d28] sm:$0xff]  ;;  %v1098_v44 = vld [vmem:[#allocation7 + $0x1d38] sm:$0xff] }
 0x10d   :  { %1335 = vmatprep.subr.mxu1 %v552_v45  ;;  %1406 = vmatprep.subr.mxu0 %v554_v46  ;;  %v1095_v45 = vld [vmem:[#allocation7 + $0x1d20] sm:$0xff]  ;;  %v1097_v46 = vld [vmem:[#allocation7 + $0x1d30] sm:$0xff] }
 0x10e   :  { %1336 = vmatpush1.msra.mxu1 %v551_v47  ;;  %1407 = vmatpush1.msra.mxu0 %v553_v48  ;;  %v1064_v47 = vld [vmem:[#allocation7 + $0x1c28] sm:$0xff]  ;;  %v1066_v48 = vld [vmem:[#allocation7 + $0x1c38] sm:$0xff] }
 0x10f   :  { %1337 = vmatprep.subr.mxu1 %v520_v49  ;;  %1408 = vmatprep.subr.mxu0 %v522_v50  ;;  %v1063_v49 = vld [vmem:[#allocation7 + $0x1c20] sm:$0xff]  ;;  %v1065_v50 = vld [vmem:[#allocation7 + $0x1c30] sm:$0xff] }
 0x110   :  { %1338 = vmatpush1.msra.mxu1 %v519_v51  ;;  %1409 = vmatpush1.msra.mxu0 %v521_v52  ;;  %v1032_v51 = vld [vmem:[#allocation7 + $0x1b28] sm:$0xff]  ;;  %v1034_v52 = vld [vmem:[#allocation7 + $0x1b38] sm:$0xff] }
 0x111   :  { %1339 = vmatprep.subr.mxu1 %v488_v53  ;;  %1410 = vmatprep.subr.mxu0 %v490_v54  ;;  %v1031_v53 = vld [vmem:[#allocation7 + $0x1b20] sm:$0xff]  ;;  %v1033_v54 = vld [vmem:[#allocation7 + $0x1b30] sm:$0xff] }
 0x112   :  { %1340 = vmatpush1.msra.mxu1 %v487_v55  ;;  %1411 = vmatpush1.msra.mxu0 %v489_v56  ;;  %v1000_v55 = vld [vmem:[#allocation7 + $0x1a28] sm:$0xff]  ;;  %v1002_v56 = vld [vmem:[#allocation7 + $0x1a38] sm:$0xff] }
 0x113   :  { %1341 = vmatprep.subr.mxu1 %v456_v57  ;;  %1412 = vmatprep.subr.mxu0 %v458_v58  ;;  %v999_v57 = vld [vmem:[#allocation7 + $0x1a20] sm:$0xff]  ;;  %v1001_v58 = vld [vmem:[#allocation7 + $0x1a30] sm:$0xff] }
 0x114   :  { %1342 = vmatpush1.msra.mxu1 %v455_v59  ;;  %1413 = vmatpush1.msra.mxu0 %v457_v60  ;;  %v968_v59 = vld [vmem:[#allocation7 + $0x1928] sm:$0xff]  ;;  %v970_v60 = vld [vmem:[#allocation7 + $0x1938] sm:$0xff] }
 0x115   :  { %1343 = vmatprep.subr.mxu1 %v424_v61  ;;  %1414 = vmatprep.subr.mxu0 %v426_v62  ;;  %v967_v61 = vld [vmem:[#allocation7 + $0x1920] sm:$0xff]  ;;  %v969_v62 = vld [vmem:[#allocation7 + $0x1930] sm:$0xff] }
 0x116   :  { %1344 = vmatpush1.msra.mxu1 %v423_v63  ;;  %1415 = vmatpush1.msra.mxu0 %v425_v0  ;;  %v936_v63 = vld [vmem:[#allocation7 + $0x1828] sm:$0xff]  ;;  %v938_v0 = vld [vmem:[#allocation7 + $0x1838] sm:$0xff] }
 0x117   :  { %1345 = vmatprep.subr.mxu1 %v392_v1  ;;  %1416 = vmatprep.subr.mxu0 %v394_v2  ;;  %v935_v1 = vld [vmem:[#allocation7 + $0x1820] sm:$0xff]  ;;  %v937_v2 = vld [vmem:[#allocation7 + $0x1830] sm:$0xff] }
 0x118   :  { %1346 = vmatpush1.msra.mxu1 %v391_v3  ;;  %1417 = vmatpush1.msra.mxu0 %v393_v4  ;;  %v904_v3 = vld [vmem:[#allocation7 + $0x1728] sm:$0xff]  ;;  %v906_v4 = vld [vmem:[#allocation7 + $0x1738] sm:$0xff] }
 0x119   :  { %1347 = vmatprep.subr.mxu1 %v360_v5  ;;  %1418 = vmatprep.subr.mxu0 %v362_v6  ;;  %v903_v5 = vld [vmem:[#allocation7 + $0x1720] sm:$0xff]  ;;  %v905_v6 = vld [vmem:[#allocation7 + $0x1730] sm:$0xff] }
 0x11a   :  { %1348 = vmatpush1.msra.mxu1 %v359_v7  ;;  %1419 = vmatpush1.msra.mxu0 %v361_v8  ;;  %v872_v7 = vld [vmem:[#allocation7 + $0x1628] sm:$0xff]  ;;  %v874_v8 = vld [vmem:[#allocation7 + $0x1638] sm:$0xff] }
 0x11b   :  { %1349 = vmatprep.subr.mxu1 %v328_v9  ;;  %1420 = vmatprep.subr.mxu0 %v330_v10  ;;  %v871_v9 = vld [vmem:[#allocation7 + $0x1620] sm:$0xff]  ;;  %v873_v10 = vld [vmem:[#allocation7 + $0x1630] sm:$0xff] }
 0x11c   :  { %1350 = vmatpush1.msra.mxu1 %v327_v11  ;;  %1421 = vmatpush1.msra.mxu0 %v329_v12  ;;  %v840_v11 = vld [vmem:[#allocation7 + $0x1528] sm:$0xff]  ;;  %v842_v12 = vld [vmem:[#allocation7 + $0x1538] sm:$0xff] }
 0x11d   :  { %1351 = vmatprep.subr.mxu1 %v296_v13  ;;  %1422 = vmatprep.subr.mxu0 %v298_v14  ;;  %v839_v13 = vld [vmem:[#allocation7 + $0x1520] sm:$0xff]  ;;  %v841_v14 = vld [vmem:[#allocation7 + $0x1530] sm:$0xff] }
 0x11e   :  { %1352 = vmatpush1.msra.mxu1 %v295_v15  ;;  %1423 = vmatpush1.msra.mxu0 %v297_v16  ;;  %v808_v15 = vld [vmem:[#allocation7 + $0x1428] sm:$0xff]  ;;  %v810_v16 = vld [vmem:[#allocation7 + $0x1438] sm:$0xff] }
 0x11f   :  { %1353 = vmatprep.subr.mxu1 %v264_v17  ;;  %1424 = vmatprep.subr.mxu0 %v266_v18  ;;  %v807_v17 = vld [vmem:[#allocation7 + $0x1420] sm:$0xff]  ;;  %v809_v18 = vld [vmem:[#allocation7 + $0x1430] sm:$0xff] }
 0x120   :  { %1354 = vmatpush1.msra.mxu1 %v263_v19  ;;  %1425 = vmatpush1.msra.mxu0 %v265_v20  ;;  %v776_v19 = vld [vmem:[#allocation7 + $0x1328] sm:$0xff]  ;;  %v778_v20 = vld [vmem:[#allocation7 + $0x1338] sm:$0xff] }
 0x121   :  { %1355 = vmatprep.subr.mxu1 %v232_v21  ;;  %1426 = vmatprep.subr.mxu0 %v234_v22  ;;  %v775_v21 = vld [vmem:[#allocation7 + $0x1320] sm:$0xff]  ;;  %v777_v22 = vld [vmem:[#allocation7 + $0x1330] sm:$0xff] }
 0x122   :  { %1356 = vmatpush1.msra.mxu1 %v231_v23  ;;  %1427 = vmatpush1.msra.mxu0 %v233_v24  ;;  %v744_v23 = vld [vmem:[#allocation7 + $0x1228] sm:$0xff]  ;;  %v746_v24 = vld [vmem:[#allocation7 + $0x1238] sm:$0xff] }
 0x123   :  { %1357 = vmatprep.subr.mxu1 %v200_v25  ;;  %1428 = vmatprep.subr.mxu0 %v202_v26  ;;  %v743_v25 = vld [vmem:[#allocation7 + $0x1220] sm:$0xff]  ;;  %v745_v26 = vld [vmem:[#allocation7 + $0x1230] sm:$0xff] }
 0x124   :  { %1358 = vmatpush1.msra.mxu1 %v199_v27  ;;  %1429 = vmatpush1.msra.mxu0 %v201_v28  ;;  %v712_v27 = vld [vmem:[#allocation7 + $0x1128] sm:$0xff]  ;;  %v714_v28 = vld [vmem:[#allocation7 + $0x1138] sm:$0xff] }
 0x125   :  { %1359 = vmatprep.subr.mxu1 %v168_v29  ;;  %1430 = vmatprep.subr.mxu0 %v170_v30  ;;  %v711_v29 = vld [vmem:[#allocation7 + $0x1120] sm:$0xff]  ;;  %v713_v30 = vld [vmem:[#allocation7 + $0x1130] sm:$0xff] }
 0x126   :  { %1360 = vmatpush1.msra.mxu1 %v167_v31  ;;  %1431 = vmatpush1.msra.mxu0 %v169_v32  ;;  %v680_v31 = vld [vmem:[#allocation7 + $0x1028] sm:$0xff]  ;;  %v682_v32 = vld [vmem:[#allocation7 + $0x1038] sm:$0xff] }
 0x127   :  { %1361 = vmatprep.subr.mxu1 %v1160_v35  ;;  %1432 = vmatprep.subr.mxu0 %v1162_v36  ;;  %v679_v35 = vld [vmem:[#allocation7 + $0x1020] sm:$0xff]  ;;  %v681_v36 = vld [vmem:[#allocation7 + $0x1030] sm:$0xff] }
 0x128   :  { %1362 = vmatpush2.msra.mxu1 %v1159_v37  ;;  %1433 = vmatpush2.msra.mxu0 %v1161_v38  ;;  %v652_v37 = vld [vmem:[#allocation7 + $0xf48] sm:$0xff]  ;;  %v654_v38 = vld [vmem:[#allocation7 + $0xf58] sm:$0xff] }
 0x129   :  { %1363 = vmatprep.subr.mxu1 %v1128_v39  ;;  %1434 = vmatprep.subr.mxu0 %v1130_v40  ;;  %v651_v39 = vld [vmem:[#allocation7 + $0xf40] sm:$0xff]  ;;  %v653_v40 = vld [vmem:[#allocation7 + $0xf50] sm:$0xff] }
 0x12a   :  { %1364 = vmatpush2.msra.mxu1 %v1127_v41  ;;  %1435 = vmatpush2.msra.mxu0 %v1129_v42  ;;  %v620_v41 = vld [vmem:[#allocation7 + $0xe48] sm:$0xff]  ;;  %v622_v42 = vld [vmem:[#allocation7 + $0xe58] sm:$0xff] }
 0x12b   :  { %1365 = vmatprep.subr.mxu1 %v1096_v43  ;;  %1436 = vmatprep.subr.mxu0 %v1098_v44  ;;  %v619_v43 = vld [vmem:[#allocation7 + $0xe40] sm:$0xff]  ;;  %v621_v44 = vld [vmem:[#allocation7 + $0xe50] sm:$0xff] }
 0x12c   :  { %1366 = vmatpush2.msra.mxu1 %v1095_v45  ;;  %1437 = vmatpush2.msra.mxu0 %v1097_v46  ;;  %v588_v45 = vld [vmem:[#allocation7 + $0xd48] sm:$0xff]  ;;  %v590_v46 = vld [vmem:[#allocation7 + $0xd58] sm:$0xff] }
 0x12d   :  { %1367 = vmatprep.subr.mxu1 %v1064_v47  ;;  %1438 = vmatprep.subr.mxu0 %v1066_v48  ;;  %v587_v47 = vld [vmem:[#allocation7 + $0xd40] sm:$0xff]  ;;  %v589_v48 = vld [vmem:[#allocation7 + $0xd50] sm:$0xff] }
 0x12e   :  { %1368 = vmatpush2.msra.mxu1 %v1063_v49  ;;  %1439 = vmatpush2.msra.mxu0 %v1065_v50  ;;  %v556_v49 = vld [vmem:[#allocation7 + $0xc48] sm:$0xff]  ;;  %v558_v50 = vld [vmem:[#allocation7 + $0xc58] sm:$0xff] }
 0x12f   :  { %1369 = vmatprep.subr.mxu1 %v1032_v51  ;;  %1440 = vmatprep.subr.mxu0 %v1034_v52  ;;  %v555_v51 = vld [vmem:[#allocation7 + $0xc40] sm:$0xff]  ;;  %v557_v52 = vld [vmem:[#allocation7 + $0xc50] sm:$0xff] }
 0x130   :  { %1370 = vmatpush2.msra.mxu1 %v1031_v53  ;;  %1441 = vmatpush2.msra.mxu0 %v1033_v54  ;;  %v524_v53 = vld [vmem:[#allocation7 + $0xb48] sm:$0xff]  ;;  %v526_v54 = vld [vmem:[#allocation7 + $0xb58] sm:$0xff] }
 0x131   :  { %1371 = vmatprep.subr.mxu1 %v1000_v55  ;;  %1442 = vmatprep.subr.mxu0 %v1002_v56  ;;  %v523_v55 = vld [vmem:[#allocation7 + $0xb40] sm:$0xff]  ;;  %v525_v56 = vld [vmem:[#allocation7 + $0xb50] sm:$0xff] }
 0x132   :  { %1372 = vmatpush2.msra.mxu1 %v999_v57  ;;  %1443 = vmatpush2.msra.mxu0 %v1001_v58  ;;  %v492_v57 = vld [vmem:[#allocation7 + $0xa48] sm:$0xff]  ;;  %v494_v58 = vld [vmem:[#allocation7 + $0xa58] sm:$0xff] }
 0x133   :  { %1373 = vmatprep.subr.mxu1 %v968_v59  ;;  %1444 = vmatprep.subr.mxu0 %v970_v60  ;;  %v491_v59 = vld [vmem:[#allocation7 + $0xa40] sm:$0xff]  ;;  %v493_v60 = vld [vmem:[#allocation7 + $0xa50] sm:$0xff] }
 0x134   :  { %1374 = vmatpush2.msra.mxu1 %v967_v61  ;;  %1445 = vmatpush2.msra.mxu0 %v969_v62  ;;  %v460_v61 = vld [vmem:[#allocation7 + $0x948] sm:$0xff]  ;;  %v462_v62 = vld [vmem:[#allocation7 + $0x958] sm:$0xff] }
 0x135   :  { %1375 = vmatprep.subr.mxu1 %v936_v63  ;;  %1446 = vmatprep.subr.mxu0 %v938_v0  ;;  %v459_v63 = vld [vmem:[#allocation7 + $0x940] sm:$0xff]  ;;  %v461_v0 = vld [vmem:[#allocation7 + $0x950] sm:$0xff] }
 0x136   :  { %1376 = vmatpush2.msra.mxu1 %v935_v1  ;;  %1447 = vmatpush2.msra.mxu0 %v937_v2  ;;  %v428_v1 = vld [vmem:[#allocation7 + $0x848] sm:$0xff]  ;;  %v430_v2 = vld [vmem:[#allocation7 + $0x858] sm:$0xff] }
 0x137   :  { %1377 = vmatprep.subr.mxu1 %v904_v3  ;;  %1448 = vmatprep.subr.mxu0 %v906_v4  ;;  %v427_v3 = vld [vmem:[#allocation7 + $0x840] sm:$0xff]  ;;  %v429_v4 = vld [vmem:[#allocation7 + $0x850] sm:$0xff] }
 0x138   :  { %1378 = vmatpush2.msra.mxu1 %v903_v5  ;;  %1449 = vmatpush2.msra.mxu0 %v905_v6  ;;  %v396_v5 = vld [vmem:[#allocation7 + $0x748] sm:$0xff]  ;;  %v398_v6 = vld [vmem:[#allocation7 + $0x758] sm:$0xff] }
 0x139   :  { %1379 = vmatprep.subr.mxu1 %v872_v7  ;;  %1450 = vmatprep.subr.mxu0 %v874_v8  ;;  %v395_v7 = vld [vmem:[#allocation7 + $0x740] sm:$0xff]  ;;  %v397_v8 = vld [vmem:[#allocation7 + $0x750] sm:$0xff] }
 0x13a   :  { %1380 = vmatpush2.msra.mxu1 %v871_v9  ;;  %1451 = vmatpush2.msra.mxu0 %v873_v10  ;;  %v364_v9 = vld [vmem:[#allocation7 + $0x648] sm:$0xff]  ;;  %v366_v10 = vld [vmem:[#allocation7 + $0x658] sm:$0xff] }
 0x13b   :  { %1381 = vmatprep.subr.mxu1 %v840_v11  ;;  %1452 = vmatprep.subr.mxu0 %v842_v12  ;;  %v363_v11 = vld [vmem:[#allocation7 + $0x640] sm:$0xff]  ;;  %v365_v12 = vld [vmem:[#allocation7 + $0x650] sm:$0xff] }
 0x13c   :  { %1382 = vmatpush2.msra.mxu1 %v839_v13  ;;  %1453 = vmatpush2.msra.mxu0 %v841_v14  ;;  %v332_v13 = vld [vmem:[#allocation7 + $0x548] sm:$0xff]  ;;  %v334_v14 = vld [vmem:[#allocation7 + $0x558] sm:$0xff] }
 0x13d   :  { %1383 = vmatprep.subr.mxu1 %v808_v15  ;;  %1454 = vmatprep.subr.mxu0 %v810_v16  ;;  %v331_v15 = vld [vmem:[#allocation7 + $0x540] sm:$0xff]  ;;  %v333_v16 = vld [vmem:[#allocation7 + $0x550] sm:$0xff] }
 0x13e   :  { %1384 = vmatpush2.msra.mxu1 %v807_v17  ;;  %1455 = vmatpush2.msra.mxu0 %v809_v18  ;;  %v300_v17 = vld [vmem:[#allocation7 + $0x448] sm:$0xff]  ;;  %v302_v18 = vld [vmem:[#allocation7 + $0x458] sm:$0xff] }
 0x13f   :  { %1385 = vmatprep.subr.mxu1 %v776_v19  ;;  %1456 = vmatprep.subr.mxu0 %v778_v20  ;;  %v299_v19 = vld [vmem:[#allocation7 + $0x440] sm:$0xff]  ;;  %v301_v20 = vld [vmem:[#allocation7 + $0x450] sm:$0xff] }
 0x140   :  { %1386 = vmatpush2.msra.mxu1 %v775_v21  ;;  %1457 = vmatpush2.msra.mxu0 %v777_v22  ;;  %v268_v21 = vld [vmem:[#allocation7 + $0x348] sm:$0xff]  ;;  %v270_v22 = vld [vmem:[#allocation7 + $0x358] sm:$0xff] }
 0x141   :  { %1387 = vmatprep.subr.mxu1 %v744_v23  ;;  %1458 = vmatprep.subr.mxu0 %v746_v24  ;;  %v267_v23 = vld [vmem:[#allocation7 + $0x340] sm:$0xff]  ;;  %v269_v24 = vld [vmem:[#allocation7 + $0x350] sm:$0xff] }
 0x142   :  { %1388 = vmatpush2.msra.mxu1 %v743_v25  ;;  %1459 = vmatpush2.msra.mxu0 %v745_v26  ;;  %v236_v25 = vld [vmem:[#allocation7 + $0x248] sm:$0xff]  ;;  %v238_v26 = vld [vmem:[#allocation7 + $0x258] sm:$0xff] }
 0x143   :  { %1389 = vmatprep.subr.mxu1 %v712_v27  ;;  %1460 = vmatprep.subr.mxu0 %v714_v28  ;;  %v235_v27 = vld [vmem:[#allocation7 + $0x240] sm:$0xff]  ;;  %v237_v28 = vld [vmem:[#allocation7 + $0x250] sm:$0xff] }
 0x144   :  { %1390 = vmatpush2.msra.mxu1 %v711_v29  ;;  %1461 = vmatpush2.msra.mxu0 %v713_v30  ;;  %v204_v29 = vld [vmem:[#allocation7 + $0x148] sm:$0xff]  ;;  %v206_v30 = vld [vmem:[#allocation7 + $0x158] sm:$0xff] }
 0x145   :  { %1391 = vmatprep.subr.mxu1 %v680_v31  ;;  %1462 = vmatprep.subr.mxu0 %v682_v32  ;;  %v203_v31 = vld [vmem:[#allocation7 + $0x140] sm:$0xff]  ;;  %v205_v32 = vld [vmem:[#allocation7 + $0x150] sm:$0xff] }
 0x146   :  { %1392 = vmatpush2.msra.mxu1 %v679_v35  ;;  %1463 = vmatpush2.msra.mxu0 %v681_v36  ;;  %v172_v35 = vld [vmem:[#allocation7 + $0x48] sm:$0xff]  ;;  %v174_v36 = vld [vmem:[#allocation7 + $0x58] sm:$0xff] }
 0x147   :  { %1394 = vmatmul.mubr.f32.vlgmr.msra.gmra.mxu1 %v2564_v34  ;;  %1465 = vmatmul.mubr.f32.vlgmr.msra.gmra.mxu0 %v2564_v34 }
 0x148   :  { %1471 = vmatprep.subr.mxu1 %v652_v37  ;;  %1542 = vmatprep.subr.mxu0 %v654_v38  ;;  %v171_v37 = vld [vmem:[#allocation7 + $0x40] sm:$0xff]  ;;  %v173_v38 = vld [vmem:[#allocation7 + $0x50] sm:$0xff] }
 0x149   :  { %1472 = vmatpush1.msra.mxu1 %v651_v39  ;;  %1535 = vmatprep.mubr.f32.mxu1 %v2562_v33  ;;  %v1164_v39 = vld [vmem:[#allocation7 + $0x1f48] sm:$0xff] }
 0x14a   :  { %1543 = vmatpush1.msra.mxu0 %v653_v40  ;;  %1606 = vmatprep.mubr.f32.mxu0 %v2562_v33  ;;  %v1166_v40 = vld [vmem:[#allocation7 + $0x1f58] sm:$0xff] }
 0x14b   :  { %1473 = vmatprep.subr.mxu1 %v620_v41  ;;  %1544 = vmatprep.subr.mxu0 %v622_v42  ;;  %v1163_v41 = vld [vmem:[#allocation7 + $0x1f40] sm:$0xff]  ;;  %v1165_v42 = vld [vmem:[#allocation7 + $0x1f50] sm:$0xff] }
 0x14c   :  { %1474 = vmatpush1.msra.mxu1 %v619_v43  ;;  %1545 = vmatpush1.msra.mxu0 %v621_v44  ;;  %v1132_v43 = vld [vmem:[#allocation7 + $0x1e48] sm:$0xff]  ;;  %v1134_v44 = vld [vmem:[#allocation7 + $0x1e58] sm:$0xff] }
 0x14d   :  { %1475 = vmatprep.subr.mxu1 %v588_v45  ;;  %1546 = vmatprep.subr.mxu0 %v590_v46  ;;  %v1131_v45 = vld [vmem:[#allocation7 + $0x1e40] sm:$0xff]  ;;  %v1133_v46 = vld [vmem:[#allocation7 + $0x1e50] sm:$0xff] }
 0x14e   :  { %1476 = vmatpush1.msra.mxu1 %v587_v47  ;;  %1547 = vmatpush1.msra.mxu0 %v589_v48  ;;  %v1100_v47 = vld [vmem:[#allocation7 + $0x1d48] sm:$0xff]  ;;  %v1102_v48 = vld [vmem:[#allocation7 + $0x1d58] sm:$0xff] }
 0x14f   :  { %1477 = vmatprep.subr.mxu1 %v556_v49  ;;  %1548 = vmatprep.subr.mxu0 %v558_v50  ;;  %v1099_v49 = vld [vmem:[#allocation7 + $0x1d40] sm:$0xff]  ;;  %v1101_v50 = vld [vmem:[#allocation7 + $0x1d50] sm:$0xff] }
 0x150   :  { %1478 = vmatpush1.msra.mxu1 %v555_v51  ;;  %1549 = vmatpush1.msra.mxu0 %v557_v52  ;;  %v1068_v51 = vld [vmem:[#allocation7 + $0x1c48] sm:$0xff]  ;;  %v1070_v52 = vld [vmem:[#allocation7 + $0x1c58] sm:$0xff] }
 0x151   :  { %1479 = vmatprep.subr.mxu1 %v524_v53  ;;  %1550 = vmatprep.subr.mxu0 %v526_v54  ;;  %v1067_v53 = vld [vmem:[#allocation7 + $0x1c40] sm:$0xff]  ;;  %v1069_v54 = vld [vmem:[#allocation7 + $0x1c50] sm:$0xff] }
 0x152   :  { %1480 = vmatpush1.msra.mxu1 %v523_v55  ;;  %1551 = vmatpush1.msra.mxu0 %v525_v56  ;;  %v1036_v55 = vld [vmem:[#allocation7 + $0x1b48] sm:$0xff]  ;;  %v1038_v56 = vld [vmem:[#allocation7 + $0x1b58] sm:$0xff] }
 0x153   :  { %1481 = vmatprep.subr.mxu1 %v492_v57  ;;  %1552 = vmatprep.subr.mxu0 %v494_v58  ;;  %v1035_v57 = vld [vmem:[#allocation7 + $0x1b40] sm:$0xff]  ;;  %v1037_v58 = vld [vmem:[#allocation7 + $0x1b50] sm:$0xff] }
 0x154   :  { %1482 = vmatpush1.msra.mxu1 %v491_v59  ;;  %1553 = vmatpush1.msra.mxu0 %v493_v60  ;;  %v1004_v59 = vld [vmem:[#allocation7 + $0x1a48] sm:$0xff]  ;;  %v1006_v60 = vld [vmem:[#allocation7 + $0x1a58] sm:$0xff] }
 0x155   :  { %1483 = vmatprep.subr.mxu1 %v460_v61  ;;  %1554 = vmatprep.subr.mxu0 %v462_v62  ;;  %v1003_v61 = vld [vmem:[#allocation7 + $0x1a40] sm:$0xff]  ;;  %v1005_v62 = vld [vmem:[#allocation7 + $0x1a50] sm:$0xff] }
 0x156   :  { %1484 = vmatpush1.msra.mxu1 %v459_v63  ;;  %1555 = vmatpush1.msra.mxu0 %v461_v0  ;;  %v972_v63 = vld [vmem:[#allocation7 + $0x1948] sm:$0xff]  ;;  %v974_v0 = vld [vmem:[#allocation7 + $0x1958] sm:$0xff] }
 0x157   :  { %1485 = vmatprep.subr.mxu1 %v428_v1  ;;  %1556 = vmatprep.subr.mxu0 %v430_v2  ;;  %v971_v1 = vld [vmem:[#allocation7 + $0x1940] sm:$0xff]  ;;  %v973_v2 = vld [vmem:[#allocation7 + $0x1950] sm:$0xff] }
 0x158   :  { %1486 = vmatpush1.msra.mxu1 %v427_v3  ;;  %1557 = vmatpush1.msra.mxu0 %v429_v4  ;;  %v940_v3 = vld [vmem:[#allocation7 + $0x1848] sm:$0xff]  ;;  %v942_v4 = vld [vmem:[#allocation7 + $0x1858] sm:$0xff] }
 0x159   :  { %1487 = vmatprep.subr.mxu1 %v396_v5  ;;  %1558 = vmatprep.subr.mxu0 %v398_v6  ;;  %v939_v5 = vld [vmem:[#allocation7 + $0x1840] sm:$0xff]  ;;  %v941_v6 = vld [vmem:[#allocation7 + $0x1850] sm:$0xff] }
 0x15a   :  { %1488 = vmatpush1.msra.mxu1 %v395_v7  ;;  %1559 = vmatpush1.msra.mxu0 %v397_v8  ;;  %v908_v7 = vld [vmem:[#allocation7 + $0x1748] sm:$0xff]  ;;  %v910_v8 = vld [vmem:[#allocation7 + $0x1758] sm:$0xff] }
 0x15b   :  { %1489 = vmatprep.subr.mxu1 %v364_v9  ;;  %1560 = vmatprep.subr.mxu0 %v366_v10  ;;  %v907_v9 = vld [vmem:[#allocation7 + $0x1740] sm:$0xff]  ;;  %v909_v10 = vld [vmem:[#allocation7 + $0x1750] sm:$0xff] }
 0x15c   :  { %1490 = vmatpush1.msra.mxu1 %v363_v11  ;;  %1561 = vmatpush1.msra.mxu0 %v365_v12  ;;  %v876_v11 = vld [vmem:[#allocation7 + $0x1648] sm:$0xff]  ;;  %v878_v12 = vld [vmem:[#allocation7 + $0x1658] sm:$0xff] }
 0x15d   :  { %1491 = vmatprep.subr.mxu1 %v332_v13  ;;  %1562 = vmatprep.subr.mxu0 %v334_v14  ;;  %v875_v13 = vld [vmem:[#allocation7 + $0x1640] sm:$0xff]  ;;  %v877_v14 = vld [vmem:[#allocation7 + $0x1650] sm:$0xff] }
 0x15e   :  { %1492 = vmatpush1.msra.mxu1 %v331_v15  ;;  %1563 = vmatpush1.msra.mxu0 %v333_v16  ;;  %v844_v15 = vld [vmem:[#allocation7 + $0x1548] sm:$0xff]  ;;  %v846_v16 = vld [vmem:[#allocation7 + $0x1558] sm:$0xff] }
 0x15f   :  { %1493 = vmatprep.subr.mxu1 %v300_v17  ;;  %1564 = vmatprep.subr.mxu0 %v302_v18  ;;  %v843_v17 = vld [vmem:[#allocation7 + $0x1540] sm:$0xff]  ;;  %v845_v18 = vld [vmem:[#allocation7 + $0x1550] sm:$0xff] }
 0x160   :  { %1494 = vmatpush1.msra.mxu1 %v299_v19  ;;  %1565 = vmatpush1.msra.mxu0 %v301_v20  ;;  %v812_v19 = vld [vmem:[#allocation7 + $0x1448] sm:$0xff]  ;;  %v814_v20 = vld [vmem:[#allocation7 + $0x1458] sm:$0xff] }
 0x161   :  { %1495 = vmatprep.subr.mxu1 %v268_v21  ;;  %1566 = vmatprep.subr.mxu0 %v270_v22  ;;  %v811_v21 = vld [vmem:[#allocation7 + $0x1440] sm:$0xff]  ;;  %v813_v22 = vld [vmem:[#allocation7 + $0x1450] sm:$0xff] }
 0x162   :  { %1496 = vmatpush1.msra.mxu1 %v267_v23  ;;  %1567 = vmatpush1.msra.mxu0 %v269_v24  ;;  %v780_v23 = vld [vmem:[#allocation7 + $0x1348] sm:$0xff]  ;;  %v782_v24 = vld [vmem:[#allocation7 + $0x1358] sm:$0xff] }
 0x163   :  { %1497 = vmatprep.subr.mxu1 %v236_v25  ;;  %1568 = vmatprep.subr.mxu0 %v238_v26  ;;  %v779_v25 = vld [vmem:[#allocation7 + $0x1340] sm:$0xff]  ;;  %v781_v26 = vld [vmem:[#allocation7 + $0x1350] sm:$0xff] }
 0x164   :  { %1498 = vmatpush1.msra.mxu1 %v235_v27  ;;  %1569 = vmatpush1.msra.mxu0 %v237_v28  ;;  %v748_v27 = vld [vmem:[#allocation7 + $0x1248] sm:$0xff]  ;;  %v750_v28 = vld [vmem:[#allocation7 + $0x1258] sm:$0xff] }
 0x165   :  { %1499 = vmatprep.subr.mxu1 %v204_v29  ;;  %1570 = vmatprep.subr.mxu0 %v206_v30  ;;  %v747_v29 = vld [vmem:[#allocation7 + $0x1240] sm:$0xff]  ;;  %v749_v30 = vld [vmem:[#allocation7 + $0x1250] sm:$0xff] }
 0x166   :  { %1500 = vmatpush1.msra.mxu1 %v203_v31  ;;  %1571 = vmatpush1.msra.mxu0 %v205_v32  ;;  %v716_v31 = vld [vmem:[#allocation7 + $0x1148] sm:$0xff]  ;;  %v718_v32 = vld [vmem:[#allocation7 + $0x1158] sm:$0xff] }
 0x167   :  { %1501 = vmatprep.subr.mxu1 %v172_v35  ;;  %1572 = vmatprep.subr.mxu0 %v174_v36  ;;  %v715_v35 = vld [vmem:[#allocation7 + $0x1140] sm:$0xff]  ;;  %v717_v36 = vld [vmem:[#allocation7 + $0x1150] sm:$0xff] }
 0x168   :  { %1502 = vmatpush1.msra.mxu1 %v171_v37  ;;  %1573 = vmatpush1.msra.mxu0 %v173_v38  ;;  %v684_v37 = vld [vmem:[#allocation7 + $0x1048] sm:$0xff]  ;;  %v686_v38 = vld [vmem:[#allocation7 + $0x1058] sm:$0xff] }
 0x169   :  { %1503 = vmatprep.subr.mxu1 %v1164_v39  ;;  %1574 = vmatprep.subr.mxu0 %v1166_v40  ;;  %v683_v39 = vld [vmem:[#allocation7 + $0x1040] sm:$0xff]  ;;  %v685_v40 = vld [vmem:[#allocation7 + $0x1050] sm:$0xff] }
 0x16a   :  { %1504 = vmatpush2.msra.mxu1 %v1163_v41  ;;  %1575 = vmatpush2.msra.mxu0 %v1165_v42  ;;  %v656_v41 = vld [vmem:[#allocation7 + $0xf68] sm:$0xff]  ;;  %v658_v42 = vld [vmem:[#allocation7 + $0xf78] sm:$0xff] }
 0x16b   :  { %1505 = vmatprep.subr.mxu1 %v1132_v43  ;;  %1576 = vmatprep.subr.mxu0 %v1134_v44  ;;  %v655_v43 = vld [vmem:[#allocation7 + $0xf60] sm:$0xff]  ;;  %v657_v44 = vld [vmem:[#allocation7 + $0xf70] sm:$0xff] }
 0x16c   :  { %1506 = vmatpush2.msra.mxu1 %v1131_v45  ;;  %1577 = vmatpush2.msra.mxu0 %v1133_v46  ;;  %v624_v45 = vld [vmem:[#allocation7 + $0xe68] sm:$0xff]  ;;  %v626_v46 = vld [vmem:[#allocation7 + $0xe78] sm:$0xff] }
 0x16d   :  { %1507 = vmatprep.subr.mxu1 %v1100_v47  ;;  %1578 = vmatprep.subr.mxu0 %v1102_v48  ;;  %v623_v47 = vld [vmem:[#allocation7 + $0xe60] sm:$0xff]  ;;  %v625_v48 = vld [vmem:[#allocation7 + $0xe70] sm:$0xff] }
 0x16e   :  { %1508 = vmatpush2.msra.mxu1 %v1099_v49  ;;  %1579 = vmatpush2.msra.mxu0 %v1101_v50  ;;  %v592_v49 = vld [vmem:[#allocation7 + $0xd68] sm:$0xff]  ;;  %v594_v50 = vld [vmem:[#allocation7 + $0xd78] sm:$0xff] }
 0x16f   :  { %1509 = vmatprep.subr.mxu1 %v1068_v51  ;;  %1580 = vmatprep.subr.mxu0 %v1070_v52  ;;  %v591_v51 = vld [vmem:[#allocation7 + $0xd60] sm:$0xff]  ;;  %v593_v52 = vld [vmem:[#allocation7 + $0xd70] sm:$0xff] }
 0x170   :  { %1510 = vmatpush2.msra.mxu1 %v1067_v53  ;;  %1581 = vmatpush2.msra.mxu0 %v1069_v54  ;;  %v560_v53 = vld [vmem:[#allocation7 + $0xc68] sm:$0xff]  ;;  %v562_v54 = vld [vmem:[#allocation7 + $0xc78] sm:$0xff] }
 0x171   :  { %1511 = vmatprep.subr.mxu1 %v1036_v55  ;;  %1582 = vmatprep.subr.mxu0 %v1038_v56  ;;  %v559_v55 = vld [vmem:[#allocation7 + $0xc60] sm:$0xff]  ;;  %v561_v56 = vld [vmem:[#allocation7 + $0xc70] sm:$0xff] }
 0x172   :  { %1512 = vmatpush2.msra.mxu1 %v1035_v57  ;;  %1583 = vmatpush2.msra.mxu0 %v1037_v58  ;;  %v528_v57 = vld [vmem:[#allocation7 + $0xb68] sm:$0xff]  ;;  %v530_v58 = vld [vmem:[#allocation7 + $0xb78] sm:$0xff] }
 0x173   :  { %1513 = vmatprep.subr.mxu1 %v1004_v59  ;;  %1584 = vmatprep.subr.mxu0 %v1006_v60  ;;  %v527_v59 = vld [vmem:[#allocation7 + $0xb60] sm:$0xff]  ;;  %v529_v60 = vld [vmem:[#allocation7 + $0xb70] sm:$0xff] }
 0x174   :  { %1514 = vmatpush2.msra.mxu1 %v1003_v61  ;;  %1585 = vmatpush2.msra.mxu0 %v1005_v62  ;;  %v496_v61 = vld [vmem:[#allocation7 + $0xa68] sm:$0xff]  ;;  %v498_v62 = vld [vmem:[#allocation7 + $0xa78] sm:$0xff] }
 0x175   :  { %1515 = vmatprep.subr.mxu1 %v972_v63  ;;  %1586 = vmatprep.subr.mxu0 %v974_v0  ;;  %v495_v63 = vld [vmem:[#allocation7 + $0xa60] sm:$0xff]  ;;  %v497_v0 = vld [vmem:[#allocation7 + $0xa70] sm:$0xff] }
 0x176   :  { %1516 = vmatpush2.msra.mxu1 %v971_v1  ;;  %1587 = vmatpush2.msra.mxu0 %v973_v2  ;;  %v464_v1 = vld [vmem:[#allocation7 + $0x968] sm:$0xff]  ;;  %v466_v2 = vld [vmem:[#allocation7 + $0x978] sm:$0xff] }
 0x177   :  { %1517 = vmatprep.subr.mxu1 %v940_v3  ;;  %1588 = vmatprep.subr.mxu0 %v942_v4  ;;  %v463_v3 = vld [vmem:[#allocation7 + $0x960] sm:$0xff]  ;;  %v465_v4 = vld [vmem:[#allocation7 + $0x970] sm:$0xff] }
 0x178   :  { %1518 = vmatpush2.msra.mxu1 %v939_v5  ;;  %1589 = vmatpush2.msra.mxu0 %v941_v6  ;;  %v432_v5 = vld [vmem:[#allocation7 + $0x868] sm:$0xff]  ;;  %v434_v6 = vld [vmem:[#allocation7 + $0x878] sm:$0xff] }
 0x179   :  { %1519 = vmatprep.subr.mxu1 %v908_v7  ;;  %1590 = vmatprep.subr.mxu0 %v910_v8  ;;  %v431_v7 = vld [vmem:[#allocation7 + $0x860] sm:$0xff]  ;;  %v433_v8 = vld [vmem:[#allocation7 + $0x870] sm:$0xff] }
 0x17a   :  { %1520 = vmatpush2.msra.mxu1 %v907_v9  ;;  %1591 = vmatpush2.msra.mxu0 %v909_v10  ;;  %v400_v9 = vld [vmem:[#allocation7 + $0x768] sm:$0xff]  ;;  %v402_v10 = vld [vmem:[#allocation7 + $0x778] sm:$0xff] }
 0x17b   :  { %1521 = vmatprep.subr.mxu1 %v876_v11  ;;  %1592 = vmatprep.subr.mxu0 %v878_v12  ;;  %v399_v11 = vld [vmem:[#allocation7 + $0x760] sm:$0xff]  ;;  %v401_v12 = vld [vmem:[#allocation7 + $0x770] sm:$0xff] }
 0x17c   :  { %1522 = vmatpush2.msra.mxu1 %v875_v13  ;;  %1593 = vmatpush2.msra.mxu0 %v877_v14  ;;  %v368_v13 = vld [vmem:[#allocation7 + $0x668] sm:$0xff]  ;;  %v370_v14 = vld [vmem:[#allocation7 + $0x678] sm:$0xff] }
 0x17d   :  { %1523 = vmatprep.subr.mxu1 %v844_v15  ;;  %1594 = vmatprep.subr.mxu0 %v846_v16  ;;  %v367_v15 = vld [vmem:[#allocation7 + $0x660] sm:$0xff]  ;;  %v369_v16 = vld [vmem:[#allocation7 + $0x670] sm:$0xff] }
 0x17e   :  { %1524 = vmatpush2.msra.mxu1 %v843_v17  ;;  %1595 = vmatpush2.msra.mxu0 %v845_v18  ;;  %v336_v17 = vld [vmem:[#allocation7 + $0x568] sm:$0xff]  ;;  %v338_v18 = vld [vmem:[#allocation7 + $0x578] sm:$0xff] }
 0x17f   :  { %1525 = vmatprep.subr.mxu1 %v812_v19  ;;  %1596 = vmatprep.subr.mxu0 %v814_v20  ;;  %v335_v19 = vld [vmem:[#allocation7 + $0x560] sm:$0xff]  ;;  %v337_v20 = vld [vmem:[#allocation7 + $0x570] sm:$0xff] }
 0x180   :  { %1526 = vmatpush2.msra.mxu1 %v811_v21  ;;  %1597 = vmatpush2.msra.mxu0 %v813_v22  ;;  %v304_v21 = vld [vmem:[#allocation7 + $0x468] sm:$0xff]  ;;  %v306_v22 = vld [vmem:[#allocation7 + $0x478] sm:$0xff] }
 0x181   :  { %1527 = vmatprep.subr.mxu1 %v780_v23  ;;  %1598 = vmatprep.subr.mxu0 %v782_v24  ;;  %v303_v23 = vld [vmem:[#allocation7 + $0x460] sm:$0xff]  ;;  %v305_v24 = vld [vmem:[#allocation7 + $0x470] sm:$0xff] }
 0x182   :  { %1528 = vmatpush2.msra.mxu1 %v779_v25  ;;  %1599 = vmatpush2.msra.mxu0 %v781_v26  ;;  %v272_v25 = vld [vmem:[#allocation7 + $0x368] sm:$0xff]  ;;  %v274_v26 = vld [vmem:[#allocation7 + $0x378] sm:$0xff] }
 0x183   :  { %1529 = vmatprep.subr.mxu1 %v748_v27  ;;  %1600 = vmatprep.subr.mxu0 %v750_v28  ;;  %v271_v27 = vld [vmem:[#allocation7 + $0x360] sm:$0xff]  ;;  %v273_v28 = vld [vmem:[#allocation7 + $0x370] sm:$0xff] }
 0x184   :  { %1530 = vmatpush2.msra.mxu1 %v747_v29  ;;  %1601 = vmatpush2.msra.mxu0 %v749_v30  ;;  %v240_v29 = vld [vmem:[#allocation7 + $0x268] sm:$0xff]  ;;  %v242_v30 = vld [vmem:[#allocation7 + $0x278] sm:$0xff] }
 0x185   :  { %1531 = vmatprep.subr.mxu1 %v716_v31  ;;  %1602 = vmatprep.subr.mxu0 %v718_v32  ;;  %v239_v31 = vld [vmem:[#allocation7 + $0x260] sm:$0xff]  ;;  %v241_v32 = vld [vmem:[#allocation7 + $0x270] sm:$0xff] }
 0x186   :  { %1532 = vmatpush2.msra.mxu1 %v715_v35  ;;  %1603 = vmatpush2.msra.mxu0 %v717_v36  ;;  %v208_v35 = vld [vmem:[#allocation7 + $0x168] sm:$0xff]  ;;  %v210_v36 = vld [vmem:[#allocation7 + $0x178] sm:$0xff] }
 0x187   :  { %1533 = vmatprep.subr.mxu1 %v684_v37  ;;  %1604 = vmatprep.subr.mxu0 %v686_v38  ;;  %v207_v37 = vld [vmem:[#allocation7 + $0x160] sm:$0xff]  ;;  %v209_v38 = vld [vmem:[#allocation7 + $0x170] sm:$0xff] }
 0x188   :  { %1534 = vmatpush2.msra.mxu1 %v683_v39  ;;  %1605 = vmatpush2.msra.mxu0 %v685_v40  ;;  %v176_v39 = vld [vmem:[#allocation7 + $0x68] sm:$0xff]  ;;  %v178_v40 = vld [vmem:[#allocation7 + $0x78] sm:$0xff] }
 0x189   :  { %1536 = vmatmul.mubr.f32.vlgmr.msra.gmra.mxu1 %v2564_v34  ;;  %1607 = vmatmul.mubr.f32.vlgmr.msra.gmra.mxu0 %v2564_v34 }
 0x18a   :  { %1613 = vmatprep.subr.mxu1 %v656_v41  ;;  %1684 = vmatprep.subr.mxu0 %v658_v42  ;;  %v175_v41 = vld [vmem:[#allocation7 + $0x60] sm:$0xff]  ;;  %v177_v42 = vld [vmem:[#allocation7 + $0x70] sm:$0xff] }
 0x18b   :  { %1614 = vmatpush1.msra.mxu1 %v655_v43  ;;  %1677 = vmatprep.mubr.f32.mxu1 %v2562_v33  ;;  %v1168_v43 = vld [vmem:[#allocation7 + $0x1f68] sm:$0xff] }
 0x18c   :  { %1685 = vmatpush1.msra.mxu0 %v657_v44  ;;  %1748 = vmatprep.mubr.f32.mxu0 %v2562_v33  ;;  %v1170_v44 = vld [vmem:[#allocation7 + $0x1f78] sm:$0xff] }
 0x18d   :  { %1615 = vmatprep.subr.mxu1 %v624_v45  ;;  %1686 = vmatprep.subr.mxu0 %v626_v46  ;;  %v1167_v45 = vld [vmem:[#allocation7 + $0x1f60] sm:$0xff]  ;;  %v1169_v46 = vld [vmem:[#allocation7 + $0x1f70] sm:$0xff] }
 0x18e   :  { %1616 = vmatpush1.msra.mxu1 %v623_v47  ;;  %1687 = vmatpush1.msra.mxu0 %v625_v48  ;;  %v1136_v47 = vld [vmem:[#allocation7 + $0x1e68] sm:$0xff]  ;;  %v1138_v48 = vld [vmem:[#allocation7 + $0x1e78] sm:$0xff] }
 0x18f   :  { %1617 = vmatprep.subr.mxu1 %v592_v49  ;;  %1688 = vmatprep.subr.mxu0 %v594_v50  ;;  %v1135_v49 = vld [vmem:[#allocation7 + $0x1e60] sm:$0xff]  ;;  %v1137_v50 = vld [vmem:[#allocation7 + $0x1e70] sm:$0xff] }
 0x190   :  { %1618 = vmatpush1.msra.mxu1 %v591_v51  ;;  %1689 = vmatpush1.msra.mxu0 %v593_v52  ;;  %v1104_v51 = vld [vmem:[#allocation7 + $0x1d68] sm:$0xff]  ;;  %v1106_v52 = vld [vmem:[#allocation7 + $0x1d78] sm:$0xff] }
 0x191   :  { %1619 = vmatprep.subr.mxu1 %v560_v53  ;;  %1690 = vmatprep.subr.mxu0 %v562_v54  ;;  %v1103_v53 = vld [vmem:[#allocation7 + $0x1d60] sm:$0xff]  ;;  %v1105_v54 = vld [vmem:[#allocation7 + $0x1d70] sm:$0xff] }
 0x192   :  { %1620 = vmatpush1.msra.mxu1 %v559_v55  ;;  %1691 = vmatpush1.msra.mxu0 %v561_v56  ;;  %v1072_v55 = vld [vmem:[#allocation7 + $0x1c68] sm:$0xff]  ;;  %v1074_v56 = vld [vmem:[#allocation7 + $0x1c78] sm:$0xff] }
 0x193   :  { %1621 = vmatprep.subr.mxu1 %v528_v57  ;;  %1692 = vmatprep.subr.mxu0 %v530_v58  ;;  %v1071_v57 = vld [vmem:[#allocation7 + $0x1c60] sm:$0xff]  ;;  %v1073_v58 = vld [vmem:[#allocation7 + $0x1c70] sm:$0xff] }
 0x194   :  { %1622 = vmatpush1.msra.mxu1 %v527_v59  ;;  %1693 = vmatpush1.msra.mxu0 %v529_v60  ;;  %v1040_v59 = vld [vmem:[#allocation7 + $0x1b68] sm:$0xff]  ;;  %v1042_v60 = vld [vmem:[#allocation7 + $0x1b78] sm:$0xff] }
 0x195   :  { %1623 = vmatprep.subr.mxu1 %v496_v61  ;;  %1694 = vmatprep.subr.mxu0 %v498_v62  ;;  %v1039_v61 = vld [vmem:[#allocation7 + $0x1b60] sm:$0xff]  ;;  %v1041_v62 = vld [vmem:[#allocation7 + $0x1b70] sm:$0xff] }
 0x196   :  { %1624 = vmatpush1.msra.mxu1 %v495_v63  ;;  %1695 = vmatpush1.msra.mxu0 %v497_v0  ;;  %v1008_v63 = vld [vmem:[#allocation7 + $0x1a68] sm:$0xff]  ;;  %v1010_v0 = vld [vmem:[#allocation7 + $0x1a78] sm:$0xff] }
 0x197   :  { %1625 = vmatprep.subr.mxu1 %v464_v1  ;;  %1696 = vmatprep.subr.mxu0 %v466_v2  ;;  %v1007_v1 = vld [vmem:[#allocation7 + $0x1a60] sm:$0xff]  ;;  %v1009_v2 = vld [vmem:[#allocation7 + $0x1a70] sm:$0xff] }
 0x198   :  { %1626 = vmatpush1.msra.mxu1 %v463_v3  ;;  %1697 = vmatpush1.msra.mxu0 %v465_v4  ;;  %v976_v3 = vld [vmem:[#allocation7 + $0x1968] sm:$0xff]  ;;  %v978_v4 = vld [vmem:[#allocation7 + $0x1978] sm:$0xff] }
 0x199   :  { %1627 = vmatprep.subr.mxu1 %v432_v5  ;;  %1698 = vmatprep.subr.mxu0 %v434_v6  ;;  %v975_v5 = vld [vmem:[#allocation7 + $0x1960] sm:$0xff]  ;;  %v977_v6 = vld [vmem:[#allocation7 + $0x1970] sm:$0xff] }
 0x19a   :  { %1628 = vmatpush1.msra.mxu1 %v431_v7  ;;  %1699 = vmatpush1.msra.mxu0 %v433_v8  ;;  %v944_v7 = vld [vmem:[#allocation7 + $0x1868] sm:$0xff]  ;;  %v946_v8 = vld [vmem:[#allocation7 + $0x1878] sm:$0xff] }
 0x19b   :  { %1629 = vmatprep.subr.mxu1 %v400_v9  ;;  %1700 = vmatprep.subr.mxu0 %v402_v10  ;;  %v943_v9 = vld [vmem:[#allocation7 + $0x1860] sm:$0xff]  ;;  %v945_v10 = vld [vmem:[#allocation7 + $0x1870] sm:$0xff] }
 0x19c   :  { %1630 = vmatpush1.msra.mxu1 %v399_v11  ;;  %1701 = vmatpush1.msra.mxu0 %v401_v12  ;;  %v912_v11 = vld [vmem:[#allocation7 + $0x1768] sm:$0xff]  ;;  %v914_v12 = vld [vmem:[#allocation7 + $0x1778] sm:$0xff] }
 0x19d   :  { %1631 = vmatprep.subr.mxu1 %v368_v13  ;;  %1702 = vmatprep.subr.mxu0 %v370_v14  ;;  %v911_v13 = vld [vmem:[#allocation7 + $0x1760] sm:$0xff]  ;;  %v913_v14 = vld [vmem:[#allocation7 + $0x1770] sm:$0xff] }
 0x19e   :  { %1632 = vmatpush1.msra.mxu1 %v367_v15  ;;  %1703 = vmatpush1.msra.mxu0 %v369_v16  ;;  %v880_v15 = vld [vmem:[#allocation7 + $0x1668] sm:$0xff]  ;;  %v882_v16 = vld [vmem:[#allocation7 + $0x1678] sm:$0xff] }
 0x19f   :  { %1633 = vmatprep.subr.mxu1 %v336_v17  ;;  %1704 = vmatprep.subr.mxu0 %v338_v18  ;;  %v879_v17 = vld [vmem:[#allocation7 + $0x1660] sm:$0xff]  ;;  %v881_v18 = vld [vmem:[#allocation7 + $0x1670] sm:$0xff] }
 0x1a0   :  { %1634 = vmatpush1.msra.mxu1 %v335_v19  ;;  %1705 = vmatpush1.msra.mxu0 %v337_v20  ;;  %v848_v19 = vld [vmem:[#allocation7 + $0x1568] sm:$0xff]  ;;  %v850_v20 = vld [vmem:[#allocation7 + $0x1578] sm:$0xff] }
 0x1a1   :  { %1635 = vmatprep.subr.mxu1 %v304_v21  ;;  %1706 = vmatprep.subr.mxu0 %v306_v22  ;;  %v847_v21 = vld [vmem:[#allocation7 + $0x1560] sm:$0xff]  ;;  %v849_v22 = vld [vmem:[#allocation7 + $0x1570] sm:$0xff] }
 0x1a2   :  { %1636 = vmatpush1.msra.mxu1 %v303_v23  ;;  %1707 = vmatpush1.msra.mxu0 %v305_v24  ;;  %v816_v23 = vld [vmem:[#allocation7 + $0x1468] sm:$0xff]  ;;  %v818_v24 = vld [vmem:[#allocation7 + $0x1478] sm:$0xff] }
 0x1a3   :  { %1637 = vmatprep.subr.mxu1 %v272_v25  ;;  %1708 = vmatprep.subr.mxu0 %v274_v26  ;;  %v815_v25 = vld [vmem:[#allocation7 + $0x1460] sm:$0xff]  ;;  %v817_v26 = vld [vmem:[#allocation7 + $0x1470] sm:$0xff] }
 0x1a4   :  { %1638 = vmatpush1.msra.mxu1 %v271_v27  ;;  %1709 = vmatpush1.msra.mxu0 %v273_v28  ;;  %v784_v27 = vld [vmem:[#allocation7 + $0x1368] sm:$0xff]  ;;  %v786_v28 = vld [vmem:[#allocation7 + $0x1378] sm:$0xff] }
 0x1a5   :  { %1639 = vmatprep.subr.mxu1 %v240_v29  ;;  %1710 = vmatprep.subr.mxu0 %v242_v30  ;;  %v783_v29 = vld [vmem:[#allocation7 + $0x1360] sm:$0xff]  ;;  %v785_v30 = vld [vmem:[#allocation7 + $0x1370] sm:$0xff] }
 0x1a6   :  { %1640 = vmatpush1.msra.mxu1 %v239_v31  ;;  %1711 = vmatpush1.msra.mxu0 %v241_v32  ;;  %v752_v31 = vld [vmem:[#allocation7 + $0x1268] sm:$0xff]  ;;  %v754_v32 = vld [vmem:[#allocation7 + $0x1278] sm:$0xff] }
 0x1a7   :  { %1641 = vmatprep.subr.mxu1 %v208_v35  ;;  %1712 = vmatprep.subr.mxu0 %v210_v36  ;;  %v751_v35 = vld [vmem:[#allocation7 + $0x1260] sm:$0xff]  ;;  %v753_v36 = vld [vmem:[#allocation7 + $0x1270] sm:$0xff] }
 0x1a8   :  { %1642 = vmatpush1.msra.mxu1 %v207_v37  ;;  %1713 = vmatpush1.msra.mxu0 %v209_v38  ;;  %v720_v37 = vld [vmem:[#allocation7 + $0x1168] sm:$0xff]  ;;  %v722_v38 = vld [vmem:[#allocation7 + $0x1178] sm:$0xff] }
 0x1a9   :  { %1643 = vmatprep.subr.mxu1 %v176_v39  ;;  %1714 = vmatprep.subr.mxu0 %v178_v40  ;;  %v719_v39 = vld [vmem:[#allocation7 + $0x1160] sm:$0xff]  ;;  %v721_v40 = vld [vmem:[#allocation7 + $0x1170] sm:$0xff] }
 0x1aa   :  { %1644 = vmatpush1.msra.mxu1 %v175_v41  ;;  %1715 = vmatpush1.msra.mxu0 %v177_v42  ;;  %v688_v41 = vld [vmem:[#allocation7 + $0x1068] sm:$0xff]  ;;  %v690_v42 = vld [vmem:[#allocation7 + $0x1078] sm:$0xff] }
 0x1ab   :  { %1645 = vmatprep.subr.mxu1 %v1168_v43  ;;  %1716 = vmatprep.subr.mxu0 %v1170_v44 }
 0x1ac   :  { %1646 = vmatpush2.msra.mxu1 %v1167_v45  ;;  %1717 = vmatpush2.msra.mxu0 %v1169_v46  ;;  %v687_v45 = vld [vmem:[#allocation7 + $0x1060] sm:$0xff]  ;;  %v689_v46 = vld [vmem:[#allocation7 + $0x1070] sm:$0xff] }
 0x1ad   :  { %1647 = vmatprep.subr.mxu1 %v1136_v47  ;;  %1718 = vmatprep.subr.mxu0 %v1138_v48 }
 0x1ae   :  { %1648 = vmatpush2.msra.mxu1 %v1135_v49  ;;  %1719 = vmatpush2.msra.mxu0 %v1137_v50  ;;  %v660_v49 = vld [vmem:[#allocation7 + $0xf88] sm:$0xff]  ;;  %v662_v50 = vld [vmem:[#allocation7 + $0xf98] sm:$0xff] }
 0x1af   :  { %1649 = vmatprep.subr.mxu1 %v1104_v51  ;;  %1720 = vmatprep.subr.mxu0 %v1106_v52 }
 0x1b0   :  { %1650 = vmatpush2.msra.mxu1 %v1103_v53  ;;  %1721 = vmatpush2.msra.mxu0 %v1105_v54  ;;  %v659_v53 = vld [vmem:[#allocation7 + $0xf80] sm:$0xff]  ;;  %v661_v54 = vld [vmem:[#allocation7 + $0xf90] sm:$0xff] }
 0x1b1   :  { %1651 = vmatprep.subr.mxu1 %v1072_v55  ;;  %1722 = vmatprep.subr.mxu0 %v1074_v56  ;;  %v628_v55 = vld [vmem:[#allocation7 + $0xe88] sm:$0xff]  ;;  %v630_v56 = vld [vmem:[#allocation7 + $0xe98] sm:$0xff] }
 0x1b2   :  { %1652 = vmatpush2.msra.mxu1 %v1071_v57  ;;  %1723 = vmatpush2.msra.mxu0 %v1073_v58  ;;  %v627_v57 = vld [vmem:[#allocation7 + $0xe80] sm:$0xff]  ;;  %v629_v58 = vld [vmem:[#allocation7 + $0xe90] sm:$0xff] }
 0x1b3   :  { %1653 = vmatprep.subr.mxu1 %v1040_v59  ;;  %1724 = vmatprep.subr.mxu0 %v1042_v60  ;;  %v596_v59 = vld [vmem:[#allocation7 + $0xd88] sm:$0xff]  ;;  %v598_v60 = vld [vmem:[#allocation7 + $0xd98] sm:$0xff] }
 0x1b4   :  { %1654 = vmatpush2.msra.mxu1 %v1039_v61  ;;  %1725 = vmatpush2.msra.mxu0 %v1041_v62  ;;  %v595_v61 = vld [vmem:[#allocation7 + $0xd80] sm:$0xff]  ;;  %v597_v62 = vld [vmem:[#allocation7 + $0xd90] sm:$0xff] }
 0x1b5   :  { %1655 = vmatprep.subr.mxu1 %v1008_v63  ;;  %1726 = vmatprep.subr.mxu0 %v1010_v0  ;;  %v564_v63 = vld [vmem:[#allocation7 + $0xc88] sm:$0xff]  ;;  %v566_v0 = vld [vmem:[#allocation7 + $0xc98] sm:$0xff] }
 0x1b6   :  { %1656 = vmatpush2.msra.mxu1 %v1007_v1  ;;  %1727 = vmatpush2.msra.mxu0 %v1009_v2  ;;  %v563_v1 = vld [vmem:[#allocation7 + $0xc80] sm:$0xff]  ;;  %v565_v2 = vld [vmem:[#allocation7 + $0xc90] sm:$0xff] }
 0x1b7   :  { %1657 = vmatprep.subr.mxu1 %v976_v3  ;;  %1728 = vmatprep.subr.mxu0 %v978_v4  ;;  %v532_v3 = vld [vmem:[#allocation7 + $0xb88] sm:$0xff]  ;;  %v534_v4 = vld [vmem:[#allocation7 + $0xb98] sm:$0xff] }
 0x1b8   :  { %1658 = vmatpush2.msra.mxu1 %v975_v5  ;;  %1729 = vmatpush2.msra.mxu0 %v977_v6  ;;  %v531_v5 = vld [vmem:[#allocation7 + $0xb80] sm:$0xff]  ;;  %v533_v6 = vld [vmem:[#allocation7 + $0xb90] sm:$0xff] }
 0x1b9   :  { %1659 = vmatprep.subr.mxu1 %v944_v7  ;;  %1730 = vmatprep.subr.mxu0 %v946_v8  ;;  %v500_v7 = vld [vmem:[#allocation7 + $0xa88] sm:$0xff]  ;;  %v502_v8 = vld [vmem:[#allocation7 + $0xa98] sm:$0xff] }
 0x1ba   :  { %1660 = vmatpush2.msra.mxu1 %v943_v9  ;;  %1731 = vmatpush2.msra.mxu0 %v945_v10  ;;  %v499_v9 = vld [vmem:[#allocation7 + $0xa80] sm:$0xff]  ;;  %v501_v10 = vld [vmem:[#allocation7 + $0xa90] sm:$0xff] }
 0x1bb   :  { %1661 = vmatprep.subr.mxu1 %v912_v11  ;;  %1732 = vmatprep.subr.mxu0 %v914_v12  ;;  %v468_v11 = vld [vmem:[#allocation7 + $0x988] sm:$0xff]  ;;  %v470_v12 = vld [vmem:[#allocation7 + $0x998] sm:$0xff] }
 0x1bc   :  { %1662 = vmatpush2.msra.mxu1 %v911_v13  ;;  %1733 = vmatpush2.msra.mxu0 %v913_v14  ;;  %v467_v13 = vld [vmem:[#allocation7 + $0x980] sm:$0xff]  ;;  %v469_v14 = vld [vmem:[#allocation7 + $0x990] sm:$0xff] }
 0x1bd   :  { %1663 = vmatprep.subr.mxu1 %v880_v15  ;;  %1734 = vmatprep.subr.mxu0 %v882_v16  ;;  %v436_v15 = vld [vmem:[#allocation7 + $0x888] sm:$0xff]  ;;  %v438_v16 = vld [vmem:[#allocation7 + $0x898] sm:$0xff] }
 0x1be   :  { %1664 = vmatpush2.msra.mxu1 %v879_v17  ;;  %1735 = vmatpush2.msra.mxu0 %v881_v18  ;;  %v435_v17 = vld [vmem:[#allocation7 + $0x880] sm:$0xff]  ;;  %v437_v18 = vld [vmem:[#allocation7 + $0x890] sm:$0xff] }
 0x1bf   :  { %1665 = vmatprep.subr.mxu1 %v848_v19  ;;  %1736 = vmatprep.subr.mxu0 %v850_v20  ;;  %v404_v19 = vld [vmem:[#allocation7 + $0x788] sm:$0xff]  ;;  %v406_v20 = vld [vmem:[#allocation7 + $0x798] sm:$0xff] }
 0x1c0   :  { %1666 = vmatpush2.msra.mxu1 %v847_v21  ;;  %1737 = vmatpush2.msra.mxu0 %v849_v22  ;;  %v403_v21 = vld [vmem:[#allocation7 + $0x780] sm:$0xff]  ;;  %v405_v22 = vld [vmem:[#allocation7 + $0x790] sm:$0xff] }
 0x1c1   :  { %1667 = vmatprep.subr.mxu1 %v816_v23  ;;  %1738 = vmatprep.subr.mxu0 %v818_v24  ;;  %v372_v23 = vld [vmem:[#allocation7 + $0x688] sm:$0xff]  ;;  %v374_v24 = vld [vmem:[#allocation7 + $0x698] sm:$0xff] }
 0x1c2   :  { %1668 = vmatpush2.msra.mxu1 %v815_v25  ;;  %1739 = vmatpush2.msra.mxu0 %v817_v26  ;;  %v371_v25 = vld [vmem:[#allocation7 + $0x680] sm:$0xff]  ;;  %v373_v26 = vld [vmem:[#allocation7 + $0x690] sm:$0xff] }
 0x1c3   :  { %1669 = vmatprep.subr.mxu1 %v784_v27  ;;  %1740 = vmatprep.subr.mxu0 %v786_v28  ;;  %v340_v27 = vld [vmem:[#allocation7 + $0x588] sm:$0xff]  ;;  %v342_v28 = vld [vmem:[#allocation7 + $0x598] sm:$0xff] }
 0x1c4   :  { %1670 = vmatpush2.msra.mxu1 %v783_v29  ;;  %1741 = vmatpush2.msra.mxu0 %v785_v30  ;;  %v339_v29 = vld [vmem:[#allocation7 + $0x580] sm:$0xff]  ;;  %v341_v30 = vld [vmem:[#allocation7 + $0x590] sm:$0xff] }
 0x1c5   :  { %1671 = vmatprep.subr.mxu1 %v752_v31  ;;  %1742 = vmatprep.subr.mxu0 %v754_v32  ;;  %v308_v31 = vld [vmem:[#allocation7 + $0x488] sm:$0xff]  ;;  %v310_v32 = vld [vmem:[#allocation7 + $0x498] sm:$0xff] }
 0x1c6   :  { %1672 = vmatpush2.msra.mxu1 %v751_v35  ;;  %1743 = vmatpush2.msra.mxu0 %v753_v36  ;;  %v1253_v43 = vpop.f32.mrf.mxu1  ;;  %v1324_v44 = vpop.f32.mrf.mxu0  ;;  %v307_v35 = vld [vmem:[#allocation7 + $0x480] sm:$0xff]  ;;  %v309_v36 = vld [vmem:[#allocation7 + $0x490] sm:$0xff] }
 0x1c7   :  { %1673 = vmatprep.subr.mxu1 %v720_v37  ;;  %1744 = vmatprep.subr.mxu0 %v722_v38  ;;  %v276_v37 = vld [vmem:[#allocation7 + $0x388] sm:$0xff]  ;;  %v278_v38 = vld [vmem:[#allocation7 + $0x398] sm:$0xff] }
 0x1c8   :  { %1674 = vmatpush2.msra.mxu1 %v719_v39  ;;  %1745 = vmatpush2.msra.mxu0 %v721_v40  ;;  %v1255_v47 = vpop.f32.mrf.mxu1  ;;  %v1326_v48 = vpop.f32.mrf.mxu0  ;;  %v275_v39 = vld [vmem:[#allocation7 + $0x380] sm:$0xff]  ;;  %v277_v40 = vld [vmem:[#allocation7 + $0x390] sm:$0xff] }
 0x1c9   :  { %1675 = vmatprep.subr.mxu1 %v688_v41  ;;  %1746 = vmatprep.subr.mxu0 %v690_v42  ;;  %v2355_v51 = vcombine.low %v1253_v43, %v1255_v47  ;;  %v2356_v52 = vcombine.low %v1324_v44, %v1326_v48  ;;  %v244_v41 = vld [vmem:[#allocation7 + $0x288] sm:$0xff]  ;;  %v246_v42 = vld [vmem:[#allocation7 + $0x298] sm:$0xff]  ;;  %v243_v43 = vld [vmem:[#allocation7 + $0x280] sm:$0xff] }
 0x1ca   :  { %1676 = vmatpush2.msra.mxu1 %v687_v45  ;;  %1747 = vmatpush2.msra.mxu0 %v689_v46  ;;  %v245_v44 = vld [vmem:[#allocation7 + $0x290] sm:$0xff]  ;;  %v212_v45 = vld [vmem:[#allocation7 + $0x188] sm:$0xff]  ;;  %v214_v46 = vld [vmem:[#allocation7 + $0x198] sm:$0xff] }
 0x1cb   :  { %1678 = vmatmul.mubr.f32.vlgmr.msra.gmra.mxu1 %v2564_v34  ;;  %1749 = vmatmul.mubr.f32.vlgmr.msra.gmra.mxu0 %v2564_v34  ;;  %2387 = vst [vmem:[#allocation8] sm:$0xff] %v2355_v51  ;;  %2388 = vst [vmem:[#allocation8 + $0x8] sm:$0xff] %v2356_v52  ;;  %v211_v47 = vld [vmem:[#allocation7 + $0x180] sm:$0xff]  ;;  %v213_v48 = vld [vmem:[#allocation7 + $0x190] sm:$0xff] }
 0x1cc   :  { %1755 = vmatprep.subr.mxu1 %v660_v49  ;;  %1826 = vmatprep.subr.mxu0 %v662_v50  ;;  %v180_v49 = vld [vmem:[#allocation7 + $0x88] sm:$0xff]  ;;  %v182_v50 = vld [vmem:[#allocation7 + $0x98] sm:$0xff]  ;;  %v179_v51 = vld [vmem:[#allocation7 + $0x80] sm:$0xff] }
 0x1cd   :  { %1756 = vmatpush1.msra.mxu1 %v659_v53  ;;  %1819 = vmatprep.mubr.f32.mxu1 %v2562_v33  ;;  %v181_v52 = vld [vmem:[#allocation7 + $0x90] sm:$0xff]  ;;  %v1172_v53 = vld [vmem:[#allocation7 + $0x1f88] sm:$0xff] }
 0x1ce   :  { %1827 = vmatpush1.msra.mxu0 %v661_v54  ;;  %1890 = vmatprep.mubr.f32.mxu0 %v2562_v33  ;;  %v1174_v54 = vld [vmem:[#allocation7 + $0x1f98] sm:$0xff] }
 0x1cf   :  { %1757 = vmatprep.subr.mxu1 %v628_v55  ;;  %1828 = vmatprep.subr.mxu0 %v630_v56  ;;  %v1171_v55 = vld [vmem:[#allocation7 + $0x1f80] sm:$0xff]  ;;  %v1173_v56 = vld [vmem:[#allocation7 + $0x1f90] sm:$0xff] }
 0x1d0   :  { %1758 = vmatpush1.msra.mxu1 %v627_v57  ;;  %1829 = vmatpush1.msra.mxu0 %v629_v58  ;;  %v1140_v57 = vld [vmem:[#allocation7 + $0x1e88] sm:$0xff]  ;;  %v1142_v58 = vld [vmem:[#allocation7 + $0x1e98] sm:$0xff] }
 0x1d1   :  { %1759 = vmatprep.subr.mxu1 %v596_v59  ;;  %1830 = vmatprep.subr.mxu0 %v598_v60  ;;  %v1139_v59 = vld [vmem:[#allocation7 + $0x1e80] sm:$0xff]  ;;  %v1141_v60 = vld [vmem:[#allocation7 + $0x1e90] sm:$0xff] }
 0x1d2   :  { %1760 = vmatpush1.msra.mxu1 %v595_v61  ;;  %1831 = vmatpush1.msra.mxu0 %v597_v62  ;;  %v1108_v61 = vld [vmem:[#allocation7 + $0x1d88] sm:$0xff]  ;;  %v1110_v62 = vld [vmem:[#allocation7 + $0x1d98] sm:$0xff] }
 0x1d3   :  { %1761 = vmatprep.subr.mxu1 %v564_v63  ;;  %1832 = vmatprep.subr.mxu0 %v566_v0  ;;  %v1107_v63 = vld [vmem:[#allocation7 + $0x1d80] sm:$0xff]  ;;  %v1109_v0 = vld [vmem:[#allocation7 + $0x1d90] sm:$0xff] }
 0x1d4   :  { %1762 = vmatpush1.msra.mxu1 %v563_v1  ;;  %1833 = vmatpush1.msra.mxu0 %v565_v2  ;;  %v1076_v1 = vld [vmem:[#allocation7 + $0x1c88] sm:$0xff]  ;;  %v1078_v2 = vld [vmem:[#allocation7 + $0x1c98] sm:$0xff] }
 0x1d5   :  { %1763 = vmatprep.subr.mxu1 %v532_v3  ;;  %1834 = vmatprep.subr.mxu0 %v534_v4  ;;  %v1075_v3 = vld [vmem:[#allocation7 + $0x1c80] sm:$0xff]  ;;  %v1077_v4 = vld [vmem:[#allocation7 + $0x1c90] sm:$0xff] }
 0x1d6   :  { %1764 = vmatpush1.msra.mxu1 %v531_v5  ;;  %1835 = vmatpush1.msra.mxu0 %v533_v6  ;;  %v1044_v5 = vld [vmem:[#allocation7 + $0x1b88] sm:$0xff]  ;;  %v1046_v6 = vld [vmem:[#allocation7 + $0x1b98] sm:$0xff] }
 0x1d7   :  { %1765 = vmatprep.subr.mxu1 %v500_v7  ;;  %1836 = vmatprep.subr.mxu0 %v502_v8  ;;  %v1043_v7 = vld [vmem:[#allocation7 + $0x1b80] sm:$0xff]  ;;  %v1045_v8 = vld [vmem:[#allocation7 + $0x1b90] sm:$0xff] }
 0x1d8   :  { %1766 = vmatpush1.msra.mxu1 %v499_v9  ;;  %1837 = vmatpush1.msra.mxu0 %v501_v10  ;;  %v1012_v9 = vld [vmem:[#allocation7 + $0x1a88] sm:$0xff]  ;;  %v1014_v10 = vld [vmem:[#allocation7 + $0x1a98] sm:$0xff] }
 0x1d9   :  { %1767 = vmatprep.subr.mxu1 %v468_v11  ;;  %1838 = vmatprep.subr.mxu0 %v470_v12  ;;  %v1011_v11 = vld [vmem:[#allocation7 + $0x1a80] sm:$0xff]  ;;  %v1013_v12 = vld [vmem:[#allocation7 + $0x1a90] sm:$0xff] }
 0x1da   :  { %1768 = vmatpush1.msra.mxu1 %v467_v13  ;;  %1839 = vmatpush1.msra.mxu0 %v469_v14  ;;  %v980_v13 = vld [vmem:[#allocation7 + $0x1988] sm:$0xff]  ;;  %v982_v14 = vld [vmem:[#allocation7 + $0x1998] sm:$0xff] }
 0x1db   :  { %1769 = vmatprep.subr.mxu1 %v436_v15  ;;  %1840 = vmatprep.subr.mxu0 %v438_v16  ;;  %v979_v15 = vld [vmem:[#allocation7 + $0x1980] sm:$0xff]  ;;  %v981_v16 = vld [vmem:[#allocation7 + $0x1990] sm:$0xff] }
 0x1dc   :  { %1770 = vmatpush1.msra.mxu1 %v435_v17  ;;  %1841 = vmatpush1.msra.mxu0 %v437_v18  ;;  %v948_v17 = vld [vmem:[#allocation7 + $0x1888] sm:$0xff]  ;;  %v950_v18 = vld [vmem:[#allocation7 + $0x1898] sm:$0xff] }
 0x1dd   :  { %1771 = vmatprep.subr.mxu1 %v404_v19  ;;  %1842 = vmatprep.subr.mxu0 %v406_v20  ;;  %v947_v19 = vld [vmem:[#allocation7 + $0x1880] sm:$0xff]  ;;  %v949_v20 = vld [vmem:[#allocation7 + $0x1890] sm:$0xff] }
 0x1de   :  { %1772 = vmatpush1.msra.mxu1 %v403_v21  ;;  %1843 = vmatpush1.msra.mxu0 %v405_v22  ;;  %v916_v21 = vld [vmem:[#allocation7 + $0x1788] sm:$0xff]  ;;  %v918_v22 = vld [vmem:[#allocation7 + $0x1798] sm:$0xff] }
 0x1df   :  { %1773 = vmatprep.subr.mxu1 %v372_v23  ;;  %1844 = vmatprep.subr.mxu0 %v374_v24  ;;  %v915_v23 = vld [vmem:[#allocation7 + $0x1780] sm:$0xff]  ;;  %v917_v24 = vld [vmem:[#allocation7 + $0x1790] sm:$0xff] }
 0x1e0   :  { %1774 = vmatpush1.msra.mxu1 %v371_v25  ;;  %1845 = vmatpush1.msra.mxu0 %v373_v26  ;;  %v884_v25 = vld [vmem:[#allocation7 + $0x1688] sm:$0xff]  ;;  %v886_v26 = vld [vmem:[#allocation7 + $0x1698] sm:$0xff] }
 0x1e1   :  { %1775 = vmatprep.subr.mxu1 %v340_v27  ;;  %1846 = vmatprep.subr.mxu0 %v342_v28  ;;  %v883_v27 = vld [vmem:[#allocation7 + $0x1680] sm:$0xff]  ;;  %v885_v28 = vld [vmem:[#allocation7 + $0x1690] sm:$0xff] }
 0x1e2   :  { %1776 = vmatpush1.msra.mxu1 %v339_v29  ;;  %1847 = vmatpush1.msra.mxu0 %v341_v30  ;;  %v852_v29 = vld [vmem:[#allocation7 + $0x1588] sm:$0xff]  ;;  %v854_v30 = vld [vmem:[#allocation7 + $0x1598] sm:$0xff] }
 0x1e3   :  { %1777 = vmatprep.subr.mxu1 %v308_v31  ;;  %1848 = vmatprep.subr.mxu0 %v310_v32  ;;  %v851_v31 = vld [vmem:[#allocation7 + $0x1580] sm:$0xff]  ;;  %v853_v32 = vld [vmem:[#allocation7 + $0x1590] sm:$0xff] }
 0x1e4   :  { %1778 = vmatpush1.msra.mxu1 %v307_v35  ;;  %1849 = vmatpush1.msra.mxu0 %v309_v36  ;;  %v820_v35 = vld [vmem:[#allocation7 + $0x1488] sm:$0xff]  ;;  %v822_v36 = vld [vmem:[#allocation7 + $0x1498] sm:$0xff] }
 0x1e5   :  { %1779 = vmatprep.subr.mxu1 %v276_v37  ;;  %1850 = vmatprep.subr.mxu0 %v278_v38  ;;  %v819_v37 = vld [vmem:[#allocation7 + $0x1480] sm:$0xff]  ;;  %v821_v38 = vld [vmem:[#allocation7 + $0x1490] sm:$0xff] }
 0x1e6   :  { %1780 = vmatpush1.msra.mxu1 %v275_v39  ;;  %1851 = vmatpush1.msra.mxu0 %v277_v40  ;;  %v788_v39 = vld [vmem:[#allocation7 + $0x1388] sm:$0xff]  ;;  %v790_v40 = vld [vmem:[#allocation7 + $0x1398] sm:$0xff] }
 0x1e7   :  { %1781 = vmatprep.subr.mxu1 %v244_v41  ;;  %1852 = vmatprep.subr.mxu0 %v246_v42  ;;  %v787_v41 = vld [vmem:[#allocation7 + $0x1380] sm:$0xff]  ;;  %v789_v42 = vld [vmem:[#allocation7 + $0x1390] sm:$0xff] }
 0x1e8   :  { %1782 = vmatpush1.msra.mxu1 %v243_v43  ;;  %1853 = vmatpush1.msra.mxu0 %v245_v44  ;;  %v756_v43 = vld [vmem:[#allocation7 + $0x1288] sm:$0xff]  ;;  %v758_v44 = vld [vmem:[#allocation7 + $0x1298] sm:$0xff] }
 0x1e9   :  { %1783 = vmatprep.subr.mxu1 %v212_v45  ;;  %1854 = vmatprep.subr.mxu0 %v214_v46  ;;  %v755_v45 = vld [vmem:[#allocation7 + $0x1280] sm:$0xff]  ;;  %v757_v46 = vld [vmem:[#allocation7 + $0x1290] sm:$0xff] }
 0x1ea   :  { %1784 = vmatpush1.msra.mxu1 %v211_v47  ;;  %1855 = vmatpush1.msra.mxu0 %v213_v48  ;;  %v724_v47 = vld [vmem:[#allocation7 + $0x1188] sm:$0xff]  ;;  %v726_v48 = vld [vmem:[#allocation7 + $0x1198] sm:$0xff] }
 0x1eb   :  { %1785 = vmatprep.subr.mxu1 %v180_v49  ;;  %1856 = vmatprep.subr.mxu0 %v182_v50  ;;  %v723_v49 = vld [vmem:[#allocation7 + $0x1180] sm:$0xff]  ;;  %v725_v50 = vld [vmem:[#allocation7 + $0x1190] sm:$0xff] }
 0x1ec   :  { %1786 = vmatpush1.msra.mxu1 %v179_v51  ;;  %1857 = vmatpush1.msra.mxu0 %v181_v52 }
 0x1ed   :  { %1787 = vmatprep.subr.mxu1 %v1172_v53  ;;  %1858 = vmatprep.subr.mxu0 %v1174_v54  ;;  %v692_v53 = vld [vmem:[#allocation7 + $0x1088] sm:$0xff]  ;;  %v694_v54 = vld [vmem:[#allocation7 + $0x1098] sm:$0xff] }
 0x1ee   :  { %1788 = vmatpush2.msra.mxu1 %v1171_v55  ;;  %1859 = vmatpush2.msra.mxu0 %v1173_v56  ;;  %v691_v55 = vld [vmem:[#allocation7 + $0x1080] sm:$0xff]  ;;  %v693_v56 = vld [vmem:[#allocation7 + $0x1090] sm:$0xff] }
 0x1ef   :  { %1789 = vmatprep.subr.mxu1 %v1140_v57  ;;  %1860 = vmatprep.subr.mxu0 %v1142_v58 }
 0x1f0   :  { %1790 = vmatpush2.msra.mxu1 %v1139_v59  ;;  %1861 = vmatpush2.msra.mxu0 %v1141_v60 }
 0x1f1   :  { %1791 = vmatprep.subr.mxu1 %v1108_v61  ;;  %1862 = vmatprep.subr.mxu0 %v1110_v62  ;;  %v664_v61 = vld [vmem:[#allocation7 + $0xfa8] sm:$0xff]  ;;  %v666_v62 = vld [vmem:[#allocation7 + $0xfb8] sm:$0xff] }
 0x1f2   :  { %1792 = vmatpush2.msra.mxu1 %v1107_v63  ;;  %1863 = vmatpush2.msra.mxu0 %v1109_v0  ;;  %v663_v63 = vld [vmem:[#allocation7 + $0xfa0] sm:$0xff]  ;;  %v665_v0 = vld [vmem:[#allocation7 + $0xfb0] sm:$0xff] }
 0x1f3   :  { %1793 = vmatprep.subr.mxu1 %v1076_v1  ;;  %1864 = vmatprep.subr.mxu0 %v1078_v2  ;;  %v632_v1 = vld [vmem:[#allocation7 + $0xea8] sm:$0xff]  ;;  %v634_v2 = vld [vmem:[#allocation7 + $0xeb8] sm:$0xff] }
 0x1f4   :  { %1794 = vmatpush2.msra.mxu1 %v1075_v3  ;;  %1865 = vmatpush2.msra.mxu0 %v1077_v4  ;;  %v631_v3 = vld [vmem:[#allocation7 + $0xea0] sm:$0xff]  ;;  %v633_v4 = vld [vmem:[#allocation7 + $0xeb0] sm:$0xff] }
 0x1f5   :  { %1795 = vmatprep.subr.mxu1 %v1044_v5  ;;  %1866 = vmatprep.subr.mxu0 %v1046_v6  ;;  %v600_v5 = vld [vmem:[#allocation7 + $0xda8] sm:$0xff]  ;;  %v602_v6 = vld [vmem:[#allocation7 + $0xdb8] sm:$0xff] }
 0x1f6   :  { %1796 = vmatpush2.msra.mxu1 %v1043_v7  ;;  %1867 = vmatpush2.msra.mxu0 %v1045_v8  ;;  %v599_v7 = vld [vmem:[#allocation7 + $0xda0] sm:$0xff]  ;;  %v601_v8 = vld [vmem:[#allocation7 + $0xdb0] sm:$0xff] }
 0x1f7   :  { %1797 = vmatprep.subr.mxu1 %v1012_v9  ;;  %1868 = vmatprep.subr.mxu0 %v1014_v10  ;;  %v568_v9 = vld [vmem:[#allocation7 + $0xca8] sm:$0xff]  ;;  %v570_v10 = vld [vmem:[#allocation7 + $0xcb8] sm:$0xff] }
 0x1f8   :  { %1798 = vmatpush2.msra.mxu1 %v1011_v11  ;;  %1869 = vmatpush2.msra.mxu0 %v1013_v12  ;;  %v567_v11 = vld [vmem:[#allocation7 + $0xca0] sm:$0xff]  ;;  %v569_v12 = vld [vmem:[#allocation7 + $0xcb0] sm:$0xff] }
 0x1f9   :  { %1799 = vmatprep.subr.mxu1 %v980_v13  ;;  %1870 = vmatprep.subr.mxu0 %v982_v14  ;;  %v536_v13 = vld [vmem:[#allocation7 + $0xba8] sm:$0xff]  ;;  %v538_v14 = vld [vmem:[#allocation7 + $0xbb8] sm:$0xff] }
 0x1fa   :  { %1800 = vmatpush2.msra.mxu1 %v979_v15  ;;  %1871 = vmatpush2.msra.mxu0 %v981_v16  ;;  %v535_v15 = vld [vmem:[#allocation7 + $0xba0] sm:$0xff]  ;;  %v537_v16 = vld [vmem:[#allocation7 + $0xbb0] sm:$0xff] }
 0x1fb   :  { %1801 = vmatprep.subr.mxu1 %v948_v17  ;;  %1872 = vmatprep.subr.mxu0 %v950_v18  ;;  %v504_v17 = vld [vmem:[#allocation7 + $0xaa8] sm:$0xff]  ;;  %v506_v18 = vld [vmem:[#allocation7 + $0xab8] sm:$0xff] }
 0x1fc   :  { %1802 = vmatpush2.msra.mxu1 %v947_v19  ;;  %1873 = vmatpush2.msra.mxu0 %v949_v20  ;;  %v503_v19 = vld [vmem:[#allocation7 + $0xaa0] sm:$0xff]  ;;  %v505_v20 = vld [vmem:[#allocation7 + $0xab0] sm:$0xff] }
 0x1fd   :  { %1803 = vmatprep.subr.mxu1 %v916_v21  ;;  %1874 = vmatprep.subr.mxu0 %v918_v22  ;;  %v472_v21 = vld [vmem:[#allocation7 + $0x9a8] sm:$0xff]  ;;  %v474_v22 = vld [vmem:[#allocation7 + $0x9b8] sm:$0xff] }
 0x1fe   :  { %1804 = vmatpush2.msra.mxu1 %v915_v23  ;;  %1875 = vmatpush2.msra.mxu0 %v917_v24  ;;  %v471_v23 = vld [vmem:[#allocation7 + $0x9a0] sm:$0xff]  ;;  %v473_v24 = vld [vmem:[#allocation7 + $0x9b0] sm:$0xff] }
 0x1ff   :  { %1805 = vmatprep.subr.mxu1 %v884_v25  ;;  %1876 = vmatprep.subr.mxu0 %v886_v26  ;;  %v440_v25 = vld [vmem:[#allocation7 + $0x8a8] sm:$0xff]  ;;  %v442_v26 = vld [vmem:[#allocation7 + $0x8b8] sm:$0xff] }
 0x200   :  { %1806 = vmatpush2.msra.mxu1 %v883_v27  ;;  %1877 = vmatpush2.msra.mxu0 %v885_v28  ;;  %v439_v27 = vld [vmem:[#allocation7 + $0x8a0] sm:$0xff]  ;;  %v441_v28 = vld [vmem:[#allocation7 + $0x8b0] sm:$0xff] }
 0x201   :  { %1807 = vmatprep.subr.mxu1 %v852_v29  ;;  %1878 = vmatprep.subr.mxu0 %v854_v30  ;;  %v408_v29 = vld [vmem:[#allocation7 + $0x7a8] sm:$0xff]  ;;  %v410_v30 = vld [vmem:[#allocation7 + $0x7b8] sm:$0xff] }
 0x202   :  { %1808 = vmatpush2.msra.mxu1 %v851_v31  ;;  %1879 = vmatpush2.msra.mxu0 %v853_v32  ;;  %v407_v31 = vld [vmem:[#allocation7 + $0x7a0] sm:$0xff]  ;;  %v409_v32 = vld [vmem:[#allocation7 + $0x7b0] sm:$0xff] }
 0x203   :  { %1809 = vmatprep.subr.mxu1 %v820_v35  ;;  %1880 = vmatprep.subr.mxu0 %v822_v36  ;;  %v376_v35 = vld [vmem:[#allocation7 + $0x6a8] sm:$0xff]  ;;  %v378_v36 = vld [vmem:[#allocation7 + $0x6b8] sm:$0xff] }
 0x204   :  { %1810 = vmatpush2.msra.mxu1 %v819_v37  ;;  %1881 = vmatpush2.msra.mxu0 %v821_v38  ;;  %v375_v37 = vld [vmem:[#allocation7 + $0x6a0] sm:$0xff]  ;;  %v377_v38 = vld [vmem:[#allocation7 + $0x6b0] sm:$0xff] }
 0x205   :  { %1811 = vmatprep.subr.mxu1 %v788_v39  ;;  %1882 = vmatprep.subr.mxu0 %v790_v40  ;;  %v344_v39 = vld [vmem:[#allocation7 + $0x5a8] sm:$0xff]  ;;  %v346_v40 = vld [vmem:[#allocation7 + $0x5b8] sm:$0xff] }
 0x206   :  { %1812 = vmatpush2.msra.mxu1 %v787_v41  ;;  %1883 = vmatpush2.msra.mxu0 %v789_v42  ;;  %v343_v41 = vld [vmem:[#allocation7 + $0x5a0] sm:$0xff]  ;;  %v345_v42 = vld [vmem:[#allocation7 + $0x5b0] sm:$0xff] }
 0x207   :  { %1813 = vmatprep.subr.mxu1 %v756_v43  ;;  %1884 = vmatprep.subr.mxu0 %v758_v44  ;;  %v1395_v51 = vpop.f32.mrf.mxu1  ;;  %v1466_v52 = vpop.f32.mrf.mxu0  ;;  %v312_v43 = vld [vmem:[#allocation7 + $0x4a8] sm:$0xff]  ;;  %v314_v44 = vld [vmem:[#allocation7 + $0x4b8] sm:$0xff] }
 0x208   :  { %1814 = vmatpush2.msra.mxu1 %v755_v45  ;;  %1885 = vmatpush2.msra.mxu0 %v757_v46  ;;  %v311_v45 = vld [vmem:[#allocation7 + $0x4a0] sm:$0xff]  ;;  %v313_v46 = vld [vmem:[#allocation7 + $0x4b0] sm:$0xff] }
 0x209   :  { %1815 = vmatprep.subr.mxu1 %v724_v47  ;;  %1886 = vmatprep.subr.mxu0 %v726_v48  ;;  %v1397_v57 = vpop.f32.mrf.mxu1  ;;  %v1468_v58 = vpop.f32.mrf.mxu0  ;;  %v280_v47 = vld [vmem:[#allocation7 + $0x3a8] sm:$0xff]  ;;  %v282_v48 = vld [vmem:[#allocation7 + $0x3b8] sm:$0xff] }
 0x20a   :  { %1816 = vmatpush2.msra.mxu1 %v723_v49  ;;  %1887 = vmatpush2.msra.mxu0 %v725_v50  ;;  %v2357_v59 = vcombine.low %v1395_v51, %v1397_v57  ;;  %v2358_v60 = vcombine.low %v1466_v52, %v1468_v58  ;;  %v279_v49 = vld [vmem:[#allocation7 + $0x3a0] sm:$0xff]  ;;  %v281_v50 = vld [vmem:[#allocation7 + $0x3b0] sm:$0xff]  ;;  %v248_v51 = vld [vmem:[#allocation7 + $0x2a8] sm:$0xff] }
 0x20b   :  { %1817 = vmatprep.subr.mxu1 %v692_v53  ;;  %1888 = vmatprep.subr.mxu0 %v694_v54  ;;  %v250_v52 = vld [vmem:[#allocation7 + $0x2b8] sm:$0xff]  ;;  %v247_v53 = vld [vmem:[#allocation7 + $0x2a0] sm:$0xff]  ;;  %v249_v54 = vld [vmem:[#allocation7 + $0x2b0] sm:$0xff] }
 0x20c   :  { %1818 = vmatpush2.msra.mxu1 %v691_v55  ;;  %1889 = vmatpush2.msra.mxu0 %v693_v56  ;;  %2389 = vst [vmem:[#allocation8 + $0x10] sm:$0xff] %v2357_v59  ;;  %2390 = vst [vmem:[#allocation8 + $0x18] sm:$0xff] %v2358_v60  ;;  %v216_v55 = vld [vmem:[#allocation7 + $0x1a8] sm:$0xff]  ;;  %v218_v56 = vld [vmem:[#allocation7 + $0x1b8] sm:$0xff] }
 0x20d   :  { %1820 = vmatmul.mubr.f32.vlgmr.msra.gmra.mxu1 %v2564_v34  ;;  %1891 = vmatmul.mubr.f32.vlgmr.msra.gmra.mxu0 %v2564_v34  ;;  %v215_v57 = vld [vmem:[#allocation7 + $0x1a0] sm:$0xff]  ;;  %v217_v58 = vld [vmem:[#allocation7 + $0x1b0] sm:$0xff]  ;;  %v184_v59 = vld [vmem:[#allocation7 + $0xa8] sm:$0xff] }
 0x20e   :  { %1897 = vmatprep.subr.mxu1 %v664_v61  ;;  %1968 = vmatprep.subr.mxu0 %v666_v62  ;;  %v186_v60 = vld [vmem:[#allocation7 + $0xb8] sm:$0xff]  ;;  %v183_v61 = vld [vmem:[#allocation7 + $0xa0] sm:$0xff]  ;;  %v185_v62 = vld [vmem:[#allocation7 + $0xb0] sm:$0xff] }
 0x20f   :  { %1898 = vmatpush1.msra.mxu1 %v663_v63  ;;  %1961 = vmatprep.mubr.f32.mxu1 %v2562_v33  ;;  %v1176_v63 = vld [vmem:[#allocation7 + $0x1fa8] sm:$0xff] }
 0x210   :  { %1969 = vmatpush1.msra.mxu0 %v665_v0  ;;  %2032 = vmatprep.mubr.f32.mxu0 %v2562_v33  ;;  %v1178_v0 = vld [vmem:[#allocation7 + $0x1fb8] sm:$0xff] }
 0x211   :  { %1899 = vmatprep.subr.mxu1 %v632_v1  ;;  %1970 = vmatprep.subr.mxu0 %v634_v2  ;;  %v1175_v1 = vld [vmem:[#allocation7 + $0x1fa0] sm:$0xff]  ;;  %v1177_v2 = vld [vmem:[#allocation7 + $0x1fb0] sm:$0xff] }
 0x212   :  { %1900 = vmatpush1.msra.mxu1 %v631_v3  ;;  %1971 = vmatpush1.msra.mxu0 %v633_v4  ;;  %v1144_v3 = vld [vmem:[#allocation7 + $0x1ea8] sm:$0xff]  ;;  %v1146_v4 = vld [vmem:[#allocation7 + $0x1eb8] sm:$0xff] }
 0x213   :  { %1901 = vmatprep.subr.mxu1 %v600_v5  ;;  %1972 = vmatprep.subr.mxu0 %v602_v6  ;;  %v1143_v5 = vld [vmem:[#allocation7 + $0x1ea0] sm:$0xff]  ;;  %v1145_v6 = vld [vmem:[#allocation7 + $0x1eb0] sm:$0xff] }
 0x214   :  { %1902 = vmatpush1.msra.mxu1 %v599_v7  ;;  %1973 = vmatpush1.msra.mxu0 %v601_v8  ;;  %v1112_v7 = vld [vmem:[#allocation7 + $0x1da8] sm:$0xff]  ;;  %v1114_v8 = vld [vmem:[#allocation7 + $0x1db8] sm:$0xff] }
 0x215   :  { %1903 = vmatprep.subr.mxu1 %v568_v9  ;;  %1974 = vmatprep.subr.mxu0 %v570_v10  ;;  %v1111_v9 = vld [vmem:[#allocation7 + $0x1da0] sm:$0xff]  ;;  %v1113_v10 = vld [vmem:[#allocation7 + $0x1db0] sm:$0xff] }
 0x216   :  { %1904 = vmatpush1.msra.mxu1 %v567_v11  ;;  %1975 = vmatpush1.msra.mxu0 %v569_v12  ;;  %v1080_v11 = vld [vmem:[#allocation7 + $0x1ca8] sm:$0xff]  ;;  %v1082_v12 = vld [vmem:[#allocation7 + $0x1cb8] sm:$0xff] }
 0x217   :  { %1905 = vmatprep.subr.mxu1 %v536_v13  ;;  %1976 = vmatprep.subr.mxu0 %v538_v14  ;;  %v1079_v13 = vld [vmem:[#allocation7 + $0x1ca0] sm:$0xff]  ;;  %v1081_v14 = vld [vmem:[#allocation7 + $0x1cb0] sm:$0xff] }
 0x218   :  { %1906 = vmatpush1.msra.mxu1 %v535_v15  ;;  %1977 = vmatpush1.msra.mxu0 %v537_v16  ;;  %v1048_v15 = vld [vmem:[#allocation7 + $0x1ba8] sm:$0xff]  ;;  %v1050_v16 = vld [vmem:[#allocation7 + $0x1bb8] sm:$0xff] }
 0x219   :  { %1907 = vmatprep.subr.mxu1 %v504_v17  ;;  %1978 = vmatprep.subr.mxu0 %v506_v18  ;;  %v1047_v17 = vld [vmem:[#allocation7 + $0x1ba0] sm:$0xff]  ;;  %v1049_v18 = vld [vmem:[#allocation7 + $0x1bb0] sm:$0xff] }
 0x21a   :  { %1908 = vmatpush1.msra.mxu1 %v503_v19  ;;  %1979 = vmatpush1.msra.mxu0 %v505_v20  ;;  %v1016_v19 = vld [vmem:[#allocation7 + $0x1aa8] sm:$0xff]  ;;  %v1018_v20 = vld [vmem:[#allocation7 + $0x1ab8] sm:$0xff] }
 0x21b   :  { %1909 = vmatprep.subr.mxu1 %v472_v21  ;;  %1980 = vmatprep.subr.mxu0 %v474_v22  ;;  %v1015_v21 = vld [vmem:[#allocation7 + $0x1aa0] sm:$0xff]  ;;  %v1017_v22 = vld [vmem:[#allocation7 + $0x1ab0] sm:$0xff] }
 0x21c   :  { %1910 = vmatpush1.msra.mxu1 %v471_v23  ;;  %1981 = vmatpush1.msra.mxu0 %v473_v24  ;;  %v984_v23 = vld [vmem:[#allocation7 + $0x19a8] sm:$0xff]  ;;  %v986_v24 = vld [vmem:[#allocation7 + $0x19b8] sm:$0xff] }
 0x21d   :  { %1911 = vmatprep.subr.mxu1 %v440_v25  ;;  %1982 = vmatprep.subr.mxu0 %v442_v26  ;;  %v983_v25 = vld [vmem:[#allocation7 + $0x19a0] sm:$0xff]  ;;  %v985_v26 = vld [vmem:[#allocation7 + $0x19b0] sm:$0xff] }
 0x21e   :  { %1912 = vmatpush1.msra.mxu1 %v439_v27  ;;  %1983 = vmatpush1.msra.mxu0 %v441_v28  ;;  %v952_v27 = vld [vmem:[#allocation7 + $0x18a8] sm:$0xff]  ;;  %v954_v28 = vld [vmem:[#allocation7 + $0x18b8] sm:$0xff] }
 0x21f   :  { %1913 = vmatprep.subr.mxu1 %v408_v29  ;;  %1984 = vmatprep.subr.mxu0 %v410_v30  ;;  %v951_v29 = vld [vmem:[#allocation7 + $0x18a0] sm:$0xff]  ;;  %v953_v30 = vld [vmem:[#allocation7 + $0x18b0] sm:$0xff] }
 0x220   :  { %1914 = vmatpush1.msra.mxu1 %v407_v31  ;;  %1985 = vmatpush1.msra.mxu0 %v409_v32  ;;  %v920_v31 = vld [vmem:[#allocation7 + $0x17a8] sm:$0xff]  ;;  %v922_v32 = vld [vmem:[#allocation7 + $0x17b8] sm:$0xff] }
 0x221   :  { %1915 = vmatprep.subr.mxu1 %v376_v35  ;;  %1986 = vmatprep.subr.mxu0 %v378_v36  ;;  %v919_v35 = vld [vmem:[#allocation7 + $0x17a0] sm:$0xff]  ;;  %v921_v36 = vld [vmem:[#allocation7 + $0x17b0] sm:$0xff] }
 0x222   :  { %1916 = vmatpush1.msra.mxu1 %v375_v37  ;;  %1987 = vmatpush1.msra.mxu0 %v377_v38  ;;  %v888_v37 = vld [vmem:[#allocation7 + $0x16a8] sm:$0xff]  ;;  %v890_v38 = vld [vmem:[#allocation7 + $0x16b8] sm:$0xff] }
 0x223   :  { %1917 = vmatprep.subr.mxu1 %v344_v39  ;;  %1988 = vmatprep.subr.mxu0 %v346_v40  ;;  %v887_v39 = vld [vmem:[#allocation7 + $0x16a0] sm:$0xff]  ;;  %v889_v40 = vld [vmem:[#allocation7 + $0x16b0] sm:$0xff] }
 0x224   :  { %1918 = vmatpush1.msra.mxu1 %v343_v41  ;;  %1989 = vmatpush1.msra.mxu0 %v345_v42  ;;  %v856_v41 = vld [vmem:[#allocation7 + $0x15a8] sm:$0xff]  ;;  %v858_v42 = vld [vmem:[#allocation7 + $0x15b8] sm:$0xff] }
 0x225   :  { %1919 = vmatprep.subr.mxu1 %v312_v43  ;;  %1990 = vmatprep.subr.mxu0 %v314_v44  ;;  %v855_v43 = vld [vmem:[#allocation7 + $0x15a0] sm:$0xff]  ;;  %v857_v44 = vld [vmem:[#allocation7 + $0x15b0] sm:$0xff] }
 0x226   :  { %1920 = vmatpush1.msra.mxu1 %v311_v45  ;;  %1991 = vmatpush1.msra.mxu0 %v313_v46  ;;  %v824_v45 = vld [vmem:[#allocation7 + $0x14a8] sm:$0xff]  ;;  %v826_v46 = vld [vmem:[#allocation7 + $0x14b8] sm:$0xff] }
 0x227   :  { %1921 = vmatprep.subr.mxu1 %v280_v47  ;;  %1992 = vmatprep.subr.mxu0 %v282_v48  ;;  %v823_v47 = vld [vmem:[#allocation7 + $0x14a0] sm:$0xff]  ;;  %v825_v48 = vld [vmem:[#allocation7 + $0x14b0] sm:$0xff] }
 0x228   :  { %1922 = vmatpush1.msra.mxu1 %v279_v49  ;;  %1993 = vmatpush1.msra.mxu0 %v281_v50  ;;  %v792_v49 = vld [vmem:[#allocation7 + $0x13a8] sm:$0xff]  ;;  %v794_v50 = vld [vmem:[#allocation7 + $0x13b8] sm:$0xff] }
 0x229   :  { %1923 = vmatprep.subr.mxu1 %v248_v51  ;;  %1994 = vmatprep.subr.mxu0 %v250_v52  ;;  %v791_v51 = vld [vmem:[#allocation7 + $0x13a0] sm:$0xff]  ;;  %v793_v52 = vld [vmem:[#allocation7 + $0x13b0] sm:$0xff] }
 0x22a   :  { %1924 = vmatpush1.msra.mxu1 %v247_v53  ;;  %1995 = vmatpush1.msra.mxu0 %v249_v54  ;;  %v760_v53 = vld [vmem:[#allocation7 + $0x12a8] sm:$0xff]  ;;  %v762_v54 = vld [vmem:[#allocation7 + $0x12b8] sm:$0xff] }
 0x22b   :  { %1925 = vmatprep.subr.mxu1 %v216_v55  ;;  %1996 = vmatprep.subr.mxu0 %v218_v56  ;;  %v759_v55 = vld [vmem:[#allocation7 + $0x12a0] sm:$0xff]  ;;  %v761_v56 = vld [vmem:[#allocation7 + $0x12b0] sm:$0xff] }
 0x22c   :  { %1926 = vmatpush1.msra.mxu1 %v215_v57  ;;  %1997 = vmatpush1.msra.mxu0 %v217_v58  ;;  %v728_v57 = vld [vmem:[#allocation7 + $0x11a8] sm:$0xff]  ;;  %v730_v58 = vld [vmem:[#allocation7 + $0x11b8] sm:$0xff] }
 0x22d   :  { %1927 = vmatprep.subr.mxu1 %v184_v59  ;;  %1998 = vmatprep.subr.mxu0 %v186_v60  ;;  %v727_v59 = vld [vmem:[#allocation7 + $0x11a0] sm:$0xff]  ;;  %v729_v60 = vld [vmem:[#allocation7 + $0x11b0] sm:$0xff] }
 0x22e   :  { %1928 = vmatpush1.msra.mxu1 %v183_v61  ;;  %1999 = vmatpush1.msra.mxu0 %v185_v62 }
 0x22f   :  { %1929 = vmatprep.subr.mxu1 %v1176_v63  ;;  %2000 = vmatprep.subr.mxu0 %v1178_v0  ;;  %v696_v63 = vld [vmem:[#allocation7 + $0x10a8] sm:$0xff]  ;;  %v698_v0 = vld [vmem:[#allocation7 + $0x10b8] sm:$0xff] }
 0x230   :  { %1930 = vmatpush2.msra.mxu1 %v1175_v1  ;;  %2001 = vmatpush2.msra.mxu0 %v1177_v2  ;;  %v695_v1 = vld [vmem:[#allocation7 + $0x10a0] sm:$0xff]  ;;  %v697_v2 = vld [vmem:[#allocation7 + $0x10b0] sm:$0xff] }
 0x231   :  { %1931 = vmatprep.subr.mxu1 %v1144_v3  ;;  %2002 = vmatprep.subr.mxu0 %v1146_v4 }
 0x232   :  { %1932 = vmatpush2.msra.mxu1 %v1143_v5  ;;  %2003 = vmatpush2.msra.mxu0 %v1145_v6 }
 0x233   :  { %1933 = vmatprep.subr.mxu1 %v1112_v7  ;;  %2004 = vmatprep.subr.mxu0 %v1114_v8  ;;  %v668_v7 = vld [vmem:[#allocation7 + $0xfc8] sm:$0xff]  ;;  %v670_v8 = vld [vmem:[#allocation7 + $0xfd8] sm:$0xff] }
 0x234   :  { %1934 = vmatpush2.msra.mxu1 %v1111_v9  ;;  %2005 = vmatpush2.msra.mxu0 %v1113_v10  ;;  %v667_v9 = vld [vmem:[#allocation7 + $0xfc0] sm:$0xff]  ;;  %v669_v10 = vld [vmem:[#allocation7 + $0xfd0] sm:$0xff] }
 0x235   :  { %1935 = vmatprep.subr.mxu1 %v1080_v11  ;;  %2006 = vmatprep.subr.mxu0 %v1082_v12  ;;  %v636_v11 = vld [vmem:[#allocation7 + $0xec8] sm:$0xff]  ;;  %v638_v12 = vld [vmem:[#allocation7 + $0xed8] sm:$0xff] }
 0x236   :  { %1936 = vmatpush2.msra.mxu1 %v1079_v13  ;;  %2007 = vmatpush2.msra.mxu0 %v1081_v14  ;;  %v635_v13 = vld [vmem:[#allocation7 + $0xec0] sm:$0xff]  ;;  %v637_v14 = vld [vmem:[#allocation7 + $0xed0] sm:$0xff] }
 0x237   :  { %1937 = vmatprep.subr.mxu1 %v1048_v15  ;;  %2008 = vmatprep.subr.mxu0 %v1050_v16  ;;  %v604_v15 = vld [vmem:[#allocation7 + $0xdc8] sm:$0xff]  ;;  %v606_v16 = vld [vmem:[#allocation7 + $0xdd8] sm:$0xff] }
 0x238   :  { %1938 = vmatpush2.msra.mxu1 %v1047_v17  ;;  %2009 = vmatpush2.msra.mxu0 %v1049_v18  ;;  %v603_v17 = vld [vmem:[#allocation7 + $0xdc0] sm:$0xff]  ;;  %v605_v18 = vld [vmem:[#allocation7 + $0xdd0] sm:$0xff] }
 0x239   :  { %1939 = vmatprep.subr.mxu1 %v1016_v19  ;;  %2010 = vmatprep.subr.mxu0 %v1018_v20  ;;  %v572_v19 = vld [vmem:[#allocation7 + $0xcc8] sm:$0xff]  ;;  %v574_v20 = vld [vmem:[#allocation7 + $0xcd8] sm:$0xff] }
 0x23a   :  { %1940 = vmatpush2.msra.mxu1 %v1015_v21  ;;  %2011 = vmatpush2.msra.mxu0 %v1017_v22  ;;  %v571_v21 = vld [vmem:[#allocation7 + $0xcc0] sm:$0xff]  ;;  %v573_v22 = vld [vmem:[#allocation7 + $0xcd0] sm:$0xff] }
 0x23b   :  { %1941 = vmatprep.subr.mxu1 %v984_v23  ;;  %2012 = vmatprep.subr.mxu0 %v986_v24  ;;  %v540_v23 = vld [vmem:[#allocation7 + $0xbc8] sm:$0xff]  ;;  %v542_v24 = vld [vmem:[#allocation7 + $0xbd8] sm:$0xff] }
 0x23c   :  { %1942 = vmatpush2.msra.mxu1 %v983_v25  ;;  %2013 = vmatpush2.msra.mxu0 %v985_v26  ;;  %v539_v25 = vld [vmem:[#allocation7 + $0xbc0] sm:$0xff]  ;;  %v541_v26 = vld [vmem:[#allocation7 + $0xbd0] sm:$0xff] }
 0x23d   :  { %1943 = vmatprep.subr.mxu1 %v952_v27  ;;  %2014 = vmatprep.subr.mxu0 %v954_v28  ;;  %v508_v27 = vld [vmem:[#allocation7 + $0xac8] sm:$0xff]  ;;  %v510_v28 = vld [vmem:[#allocation7 + $0xad8] sm:$0xff] }
 0x23e   :  { %1944 = vmatpush2.msra.mxu1 %v951_v29  ;;  %2015 = vmatpush2.msra.mxu0 %v953_v30  ;;  %v507_v29 = vld [vmem:[#allocation7 + $0xac0] sm:$0xff]  ;;  %v509_v30 = vld [vmem:[#allocation7 + $0xad0] sm:$0xff] }
 0x23f   :  { %1945 = vmatprep.subr.mxu1 %v920_v31  ;;  %2016 = vmatprep.subr.mxu0 %v922_v32  ;;  %v476_v31 = vld [vmem:[#allocation7 + $0x9c8] sm:$0xff]  ;;  %v478_v32 = vld [vmem:[#allocation7 + $0x9d8] sm:$0xff] }
 0x240   :  { %1946 = vmatpush2.msra.mxu1 %v919_v35  ;;  %2017 = vmatpush2.msra.mxu0 %v921_v36  ;;  %v475_v35 = vld [vmem:[#allocation7 + $0x9c0] sm:$0xff]  ;;  %v477_v36 = vld [vmem:[#allocation7 + $0x9d0] sm:$0xff] }
 0x241   :  { %1947 = vmatprep.subr.mxu1 %v888_v37  ;;  %2018 = vmatprep.subr.mxu0 %v890_v38  ;;  %v444_v37 = vld [vmem:[#allocation7 + $0x8c8] sm:$0xff]  ;;  %v446_v38 = vld [vmem:[#allocation7 + $0x8d8] sm:$0xff] }
 0x242   :  { %1948 = vmatpush2.msra.mxu1 %v887_v39  ;;  %2019 = vmatpush2.msra.mxu0 %v889_v40  ;;  %v443_v39 = vld [vmem:[#allocation7 + $0x8c0] sm:$0xff]  ;;  %v445_v40 = vld [vmem:[#allocation7 + $0x8d0] sm:$0xff] }
 0x243   :  { %1949 = vmatprep.subr.mxu1 %v856_v41  ;;  %2020 = vmatprep.subr.mxu0 %v858_v42  ;;  %v412_v41 = vld [vmem:[#allocation7 + $0x7c8] sm:$0xff]  ;;  %v414_v42 = vld [vmem:[#allocation7 + $0x7d8] sm:$0xff] }
 0x244   :  { %1950 = vmatpush2.msra.mxu1 %v855_v43  ;;  %2021 = vmatpush2.msra.mxu0 %v857_v44  ;;  %v411_v43 = vld [vmem:[#allocation7 + $0x7c0] sm:$0xff]  ;;  %v413_v44 = vld [vmem:[#allocation7 + $0x7d0] sm:$0xff] }
 0x245   :  { %1951 = vmatprep.subr.mxu1 %v824_v45  ;;  %2022 = vmatprep.subr.mxu0 %v826_v46  ;;  %v380_v45 = vld [vmem:[#allocation7 + $0x6c8] sm:$0xff]  ;;  %v382_v46 = vld [vmem:[#allocation7 + $0x6d8] sm:$0xff] }
 0x246   :  { %1952 = vmatpush2.msra.mxu1 %v823_v47  ;;  %2023 = vmatpush2.msra.mxu0 %v825_v48  ;;  %v379_v47 = vld [vmem:[#allocation7 + $0x6c0] sm:$0xff]  ;;  %v381_v48 = vld [vmem:[#allocation7 + $0x6d0] sm:$0xff] }
 0x247   :  { %1953 = vmatprep.subr.mxu1 %v792_v49  ;;  %2024 = vmatprep.subr.mxu0 %v794_v50  ;;  %v348_v49 = vld [vmem:[#allocation7 + $0x5c8] sm:$0xff]  ;;  %v350_v50 = vld [vmem:[#allocation7 + $0x5d8] sm:$0xff] }
 0x248   :  { %1954 = vmatpush2.msra.mxu1 %v791_v51  ;;  %2025 = vmatpush2.msra.mxu0 %v793_v52  ;;  %v347_v51 = vld [vmem:[#allocation7 + $0x5c0] sm:$0xff]  ;;  %v349_v52 = vld [vmem:[#allocation7 + $0x5d0] sm:$0xff] }
 0x249   :  { %1955 = vmatprep.subr.mxu1 %v760_v53  ;;  %2026 = vmatprep.subr.mxu0 %v762_v54  ;;  %v1537_v61 = vpop.f32.mrf.mxu1  ;;  %v1608_v62 = vpop.f32.mrf.mxu0  ;;  %v316_v53 = vld [vmem:[#allocation7 + $0x4c8] sm:$0xff]  ;;  %v318_v54 = vld [vmem:[#allocation7 + $0x4d8] sm:$0xff] }
 0x24a   :  { %1956 = vmatpush2.msra.mxu1 %v759_v55  ;;  %2027 = vmatpush2.msra.mxu0 %v761_v56  ;;  %v315_v55 = vld [vmem:[#allocation7 + $0x4c0] sm:$0xff]  ;;  %v317_v56 = vld [vmem:[#allocation7 + $0x4d0] sm:$0xff] }
 0x24b   :  { %1957 = vmatprep.subr.mxu1 %v728_v57  ;;  %2028 = vmatprep.subr.mxu0 %v730_v58  ;;  %v1539_v3 = vpop.f32.mrf.mxu1  ;;  %v1610_v4 = vpop.f32.mrf.mxu0  ;;  %v284_v57 = vld [vmem:[#allocation7 + $0x3c8] sm:$0xff]  ;;  %v286_v58 = vld [vmem:[#allocation7 + $0x3d8] sm:$0xff] }
 0x24c   :  { %1958 = vmatpush2.msra.mxu1 %v727_v59  ;;  %2029 = vmatpush2.msra.mxu0 %v729_v60  ;;  %v2359_v5 = vcombine.low %v1537_v61, %v1539_v3  ;;  %v2360_v6 = vcombine.low %v1608_v62, %v1610_v4  ;;  %v283_v59 = vld [vmem:[#allocation7 + $0x3c0] sm:$0xff]  ;;  %v285_v60 = vld [vmem:[#allocation7 + $0x3d0] sm:$0xff]  ;;  %v252_v61 = vld [vmem:[#allocation7 + $0x2c8] sm:$0xff] }
 0x24d   :  { %1959 = vmatprep.subr.mxu1 %v696_v63  ;;  %2030 = vmatprep.subr.mxu0 %v698_v0  ;;  %v254_v62 = vld [vmem:[#allocation7 + $0x2d8] sm:$0xff]  ;;  %v251_v63 = vld [vmem:[#allocation7 + $0x2c0] sm:$0xff]  ;;  %v253_v0 = vld [vmem:[#allocation7 + $0x2d0] sm:$0xff] }
 0x24e   :  { %1960 = vmatpush2.msra.mxu1 %v695_v1  ;;  %2031 = vmatpush2.msra.mxu0 %v697_v2  ;;  %2391 = vst [vmem:[#allocation8 + $0x20] sm:$0xff] %v2359_v5  ;;  %2392 = vst [vmem:[#allocation8 + $0x28] sm:$0xff] %v2360_v6  ;;  %v220_v1 = vld [vmem:[#allocation7 + $0x1c8] sm:$0xff]  ;;  %v222_v2 = vld [vmem:[#allocation7 + $0x1d8] sm:$0xff] }
 0x24f   :  { %1962 = vmatmul.mubr.f32.vlgmr.msra.gmra.mxu1 %v2564_v34  ;;  %2033 = vmatmul.mubr.f32.vlgmr.msra.gmra.mxu0 %v2564_v34  ;;  %v219_v3 = vld [vmem:[#allocation7 + $0x1c0] sm:$0xff]  ;;  %v221_v4 = vld [vmem:[#allocation7 + $0x1d0] sm:$0xff]  ;;  %v188_v5 = vld [vmem:[#allocation7 + $0xc8] sm:$0xff] }
 0x250   :  { %2039 = vmatprep.subr.mxu1 %v668_v7  ;;  %2110 = vmatprep.subr.mxu0 %v670_v8  ;;  %v190_v6 = vld [vmem:[#allocation7 + $0xd8] sm:$0xff]  ;;  %v187_v7 = vld [vmem:[#allocation7 + $0xc0] sm:$0xff]  ;;  %v189_v8 = vld [vmem:[#allocation7 + $0xd0] sm:$0xff] }
 0x251   :  { %2040 = vmatpush1.msra.mxu1 %v667_v9  ;;  %2103 = vmatprep.mubr.f32.mxu1 %v2562_v33  ;;  %v1180_v9 = vld [vmem:[#allocation7 + $0x1fc8] sm:$0xff] }
 0x252   :  { %2111 = vmatpush1.msra.mxu0 %v669_v10  ;;  %2174 = vmatprep.mubr.f32.mxu0 %v2562_v33  ;;  %v1182_v10 = vld [vmem:[#allocation7 + $0x1fd8] sm:$0xff] }
 0x253   :  { %2041 = vmatprep.subr.mxu1 %v636_v11  ;;  %2112 = vmatprep.subr.mxu0 %v638_v12  ;;  %v1179_v11 = vld [vmem:[#allocation7 + $0x1fc0] sm:$0xff]  ;;  %v1181_v12 = vld [vmem:[#allocation7 + $0x1fd0] sm:$0xff] }
 0x254   :  { %2042 = vmatpush1.msra.mxu1 %v635_v13  ;;  %2113 = vmatpush1.msra.mxu0 %v637_v14  ;;  %v1148_v13 = vld [vmem:[#allocation7 + $0x1ec8] sm:$0xff]  ;;  %v1150_v14 = vld [vmem:[#allocation7 + $0x1ed8] sm:$0xff] }
 0x255   :  { %2043 = vmatprep.subr.mxu1 %v604_v15  ;;  %2114 = vmatprep.subr.mxu0 %v606_v16  ;;  %v1147_v15 = vld [vmem:[#allocation7 + $0x1ec0] sm:$0xff]  ;;  %v1149_v16 = vld [vmem:[#allocation7 + $0x1ed0] sm:$0xff] }
 0x256   :  { %2044 = vmatpush1.msra.mxu1 %v603_v17  ;;  %2115 = vmatpush1.msra.mxu0 %v605_v18  ;;  %v1116_v17 = vld [vmem:[#allocation7 + $0x1dc8] sm:$0xff]  ;;  %v1118_v18 = vld [vmem:[#allocation7 + $0x1dd8] sm:$0xff] }
 0x257   :  { %2045 = vmatprep.subr.mxu1 %v572_v19  ;;  %2116 = vmatprep.subr.mxu0 %v574_v20  ;;  %v1115_v19 = vld [vmem:[#allocation7 + $0x1dc0] sm:$0xff]  ;;  %v1117_v20 = vld [vmem:[#allocation7 + $0x1dd0] sm:$0xff] }
 0x258   :  { %2046 = vmatpush1.msra.mxu1 %v571_v21  ;;  %2117 = vmatpush1.msra.mxu0 %v573_v22  ;;  %v1084_v21 = vld [vmem:[#allocation7 + $0x1cc8] sm:$0xff]  ;;  %v1086_v22 = vld [vmem:[#allocation7 + $0x1cd8] sm:$0xff] }
 0x259   :  { %2047 = vmatprep.subr.mxu1 %v540_v23  ;;  %2118 = vmatprep.subr.mxu0 %v542_v24  ;;  %v1083_v23 = vld [vmem:[#allocation7 + $0x1cc0] sm:$0xff]  ;;  %v1085_v24 = vld [vmem:[#allocation7 + $0x1cd0] sm:$0xff] }
 0x25a   :  { %2048 = vmatpush1.msra.mxu1 %v539_v25  ;;  %2119 = vmatpush1.msra.mxu0 %v541_v26  ;;  %v1052_v25 = vld [vmem:[#allocation7 + $0x1bc8] sm:$0xff]  ;;  %v1054_v26 = vld [vmem:[#allocation7 + $0x1bd8] sm:$0xff] }
 0x25b   :  { %2049 = vmatprep.subr.mxu1 %v508_v27  ;;  %2120 = vmatprep.subr.mxu0 %v510_v28  ;;  %v1051_v27 = vld [vmem:[#allocation7 + $0x1bc0] sm:$0xff]  ;;  %v1053_v28 = vld [vmem:[#allocation7 + $0x1bd0] sm:$0xff] }
 0x25c   :  { %2050 = vmatpush1.msra.mxu1 %v507_v29  ;;  %2121 = vmatpush1.msra.mxu0 %v509_v30  ;;  %v1020_v29 = vld [vmem:[#allocation7 + $0x1ac8] sm:$0xff]  ;;  %v1022_v30 = vld [vmem:[#allocation7 + $0x1ad8] sm:$0xff] }
 0x25d   :  { %2051 = vmatprep.subr.mxu1 %v476_v31  ;;  %2122 = vmatprep.subr.mxu0 %v478_v32  ;;  %v1019_v31 = vld [vmem:[#allocation7 + $0x1ac0] sm:$0xff]  ;;  %v1021_v32 = vld [vmem:[#allocation7 + $0x1ad0] sm:$0xff] }
 0x25e   :  { %2052 = vmatpush1.msra.mxu1 %v475_v35  ;;  %2123 = vmatpush1.msra.mxu0 %v477_v36  ;;  %v988_v35 = vld [vmem:[#allocation7 + $0x19c8] sm:$0xff]  ;;  %v990_v36 = vld [vmem:[#allocation7 + $0x19d8] sm:$0xff] }
 0x25f   :  { %2053 = vmatprep.subr.mxu1 %v444_v37  ;;  %2124 = vmatprep.subr.mxu0 %v446_v38  ;;  %v987_v37 = vld [vmem:[#allocation7 + $0x19c0] sm:$0xff]  ;;  %v989_v38 = vld [vmem:[#allocation7 + $0x19d0] sm:$0xff] }
 0x260   :  { %2054 = vmatpush1.msra.mxu1 %v443_v39  ;;  %2125 = vmatpush1.msra.mxu0 %v445_v40  ;;  %v956_v39 = vld [vmem:[#allocation7 + $0x18c8] sm:$0xff]  ;;  %v958_v40 = vld [vmem:[#allocation7 + $0x18d8] sm:$0xff] }
 0x261   :  { %2055 = vmatprep.subr.mxu1 %v412_v41  ;;  %2126 = vmatprep.subr.mxu0 %v414_v42  ;;  %v955_v41 = vld [vmem:[#allocation7 + $0x18c0] sm:$0xff]  ;;  %v957_v42 = vld [vmem:[#allocation7 + $0x18d0] sm:$0xff] }
 0x262   :  { %2056 = vmatpush1.msra.mxu1 %v411_v43  ;;  %2127 = vmatpush1.msra.mxu0 %v413_v44  ;;  %v924_v43 = vld [vmem:[#allocation7 + $0x17c8] sm:$0xff]  ;;  %v926_v44 = vld [vmem:[#allocation7 + $0x17d8] sm:$0xff] }
 0x263   :  { %2057 = vmatprep.subr.mxu1 %v380_v45  ;;  %2128 = vmatprep.subr.mxu0 %v382_v46  ;;  %v923_v45 = vld [vmem:[#allocation7 + $0x17c0] sm:$0xff]  ;;  %v925_v46 = vld [vmem:[#allocation7 + $0x17d0] sm:$0xff] }
 0x264   :  { %2058 = vmatpush1.msra.mxu1 %v379_v47  ;;  %2129 = vmatpush1.msra.mxu0 %v381_v48  ;;  %v892_v47 = vld [vmem:[#allocation7 + $0x16c8] sm:$0xff]  ;;  %v894_v48 = vld [vmem:[#allocation7 + $0x16d8] sm:$0xff] }
 0x265   :  { %2059 = vmatprep.subr.mxu1 %v348_v49  ;;  %2130 = vmatprep.subr.mxu0 %v350_v50  ;;  %v891_v49 = vld [vmem:[#allocation7 + $0x16c0] sm:$0xff]  ;;  %v893_v50 = vld [vmem:[#allocation7 + $0x16d0] sm:$0xff] }
 0x266   :  { %2060 = vmatpush1.msra.mxu1 %v347_v51  ;;  %2131 = vmatpush1.msra.mxu0 %v349_v52  ;;  %v860_v51 = vld [vmem:[#allocation7 + $0x15c8] sm:$0xff]  ;;  %v862_v52 = vld [vmem:[#allocation7 + $0x15d8] sm:$0xff] }
 0x267   :  { %2061 = vmatprep.subr.mxu1 %v316_v53  ;;  %2132 = vmatprep.subr.mxu0 %v318_v54  ;;  %v859_v53 = vld [vmem:[#allocation7 + $0x15c0] sm:$0xff]  ;;  %v861_v54 = vld [vmem:[#allocation7 + $0x15d0] sm:$0xff] }
 0x268   :  { %2062 = vmatpush1.msra.mxu1 %v315_v55  ;;  %2133 = vmatpush1.msra.mxu0 %v317_v56  ;;  %v828_v55 = vld [vmem:[#allocation7 + $0x14c8] sm:$0xff]  ;;  %v830_v56 = vld [vmem:[#allocation7 + $0x14d8] sm:$0xff] }
 0x269   :  { %2063 = vmatprep.subr.mxu1 %v284_v57  ;;  %2134 = vmatprep.subr.mxu0 %v286_v58  ;;  %v827_v57 = vld [vmem:[#allocation7 + $0x14c0] sm:$0xff]  ;;  %v829_v58 = vld [vmem:[#allocation7 + $0x14d0] sm:$0xff] }
 0x26a   :  { %2064 = vmatpush1.msra.mxu1 %v283_v59  ;;  %2135 = vmatpush1.msra.mxu0 %v285_v60  ;;  %v796_v59 = vld [vmem:[#allocation7 + $0x13c8] sm:$0xff]  ;;  %v798_v60 = vld [vmem:[#allocation7 + $0x13d8] sm:$0xff] }
 0x26b   :  { %2065 = vmatprep.subr.mxu1 %v252_v61  ;;  %2136 = vmatprep.subr.mxu0 %v254_v62  ;;  %v795_v61 = vld [vmem:[#allocation7 + $0x13c0] sm:$0xff]  ;;  %v797_v62 = vld [vmem:[#allocation7 + $0x13d0] sm:$0xff] }
 0x26c   :  { %2066 = vmatpush1.msra.mxu1 %v251_v63  ;;  %2137 = vmatpush1.msra.mxu0 %v253_v0  ;;  %v764_v63 = vld [vmem:[#allocation7 + $0x12c8] sm:$0xff]  ;;  %v766_v0 = vld [vmem:[#allocation7 + $0x12d8] sm:$0xff] }
 0x26d   :  { %2067 = vmatprep.subr.mxu1 %v220_v1  ;;  %2138 = vmatprep.subr.mxu0 %v222_v2  ;;  %v763_v1 = vld [vmem:[#allocation7 + $0x12c0] sm:$0xff]  ;;  %v765_v2 = vld [vmem:[#allocation7 + $0x12d0] sm:$0xff] }
 0x26e   :  { %2068 = vmatpush1.msra.mxu1 %v219_v3  ;;  %2139 = vmatpush1.msra.mxu0 %v221_v4  ;;  %v732_v3 = vld [vmem:[#allocation7 + $0x11c8] sm:$0xff]  ;;  %v734_v4 = vld [vmem:[#allocation7 + $0x11d8] sm:$0xff] }
 0x26f   :  { %2069 = vmatprep.subr.mxu1 %v188_v5  ;;  %2140 = vmatprep.subr.mxu0 %v190_v6  ;;  %v731_v5 = vld [vmem:[#allocation7 + $0x11c0] sm:$0xff]  ;;  %v733_v6 = vld [vmem:[#allocation7 + $0x11d0] sm:$0xff] }
 0x270   :  { %2070 = vmatpush1.msra.mxu1 %v187_v7  ;;  %2141 = vmatpush1.msra.mxu0 %v189_v8 }
 0x271   :  { %2071 = vmatprep.subr.mxu1 %v1180_v9  ;;  %2142 = vmatprep.subr.mxu0 %v1182_v10  ;;  %v700_v9 = vld [vmem:[#allocation7 + $0x10c8] sm:$0xff]  ;;  %v702_v10 = vld [vmem:[#allocation7 + $0x10d8] sm:$0xff] }
 0x272   :  { %2072 = vmatpush2.msra.mxu1 %v1179_v11  ;;  %2143 = vmatpush2.msra.mxu0 %v1181_v12  ;;  %v699_v11 = vld [vmem:[#allocation7 + $0x10c0] sm:$0xff]  ;;  %v701_v12 = vld [vmem:[#allocation7 + $0x10d0] sm:$0xff] }
 0x273   :  { %2073 = vmatprep.subr.mxu1 %v1148_v13  ;;  %2144 = vmatprep.subr.mxu0 %v1150_v14 }
 0x274   :  { %2074 = vmatpush2.msra.mxu1 %v1147_v15  ;;  %2145 = vmatpush2.msra.mxu0 %v1149_v16 }
 0x275   :  { %2075 = vmatprep.subr.mxu1 %v1116_v17  ;;  %2146 = vmatprep.subr.mxu0 %v1118_v18  ;;  %v672_v17 = vld [vmem:[#allocation7 + $0xfe8] sm:$0xff]  ;;  %v674_v18 = vld [vmem:[#allocation7 + $0xff8] sm:$0xff] }
 0x276   :  { %2076 = vmatpush2.msra.mxu1 %v1115_v19  ;;  %2147 = vmatpush2.msra.mxu0 %v1117_v20  ;;  %v671_v19 = vld [vmem:[#allocation7 + $0xfe0] sm:$0xff]  ;;  %v673_v20 = vld [vmem:[#allocation7 + $0xff0] sm:$0xff] }
 0x277   :  { %2077 = vmatprep.subr.mxu1 %v1084_v21  ;;  %2148 = vmatprep.subr.mxu0 %v1086_v22  ;;  %v640_v21 = vld [vmem:[#allocation7 + $0xee8] sm:$0xff]  ;;  %v642_v22 = vld [vmem:[#allocation7 + $0xef8] sm:$0xff] }
 0x278   :  { %2078 = vmatpush2.msra.mxu1 %v1083_v23  ;;  %2149 = vmatpush2.msra.mxu0 %v1085_v24  ;;  %v639_v23 = vld [vmem:[#allocation7 + $0xee0] sm:$0xff]  ;;  %v641_v24 = vld [vmem:[#allocation7 + $0xef0] sm:$0xff] }
 0x279   :  { %2079 = vmatprep.subr.mxu1 %v1052_v25  ;;  %2150 = vmatprep.subr.mxu0 %v1054_v26  ;;  %v608_v25 = vld [vmem:[#allocation7 + $0xde8] sm:$0xff]  ;;  %v610_v26 = vld [vmem:[#allocation7 + $0xdf8] sm:$0xff] }
 0x27a   :  { %2080 = vmatpush2.msra.mxu1 %v1051_v27  ;;  %2151 = vmatpush2.msra.mxu0 %v1053_v28  ;;  %v607_v27 = vld [vmem:[#allocation7 + $0xde0] sm:$0xff]  ;;  %v609_v28 = vld [vmem:[#allocation7 + $0xdf0] sm:$0xff] }
 0x27b   :  { %2081 = vmatprep.subr.mxu1 %v1020_v29  ;;  %2152 = vmatprep.subr.mxu0 %v1022_v30  ;;  %v576_v29 = vld [vmem:[#allocation7 + $0xce8] sm:$0xff]  ;;  %v578_v30 = vld [vmem:[#allocation7 + $0xcf8] sm:$0xff] }
 0x27c   :  { %2082 = vmatpush2.msra.mxu1 %v1019_v31  ;;  %2153 = vmatpush2.msra.mxu0 %v1021_v32  ;;  %v575_v31 = vld [vmem:[#allocation7 + $0xce0] sm:$0xff]  ;;  %v577_v32 = vld [vmem:[#allocation7 + $0xcf0] sm:$0xff] }
 0x27d   :  { %2083 = vmatprep.subr.mxu1 %v988_v35  ;;  %2154 = vmatprep.subr.mxu0 %v990_v36  ;;  %v544_v35 = vld [vmem:[#allocation7 + $0xbe8] sm:$0xff]  ;;  %v546_v36 = vld [vmem:[#allocation7 + $0xbf8] sm:$0xff] }
 0x27e   :  { %2084 = vmatpush2.msra.mxu1 %v987_v37  ;;  %2155 = vmatpush2.msra.mxu0 %v989_v38  ;;  %v545_v37 = vld [vmem:[#allocation7 + $0xbf0] sm:$0xff]  ;;  %v512_v38 = vld [vmem:[#allocation7 + $0xae8] sm:$0xff] }
 0x27f   :  { %2085 = vmatprep.subr.mxu1 %v956_v39  ;;  %2156 = vmatprep.subr.mxu0 %v958_v40  ;;  %v514_v39 = vld [vmem:[#allocation7 + $0xaf8] sm:$0xff]  ;;  %v511_v40 = vld [vmem:[#allocation7 + $0xae0] sm:$0xff] }
 0x280   :  { %2086 = vmatpush2.msra.mxu1 %v955_v41  ;;  %2157 = vmatpush2.msra.mxu0 %v957_v42  ;;  %v513_v41 = vld [vmem:[#allocation7 + $0xaf0] sm:$0xff]  ;;  %v480_v42 = vld [vmem:[#allocation7 + $0x9e8] sm:$0xff] }
 0x281   :  { %2087 = vmatprep.subr.mxu1 %v924_v43  ;;  %2158 = vmatprep.subr.mxu0 %v926_v44  ;;  %v482_v43 = vld [vmem:[#allocation7 + $0x9f8] sm:$0xff]  ;;  %v479_v44 = vld [vmem:[#allocation7 + $0x9e0] sm:$0xff] }
 0x282   :  { %2088 = vmatpush2.msra.mxu1 %v923_v45  ;;  %2159 = vmatpush2.msra.mxu0 %v925_v46  ;;  %v481_v45 = vld [vmem:[#allocation7 + $0x9f0] sm:$0xff]  ;;  %v448_v46 = vld [vmem:[#allocation7 + $0x8e8] sm:$0xff] }
 0x283   :  { %2089 = vmatprep.subr.mxu1 %v892_v47  ;;  %2160 = vmatprep.subr.mxu0 %v894_v48  ;;  %v450_v47 = vld [vmem:[#allocation7 + $0x8f8] sm:$0xff]  ;;  %v447_v48 = vld [vmem:[#allocation7 + $0x8e0] sm:$0xff] }
 0x284   :  { %2090 = vmatpush2.msra.mxu1 %v891_v49  ;;  %2161 = vmatpush2.msra.mxu0 %v893_v50  ;;  %v449_v49 = vld [vmem:[#allocation7 + $0x8f0] sm:$0xff]  ;;  %v416_v50 = vld [vmem:[#allocation7 + $0x7e8] sm:$0xff] }
 0x285   :  { %2091 = vmatprep.subr.mxu1 %v860_v51  ;;  %2162 = vmatprep.subr.mxu0 %v862_v52  ;;  %v418_v51 = vld [vmem:[#allocation7 + $0x7f8] sm:$0xff]  ;;  %v415_v52 = vld [vmem:[#allocation7 + $0x7e0] sm:$0xff] }
 0x286   :  { %2092 = vmatpush2.msra.mxu1 %v859_v53  ;;  %2163 = vmatpush2.msra.mxu0 %v861_v54  ;;  %v417_v53 = vld [vmem:[#allocation7 + $0x7f0] sm:$0xff]  ;;  %v384_v54 = vld [vmem:[#allocation7 + $0x6e8] sm:$0xff] }
 0x287   :  { %2093 = vmatprep.subr.mxu1 %v828_v55  ;;  %2164 = vmatprep.subr.mxu0 %v830_v56  ;;  %v386_v55 = vld [vmem:[#allocation7 + $0x6f8] sm:$0xff]  ;;  %v383_v56 = vld [vmem:[#allocation7 + $0x6e0] sm:$0xff] }
 0x288   :  { %2094 = vmatpush2.msra.mxu1 %v827_v57  ;;  %2165 = vmatpush2.msra.mxu0 %v829_v58  ;;  %v385_v57 = vld [vmem:[#allocation7 + $0x6f0] sm:$0xff]  ;;  %v352_v58 = vld [vmem:[#allocation7 + $0x5e8] sm:$0xff] }
 0x289   :  { %2095 = vmatprep.subr.mxu1 %v796_v59  ;;  %2166 = vmatprep.subr.mxu0 %v798_v60  ;;  %v354_v59 = vld [vmem:[#allocation7 + $0x5f8] sm:$0xff]  ;;  %v351_v60 = vld [vmem:[#allocation7 + $0x5e0] sm:$0xff] }
 0x28a   :  { %2096 = vmatpush2.msra.mxu1 %v795_v61  ;;  %2167 = vmatpush2.msra.mxu0 %v797_v62  ;;  %v353_v61 = vld [vmem:[#allocation7 + $0x5f0] sm:$0xff]  ;;  %v320_v62 = vld [vmem:[#allocation7 + $0x4e8] sm:$0xff] }
 0x28b   :  { %2097 = vmatprep.subr.mxu1 %v764_v63  ;;  %2168 = vmatprep.subr.mxu0 %v766_v0  ;;  %v1679_v7 = vpop.f32.mrf.mxu1  ;;  %v1750_v8 = vpop.f32.mrf.mxu0  ;;  %v322_v63 = vld [vmem:[#allocation7 + $0x4f8] sm:$0xff]  ;;  %v319_v0 = vld [vmem:[#allocation7 + $0x4e0] sm:$0xff] }
 0x28c   :  { %2098 = vmatpush2.msra.mxu1 %v763_v1  ;;  %2169 = vmatpush2.msra.mxu0 %v765_v2  ;;  %v321_v1 = vld [vmem:[#allocation7 + $0x4f0] sm:$0xff]  ;;  %v288_v2 = vld [vmem:[#allocation7 + $0x3e8] sm:$0xff] }
 0x28d   :  { %2099 = vmatprep.subr.mxu1 %v732_v3  ;;  %2170 = vmatprep.subr.mxu0 %v734_v4  ;;  %v1681_v13 = vpop.f32.mrf.mxu1  ;;  %v1752_v14 = vpop.f32.mrf.mxu0  ;;  %v290_v3 = vld [vmem:[#allocation7 + $0x3f8] sm:$0xff]  ;;  %v287_v4 = vld [vmem:[#allocation7 + $0x3e0] sm:$0xff] }
 0x28e   :  { %2100 = vmatpush2.msra.mxu1 %v731_v5  ;;  %2171 = vmatpush2.msra.mxu0 %v733_v6  ;;  %v2361_v15 = vcombine.low %v1679_v7, %v1681_v13  ;;  %v2362_v16 = vcombine.low %v1750_v8, %v1752_v14  ;;  %v289_v5 = vld [vmem:[#allocation7 + $0x3f0] sm:$0xff]  ;;  %v256_v6 = vld [vmem:[#allocation7 + $0x2e8] sm:$0xff]  ;;  %v258_v7 = vld [vmem:[#allocation7 + $0x2f8] sm:$0xff] }
 0x28f   :  { %2101 = vmatprep.subr.mxu1 %v700_v9  ;;  %2172 = vmatprep.subr.mxu0 %v702_v10  ;;  %v255_v8 = vld [vmem:[#allocation7 + $0x2e0] sm:$0xff]  ;;  %v257_v9 = vld [vmem:[#allocation7 + $0x2f0] sm:$0xff]  ;;  %v224_v10 = vld [vmem:[#allocation7 + $0x1e8] sm:$0xff] }
 0x290   :  { %2102 = vmatpush2.msra.mxu1 %v699_v11  ;;  %2173 = vmatpush2.msra.mxu0 %v701_v12  ;;  %2393 = vst [vmem:[#allocation8 + $0x30] sm:$0xff] %v2361_v15  ;;  %2394 = vst [vmem:[#allocation8 + $0x38] sm:$0xff] %v2362_v16  ;;  %v226_v11 = vld [vmem:[#allocation7 + $0x1f8] sm:$0xff]  ;;  %v223_v12 = vld [vmem:[#allocation7 + $0x1e0] sm:$0xff] }
 0x291   :  { %2104 = vmatmul.mubr.f32.vlgmr.msra.gmra.mxu1 %v2564_v34  ;;  %2175 = vmatmul.mubr.f32.vlgmr.msra.gmra.mxu0 %v2564_v34  ;;  %v225_v13 = vld [vmem:[#allocation7 + $0x1f0] sm:$0xff]  ;;  %v192_v14 = vld [vmem:[#allocation7 + $0xe8] sm:$0xff]  ;;  %v194_v15 = vld [vmem:[#allocation7 + $0xf8] sm:$0xff] }
 0x292   :  { %2181 = vmatprep.subr.mxu1 %v672_v17  ;;  %2252 = vmatprep.subr.mxu0 %v674_v18  ;;  %v191_v16 = vld [vmem:[#allocation7 + $0xe0] sm:$0xff]  ;;  %v193_v17 = vld [vmem:[#allocation7 + $0xf0] sm:$0xff]  ;;  %v1184_v18 = vld [vmem:[#allocation7 + $0x1fe8] sm:$0xff] }
 0x293   :  { %2182 = vmatpush1.msra.mxu1 %v671_v19  ;;  %2245 = vmatprep.mubr.f32.mxu1 %v2562_v33  ;;  %v1186_v19 = vld [vmem:[#allocation7 + $0x1ff8] sm:$0xff] }
 0x294   :  { %2253 = vmatpush1.msra.mxu0 %v673_v20  ;;  %2316 = vmatprep.mubr.f32.mxu0 %v2562_v33  ;;  %v543_v33 = vld [vmem:[#allocation7 + $0xbe0] sm:$0xff] }
 0x295   :  { %2183 = vmatprep.subr.mxu1 %v640_v21  ;;  %2254 = vmatprep.subr.mxu0 %v642_v22  ;;  %v1183_v20 = vld [vmem:[#allocation7 + $0x1fe0] sm:$0xff]  ;;  %v1185_v21 = vld [vmem:[#allocation7 + $0x1ff0] sm:$0xff]  ;;  %v1152_v22 = vld [vmem:[#allocation7 + $0x1ee8] sm:$0xff] }
 0x296   :  { %2184 = vmatpush1.msra.mxu1 %v639_v23  ;;  %2255 = vmatpush1.msra.mxu0 %v641_v24  ;;  %v1154_v23 = vld [vmem:[#allocation7 + $0x1ef8] sm:$0xff]  ;;  %v1151_v24 = vld [vmem:[#allocation7 + $0x1ee0] sm:$0xff] }
 0x297   :  { %2185 = vmatprep.subr.mxu1 %v608_v25  ;;  %2256 = vmatprep.subr.mxu0 %v610_v26  ;;  %v1153_v25 = vld [vmem:[#allocation7 + $0x1ef0] sm:$0xff]  ;;  %v1120_v26 = vld [vmem:[#allocation7 + $0x1de8] sm:$0xff] }
 0x298   :  { %2186 = vmatpush1.msra.mxu1 %v607_v27  ;;  %2257 = vmatpush1.msra.mxu0 %v609_v28  ;;  %v1122_v27 = vld [vmem:[#allocation7 + $0x1df8] sm:$0xff]  ;;  %v1119_v28 = vld [vmem:[#allocation7 + $0x1de0] sm:$0xff] }
 0x299   :  { %2187 = vmatprep.subr.mxu1 %v576_v29  ;;  %2258 = vmatprep.subr.mxu0 %v578_v30  ;;  %v1121_v29 = vld [vmem:[#allocation7 + $0x1df0] sm:$0xff]  ;;  %v1088_v30 = vld [vmem:[#allocation7 + $0x1ce8] sm:$0xff] }
 0x29a   :  { %2188 = vmatpush1.msra.mxu1 %v575_v31  ;;  %2259 = vmatpush1.msra.mxu0 %v577_v32  ;;  %v1090_v31 = vld [vmem:[#allocation7 + $0x1cf8] sm:$0xff]  ;;  %v1087_v32 = vld [vmem:[#allocation7 + $0x1ce0] sm:$0xff] }
 0x29b   :  { %2189 = vmatprep.subr.mxu1 %v544_v35  ;;  %2260 = vmatprep.subr.mxu0 %v546_v36  ;;  %v1089_v35 = vld [vmem:[#allocation7 + $0x1cf0] sm:$0xff]  ;;  %v1056_v36 = vld [vmem:[#allocation7 + $0x1be8] sm:$0xff] }
 0x29c   :  { %2190 = vmatpush1.msra.mxu1 %v543_v33  ;;  %2261 = vmatpush1.msra.mxu0 %v545_v37  ;;  %v1058_v33 = vld [vmem:[#allocation7 + $0x1bf8] sm:$0xff]  ;;  %v1055_v37 = vld [vmem:[#allocation7 + $0x1be0] sm:$0xff] }
 0x29d   :  { %2191 = vmatprep.subr.mxu1 %v512_v38  ;;  %2262 = vmatprep.subr.mxu0 %v514_v39  ;;  %v1057_v38 = vld [vmem:[#allocation7 + $0x1bf0] sm:$0xff]  ;;  %v1024_v39 = vld [vmem:[#allocation7 + $0x1ae8] sm:$0xff] }
 0x29e   :  { %2192 = vmatpush1.msra.mxu1 %v511_v40  ;;  %2263 = vmatpush1.msra.mxu0 %v513_v41  ;;  %v1026_v40 = vld [vmem:[#allocation7 + $0x1af8] sm:$0xff]  ;;  %v1023_v41 = vld [vmem:[#allocation7 + $0x1ae0] sm:$0xff] }
 0x29f   :  { %2193 = vmatprep.subr.mxu1 %v480_v42  ;;  %2264 = vmatprep.subr.mxu0 %v482_v43  ;;  %v1025_v42 = vld [vmem:[#allocation7 + $0x1af0] sm:$0xff]  ;;  %v992_v43 = vld [vmem:[#allocation7 + $0x19e8] sm:$0xff] }
 0x2a0   :  { %2194 = vmatpush1.msra.mxu1 %v479_v44  ;;  %2265 = vmatpush1.msra.mxu0 %v481_v45  ;;  %v994_v44 = vld [vmem:[#allocation7 + $0x19f8] sm:$0xff]  ;;  %v991_v45 = vld [vmem:[#allocation7 + $0x19e0] sm:$0xff] }
 0x2a1   :  { %2195 = vmatprep.subr.mxu1 %v448_v46  ;;  %2266 = vmatprep.subr.mxu0 %v450_v47  ;;  %v993_v46 = vld [vmem:[#allocation7 + $0x19f0] sm:$0xff]  ;;  %v960_v47 = vld [vmem:[#allocation7 + $0x18e8] sm:$0xff] }
 0x2a2   :  { %2196 = vmatpush1.msra.mxu1 %v447_v48  ;;  %2267 = vmatpush1.msra.mxu0 %v449_v49  ;;  %v962_v48 = vld [vmem:[#allocation7 + $0x18f8] sm:$0xff]  ;;  %v959_v49 = vld [vmem:[#allocation7 + $0x18e0] sm:$0xff] }
 0x2a3   :  { %2197 = vmatprep.subr.mxu1 %v416_v50  ;;  %2268 = vmatprep.subr.mxu0 %v418_v51  ;;  %v961_v50 = vld [vmem:[#allocation7 + $0x18f0] sm:$0xff]  ;;  %v928_v51 = vld [vmem:[#allocation7 + $0x17e8] sm:$0xff] }
 0x2a4   :  { %2198 = vmatpush1.msra.mxu1 %v415_v52  ;;  %2269 = vmatpush1.msra.mxu0 %v417_v53  ;;  %v930_v52 = vld [vmem:[#allocation7 + $0x17f8] sm:$0xff]  ;;  %v927_v53 = vld [vmem:[#allocation7 + $0x17e0] sm:$0xff] }
 0x2a5   :  { %2199 = vmatprep.subr.mxu1 %v384_v54  ;;  %2270 = vmatprep.subr.mxu0 %v386_v55  ;;  %v929_v54 = vld [vmem:[#allocation7 + $0x17f0] sm:$0xff]  ;;  %v896_v55 = vld [vmem:[#allocation7 + $0x16e8] sm:$0xff] }
 0x2a6   :  { %2200 = vmatpush1.msra.mxu1 %v383_v56  ;;  %2271 = vmatpush1.msra.mxu0 %v385_v57  ;;  %v898_v56 = vld [vmem:[#allocation7 + $0x16f8] sm:$0xff]  ;;  %v895_v57 = vld [vmem:[#allocation7 + $0x16e0] sm:$0xff] }
 0x2a7   :  { %2201 = vmatprep.subr.mxu1 %v352_v58  ;;  %2272 = vmatprep.subr.mxu0 %v354_v59  ;;  %v897_v58 = vld [vmem:[#allocation7 + $0x16f0] sm:$0xff]  ;;  %v864_v59 = vld [vmem:[#allocation7 + $0x15e8] sm:$0xff] }
 0x2a8   :  { %2202 = vmatpush1.msra.mxu1 %v351_v60  ;;  %2273 = vmatpush1.msra.mxu0 %v353_v61  ;;  %v866_v60 = vld [vmem:[#allocation7 + $0x15f8] sm:$0xff]  ;;  %v863_v61 = vld [vmem:[#allocation7 + $0x15e0] sm:$0xff] }
 0x2a9   :  { %2203 = vmatprep.subr.mxu1 %v320_v62  ;;  %2274 = vmatprep.subr.mxu0 %v322_v63  ;;  %v865_v62 = vld [vmem:[#allocation7 + $0x15f0] sm:$0xff]  ;;  %v832_v63 = vld [vmem:[#allocation7 + $0x14e8] sm:$0xff] }
 0x2aa   :  { %2204 = vmatpush1.msra.mxu1 %v319_v0  ;;  %2275 = vmatpush1.msra.mxu0 %v321_v1  ;;  %v834_v0 = vld [vmem:[#allocation7 + $0x14f8] sm:$0xff]  ;;  %v831_v1 = vld [vmem:[#allocation7 + $0x14e0] sm:$0xff] }
 0x2ab   :  { %2205 = vmatprep.subr.mxu1 %v288_v2  ;;  %2276 = vmatprep.subr.mxu0 %v290_v3  ;;  %v833_v2 = vld [vmem:[#allocation7 + $0x14f0] sm:$0xff]  ;;  %v800_v3 = vld [vmem:[#allocation7 + $0x13e8] sm:$0xff] }
 0x2ac   :  { %2206 = vmatpush1.msra.mxu1 %v287_v4  ;;  %2277 = vmatpush1.msra.mxu0 %v289_v5  ;;  %v802_v4 = vld [vmem:[#allocation7 + $0x13f8] sm:$0xff]  ;;  %v799_v5 = vld [vmem:[#allocation7 + $0x13e0] sm:$0xff] }
 0x2ad   :  { %2207 = vmatprep.subr.mxu1 %v256_v6  ;;  %2278 = vmatprep.subr.mxu0 %v258_v7  ;;  %v801_v6 = vld [vmem:[#allocation7 + $0x13f0] sm:$0xff]  ;;  %v768_v7 = vld [vmem:[#allocation7 + $0x12e8] sm:$0xff] }
 0x2ae   :  { %2208 = vmatpush1.msra.mxu1 %v255_v8  ;;  %2279 = vmatpush1.msra.mxu0 %v257_v9  ;;  %v770_v8 = vld [vmem:[#allocation7 + $0x12f8] sm:$0xff]  ;;  %v767_v9 = vld [vmem:[#allocation7 + $0x12e0] sm:$0xff] }
 0x2af   :  { %2209 = vmatprep.subr.mxu1 %v224_v10  ;;  %2280 = vmatprep.subr.mxu0 %v226_v11  ;;  %v769_v10 = vld [vmem:[#allocation7 + $0x12f0] sm:$0xff]  ;;  %v736_v11 = vld [vmem:[#allocation7 + $0x11e8] sm:$0xff] }
 0x2b0   :  { %2210 = vmatpush1.msra.mxu1 %v223_v12  ;;  %2281 = vmatpush1.msra.mxu0 %v225_v13  ;;  %v738_v12 = vld [vmem:[#allocation7 + $0x11f8] sm:$0xff]  ;;  %v735_v13 = vld [vmem:[#allocation7 + $0x11e0] sm:$0xff] }
 0x2b1   :  { %2211 = vmatprep.subr.mxu1 %v192_v14  ;;  %2282 = vmatprep.subr.mxu0 %v194_v15  ;;  %v737_v14 = vld [vmem:[#allocation7 + $0x11f0] sm:$0xff] }
 0x2b2   :  { %2212 = vmatpush1.msra.mxu1 %v191_v16  ;;  %2283 = vmatpush1.msra.mxu0 %v193_v17  ;;  %v704_v17 = vld [vmem:[#allocation7 + $0x10e8] sm:$0xff] }
 0x2b3   :  { %2213 = vmatprep.subr.mxu1 %v1184_v18  ;;  %2284 = vmatprep.subr.mxu0 %v1186_v19  ;;  %v706_v18 = vld [vmem:[#allocation7 + $0x10f8] sm:$0xff]  ;;  %v703_v19 = vld [vmem:[#allocation7 + $0x10e0] sm:$0xff] }
 0x2b4   :  { %2214 = vmatpush2.msra.mxu1 %v1183_v20  ;;  %2285 = vmatpush2.msra.mxu0 %v1185_v21  ;;  %v705_v20 = vld [vmem:[#allocation7 + $0x10f0] sm:$0xff] }
 0x2b5   :  { %2215 = vmatprep.subr.mxu1 %v1152_v22  ;;  %2286 = vmatprep.subr.mxu0 %v1154_v23 }
 0x2b6   :  { %2216 = vmatpush2.msra.mxu1 %v1151_v24  ;;  %2287 = vmatpush2.msra.mxu0 %v1153_v25 }
 0x2b7   :  { %2217 = vmatprep.subr.mxu1 %v1120_v26  ;;  %2288 = vmatprep.subr.mxu0 %v1122_v27 }
 0x2b8   :  { %2218 = vmatpush2.msra.mxu1 %v1119_v28  ;;  %2289 = vmatpush2.msra.mxu0 %v1121_v29 }
 0x2b9   :  { %2219 = vmatprep.subr.mxu1 %v1088_v30  ;;  %2290 = vmatprep.subr.mxu0 %v1090_v31 }
 0x2ba   :  { %2220 = vmatpush2.msra.mxu1 %v1087_v32  ;;  %2291 = vmatpush2.msra.mxu0 %v1089_v35 }
 0x2bb   :  { %2221 = vmatprep.subr.mxu1 %v1056_v36  ;;  %2292 = vmatprep.subr.mxu0 %v1058_v33 }
 0x2bc   :  { %2222 = vmatpush2.msra.mxu1 %v1055_v37  ;;  %2293 = vmatpush2.msra.mxu0 %v1057_v38 }
 0x2bd   :  { %2223 = vmatprep.subr.mxu1 %v1024_v39  ;;  %2294 = vmatprep.subr.mxu0 %v1026_v40 }
 0x2be   :  { %2224 = vmatpush2.msra.mxu1 %v1023_v41  ;;  %2295 = vmatpush2.msra.mxu0 %v1025_v42 }
 0x2bf   :  { %2225 = vmatprep.subr.mxu1 %v992_v43  ;;  %2296 = vmatprep.subr.mxu0 %v994_v44 }
 0x2c0   :  { %2226 = vmatpush2.msra.mxu1 %v991_v45  ;;  %2297 = vmatpush2.msra.mxu0 %v993_v46 }
 0x2c1   :  { %2227 = vmatprep.subr.mxu1 %v960_v47  ;;  %2298 = vmatprep.subr.mxu0 %v962_v48 }
 0x2c2   :  { %2228 = vmatpush2.msra.mxu1 %v959_v49  ;;  %2299 = vmatpush2.msra.mxu0 %v961_v50 }
 0x2c3   :  { %2229 = vmatprep.subr.mxu1 %v928_v51  ;;  %2300 = vmatprep.subr.mxu0 %v930_v52 }
 0x2c4   :  { %2230 = vmatpush2.msra.mxu1 %v927_v53  ;;  %2301 = vmatpush2.msra.mxu0 %v929_v54 }
 0x2c5   :  { %2231 = vmatprep.subr.mxu1 %v896_v55  ;;  %2302 = vmatprep.subr.mxu0 %v898_v56 }
 0x2c6   :  { %2232 = vmatpush2.msra.mxu1 %v895_v57  ;;  %2303 = vmatpush2.msra.mxu0 %v897_v58 }
 0x2c7   :  { %2233 = vmatprep.subr.mxu1 %v864_v59  ;;  %2304 = vmatprep.subr.mxu0 %v866_v60 }
 0x2c8   :  { %2234 = vmatpush2.msra.mxu1 %v863_v61  ;;  %2305 = vmatpush2.msra.mxu0 %v865_v62 }
 0x2c9   :  { %2235 = vmatprep.subr.mxu1 %v832_v63  ;;  %2306 = vmatprep.subr.mxu0 %v834_v0 }
 0x2ca   :  { %2236 = vmatpush2.msra.mxu1 %v831_v1  ;;  %2307 = vmatpush2.msra.mxu0 %v833_v2 }
 0x2cb   :  { %2237 = vmatprep.subr.mxu1 %v800_v3  ;;  %2308 = vmatprep.subr.mxu0 %v802_v4 }
 0x2cc   :  { %2238 = vmatpush2.msra.mxu1 %v799_v5  ;;  %2309 = vmatpush2.msra.mxu0 %v801_v6 }
 0x2cd   :  { %2239 = vmatprep.subr.mxu1 %v768_v7  ;;  %2310 = vmatprep.subr.mxu0 %v770_v8  ;;  %v1821_v15 = vpop.f32.mrf.mxu1  ;;  %v1892_v16 = vpop.f32.mrf.mxu0 }
 0x2ce   :  { %2240 = vmatpush2.msra.mxu1 %v767_v9  ;;  %2311 = vmatpush2.msra.mxu0 %v769_v10 }
 0x2cf   :  { %2241 = vmatprep.subr.mxu1 %v736_v11  ;;  %2312 = vmatprep.subr.mxu0 %v738_v12  ;;  %v1823_v21 = vpop.f32.mrf.mxu1  ;;  %v1894_v22 = vpop.f32.mrf.mxu0 }
 0x2d0   :  { %2242 = vmatpush2.msra.mxu1 %v735_v13  ;;  %2313 = vmatpush2.msra.mxu0 %v737_v14  ;;  %v2363_v23 = vcombine.low %v1821_v15, %v1823_v21  ;;  %v2364_v24 = vcombine.low %v1892_v16, %v1894_v22 }
 0x2d1   :  { %2243 = vmatprep.subr.mxu1 %v704_v17  ;;  %2314 = vmatprep.subr.mxu0 %v706_v18 }
 0x2d2   :  { %2244 = vmatpush2.msra.mxu1 %v703_v19  ;;  %2315 = vmatpush2.msra.mxu0 %v705_v20  ;;  %2395 = vst [vmem:[#allocation8 + $0x40] sm:$0xff] %v2363_v23  ;;  %2396 = vst [vmem:[#allocation8 + $0x48] sm:$0xff] %v2364_v24 }
 0x2d3   :  { %2246 = vmatmul.mubr.f32.vlgmr.msra.gmra.mxu1 %v2564_v34  ;;  %2317 = vmatmul.mubr.f32.vlgmr.msra.gmra.mxu0 %v2564_v34 }
 0x30f   :  { %v1963_v25 = vpop.f32.mrf.mxu1  ;;  %v2034_v26 = vpop.f32.mrf.mxu0 }
 0x311   :  { %v1965_v27 = vpop.f32.mrf.mxu1  ;;  %v2036_v28 = vpop.f32.mrf.mxu0 }
 0x312   :  { %v2365_v29 = vcombine.low %v1963_v25, %v1965_v27  ;;  %v2366_v30 = vcombine.low %v2034_v26, %v2036_v28 }
 0x314   :  { %2397 = vst [vmem:[#allocation8 + $0x50] sm:$0xff] %v2365_v29  ;;  %2398 = vst [vmem:[#allocation8 + $0x58] sm:$0xff] %v2366_v30 }
 0x351   :  { %v2105_v31 = vpop.f32.mrf.mxu1  ;;  %v2176_v32 = vpop.f32.mrf.mxu0 }
 0x353   :  { %v2107_v35 = vpop.f32.mrf.mxu1  ;;  %v2178_v36 = vpop.f32.mrf.mxu0 }
 0x354   :  { %v2367_v33 = vcombine.low %v2105_v31, %v2107_v35  ;;  %v2368_v37 = vcombine.low %v2176_v32, %v2178_v36 }
 0x356   :  { %2399 = vst [vmem:[#allocation8 + $0x60] sm:$0xff] %v2367_v33  ;;  %2400 = vst [vmem:[#allocation8 + $0x68] sm:$0xff] %v2368_v37 }
 0x393   :  { %v2247_v38 = vpop.f32.mrf.mxu1  ;;  %v2318_v39 = vpop.f32.mrf.mxu0 }
 0x395   :  { %v2249_v34 = vpop.f32.mrf.mxu1  ;;  %v2320_v40 = vpop.f32.mrf.mxu0 }
 0x396   :  { %v2369_v41 = vcombine.low %v2247_v38, %v2249_v34  ;;  %v2370_v42 = vcombine.low %v2318_v39, %v2320_v40 }
 0x398   :  { %2401 = vst [vmem:[#allocation8 + $0x70] sm:$0xff] %v2369_v41  ;;  %2402 = vst [vmem:[#allocation8 + $0x78] sm:$0xff] %v2370_v42 }
 0x399   :  { %2501 = shalt.err (!%p2498_p5)
}
 0x39a   :  { %2412 = dma.vmem_to_hbm [thread:$0]  %s2410_s6, 2048, %s2605_s4, [#allocation4]  }
 0x39b   :  { %2514 = dma.done.wait [#allocation4], 2048  }
 0x39c   :  { %2515 = vsyncadd [#allocation4], 4294965248 }
 0x39d   :  { %2416 = vsyncpa [#allocation3], 1 }
 0x39e   :  { %2417 = vsyncpa [#allocation6], 1 }
 0x39f   :  { %2418 = vsyncpa [#allocation4], 1 }

</bundles_post_ra>
